<compile_context>
chip_gen: v5e
topology: v5e:2x2
jax: 0.10.0
libtpu: 0.0.40
codegen_flags: <defaults>
</compile_context>

<pallas_src>
import math
from functools import partial

import jax
import jax.numpy as jnp
from jax.experimental import pallas as pl
from jax.experimental.pallas import tpu as pltpu

_LANES = 128


def _exp_normal_smearing_kernel(d_ref, means_ref, betas_ref, o_ref, *,
                                cutoff: float, alpha: float):
    # Lane-dense (tile_r, 128) block of distances; compute everything in f32.
    d = d_ref[...].astype(jnp.float32)                 # (tile_r, 128)
    means = means_ref[...]                             # (1, n_rbf) f32
    betas = betas_ref[...]                             # (1, n_rbf) f32

    # Cosine cutoff: 0.5 * (cos(pi * d / cutoff) + 1) * (d < cutoff)
    cut = 0.5 * (jnp.cos(d * (math.pi / cutoff)) + 1.0)
    cut = jnp.where(d < cutoff, cut, 0.0)              # (tile_r, 128)

    # RBF expansion: exp(-betas * (exp(-alpha * d) - means)^2)
    u = jnp.exp(-alpha * d)                            # (tile_r, 128)      EUP
    diff = u[..., None] - means                        # (tile_r, 128, n_rbf)
    rbf = jnp.exp(-betas * (diff * diff))              # (tile_r, 128, n_rbf) EUP

    o_ref[...] = (cut[..., None] * rbf).astype(o_ref.dtype)


def _default_tile_rows_and_vmem():
    """Per-generation row-block (of 128 distances each) and VMEM budget."""
    try:
        kind = jax.devices()[0].device_kind.lower()
    except Exception:  # pragma: no cover - defensive
        kind = ""
    if "v6" in kind:
        # 128 MiB VMEM, 1.4 TB/s HBM: 32768 distances/step
        # (2 x 16 MiB lane-padded output buffers) -> <7% step overhead.
        return 256, 64 * 1024 * 1024
    if "v5" in kind:
        # 0.82 TB/s HBM: 16384 distances/step is already >92% of roofline;
        # scoped default is only 16 MiB, so raise it explicitly.
        return 128, 40 * 1024 * 1024
    # v7x / unknown: only 64 MiB physical VMEM per TC -> 16384 distances/step
    # (2 x 8 MiB output buffers) leaves plenty of headroom; megacore shards
    # the "parallel" grid axis across both TCs.
    return 128, 40 * 1024 * 1024


def exp_normal_smearing(dist: jax.Array, means: jax.Array, betas: jax.Array,
                        *, cutoff: float = 5.0,
                        tile_rows: int | None = None) -> jax.Array:
    """ExpNormalSmearing.forward as a Pallas TPU kernel.

    dist:  arbitrary shape [...]; output is [..., n_rbf] in dist.dtype
    means: (n_rbf,) buffer/parameter
    betas: (n_rbf,) buffer/parameter
    tile_rows: row-blocks of 128 distances processed per grid step
               (None -> generation-dependent default).
    """
    orig_shape = dist.shape
    out_dtype = dist.dtype
    n_rbf = means.shape[-1]

    # Lane-dense layout: pad N to a multiple of 128 and view as (R, 128).
    d_flat = dist.reshape(-1)
    N = d_flat.shape[0]
    R = pl.cdiv(N, _LANES)
    n_pad = R * _LANES
    if n_pad != N:
        d_flat = jnp.pad(d_flat, (0, n_pad - N))
    d2 = d_flat.reshape(R, _LANES)

    # Keep parameters in f32 even if dist is bf16 (accuracy of the exponent).
    means2 = means.reshape(1, n_rbf).astype(jnp.float32)
    betas2 = betas.reshape(1, n_rbf).astype(jnp.float32)

    default_rows, vmem_limit = _default_tile_rows_and_vmem()
    tile_r = int(tile_rows) if tile_rows is not None else default_rows
    tile_r = min(tile_r, R)
    if tile_r < R:
        # Block second-last dim must be a multiple of 8 unless it equals R.
        tile_r = max(8, (tile_r // 8) * 8)
    grid = (pl.cdiv(R, tile_r),)

    alpha = 5.0 / float(cutoff)
    itemsize = jnp.dtype(out_dtype).itemsize
    cost = pl.CostEstimate(
        flops=n_pad * (6 * n_rbf + 6),
        transcendentals=n_pad * (n_rbf + 2),
        bytes_accessed=itemsize * n_pad * (1 + n_rbf) + 4 * 2 * n_rbf,
    )

    out = pl.pallas_call(
        partial(_exp_normal_smearing_kernel,
                cutoff=float(cutoff), alpha=alpha),
        out_shape=jax.ShapeDtypeStruct((R, _LANES, n_rbf), out_dtype),
        grid_spec=pltpu.PrefetchScalarGridSpec(
            num_scalar_prefetch=0,
            grid=grid,
            in_specs=[
                pl.BlockSpec((tile_r, _LANES), lambda i: (i, 0)),     # distances
                pl.BlockSpec((1, n_rbf), lambda i: (0, 0)),           # means (resident)
                pl.BlockSpec((1, n_rbf), lambda i: (0, 0)),           # betas (resident)
            ],
            out_specs=pl.BlockSpec((tile_r, _LANES, n_rbf),
                                   lambda i: (i, 0, 0)),
        ),
        compiler_params=pltpu.CompilerParams(
            dimension_semantics=("parallel",),
            vmem_limit_bytes=vmem_limit,
        ),
        cost_estimate=cost,
    )(d2, means2, betas2)

    # (R, 128, n_rbf) has the same HBM byte layout as (n_pad, n_rbf).
    out = out.reshape(n_pad, n_rbf)
    if n_pad != N:
        out = out[:N]
    return out.reshape(*orig_shape, n_rbf)


def _initial_params(cutoff: float, n_rbf: int):
    """Mirror of ExpNormalSmearing._initial_params (non-trainable buffers)."""
    start_value = math.exp(-cutoff)
    means = jnp.linspace(start_value, 1.0, n_rbf, dtype=jnp.float32)
    betas = jnp.full((n_rbf,), (2.0 / n_rbf * (1.0 - start_value)) ** (-2),
                     dtype=jnp.float32)
    return means, betas


def _reference(dist, means, betas, cutoff):
    """Plain-JAX reference with the exact torch forward semantics."""
    alpha = 5.0 / cutoff
    d = dist[..., None]
    cut = 0.5 * (jnp.cos(d * jnp.pi / cutoff) + 1.0)
    cut = cut * (d < cutoff).astype(d.dtype)
    return cut * jnp.exp(-betas * (jnp.exp(-alpha * d) - means) ** 2)


if __name__ == "__main__":
    key = jax.random.PRNGKey(0)

    # Small shapes consistent with the module: a batch of edge distances and
    # the default 50 radial basis functions.
    cutoff, n_rbf = 5.0, 50
    B, E = 4, 500                               # dist (4, 500) -> out (4, 500, 50)
    dist = jax.random.uniform(key, (B, E), dtype=jnp.float32,
                              minval=0.0, maxval=1.2 * cutoff)  # spans the cutoff

    means, betas = _initial_params(cutoff, n_rbf)

    # tile_rows=8 here just to exercise a multi-step grid (plus row padding,
    # N=2000 -> 16 lane-rows) at demo size; production default is 16k-32k
    # distances per grid step.
    y = exp_normal_smearing(dist, means, betas, cutoff=cutoff, tile_rows=8)
    y = jax.block_until_ready(y)

    y_ref = _reference(dist, means, betas, cutoff)
    assert y.shape == (B, E, n_rbf)
    assert jnp.allclose(y, y_ref, atol=1e-5, rtol=1e-5), (
        float(jnp.max(jnp.abs(y - y_ref))))

    print("KERNEL_OK")
</pallas_src>

<mosaic_0001>
module attributes {stable_mosaic.version = 11 : i64} {
  func.func @_exp_normal_smearing_kernel(%arg0: i32, %arg1: memref<8x128xf32, #tpu.memory_space<vmem>>, %arg2: memref<1x50xf32, #tpu.memory_space<vmem>>, %arg3: memref<1x50xf32, #tpu.memory_space<vmem>>, %arg4: memref<8x128x50xf32, #tpu.memory_space<vmem>>) attributes {dimension_semantics = [#tpu.dimension_semantics<parallel>], iteration_bounds = array<i64: 2>, scalar_prefetch = 0 : i64, scratch_operands = 0 : i64, tpu.core_type = #tpu.core_type<tc>, window_params = [{transform_indices = @transform_0, window_bounds = array<i64: 8, 128>}, {pipeline_mode = #tpu.pipeline_mode<synchronous>, transform_indices = @transform_1, window_bounds = array<i64: 1, 50>}, {pipeline_mode = #tpu.pipeline_mode<synchronous>, transform_indices = @transform_2, window_bounds = array<i64: 1, 50>}, {transform_indices = @transform_3, window_bounds = array<i64: 8, 128, 50>}]} {
    %c0 = arith.constant 0 : index
    %c0_0 = arith.constant 0 : index
    %0 = vector.load %arg1[%c0, %c0_0] : memref<8x128xf32, #tpu.memory_space<vmem>>, vector<8x128xf32>
    %c0_1 = arith.constant 0 : index
    %c0_2 = arith.constant 0 : index
    %1 = vector.load %arg2[%c0_1, %c0_2] : memref<1x50xf32, #tpu.memory_space<vmem>>, vector<1x50xf32>
    %c0_3 = arith.constant 0 : index
    %c0_4 = arith.constant 0 : index
    %2 = vector.load %arg3[%c0_3, %c0_4] : memref<1x50xf32, #tpu.memory_space<vmem>>, vector<1x50xf32>
    %cst = arith.constant 0.628318548 : f32
    %3 = vector.broadcast %cst : f32 to vector<8x128xf32>
    %4 = arith.mulf %0, %3 : vector<8x128xf32>
    %5 = math.cos %4 : vector<8x128xf32>
    %cst_5 = arith.constant 1.000000e+00 : f32
    %6 = vector.broadcast %cst_5 : f32 to vector<8x128xf32>
    %7 = arith.addf %5, %6 : vector<8x128xf32>
    %cst_6 = arith.constant 5.000000e-01 : f32
    %8 = vector.broadcast %cst_6 : f32 to vector<8x128xf32>
    %9 = arith.mulf %8, %7 : vector<8x128xf32>
    %cst_7 = arith.constant 5.000000e+00 : f32
    %10 = vector.broadcast %cst_7 : f32 to vector<8x128xf32>
    %11 = arith.cmpf olt, %0, %10 : vector<8x128xf32>
    %cst_8 = arith.constant 0.000000e+00 : f32
    %12 = vector.broadcast %cst_8 : f32 to vector<8x128xf32>
    %13 = arith.select %11, %9, %12 : vector<8x128xi1>, vector<8x128xf32>
    %cst_9 = arith.constant -1.000000e+00 : f32
    %14 = vector.broadcast %cst_9 : f32 to vector<8x128xf32>
    %15 = arith.mulf %14, %0 : vector<8x128xf32>
    %16 = math.exp %15 : vector<8x128xf32>
    %17 = vector.shape_cast %16 : vector<8x128xf32> to vector<8x128x1xf32>
    %18 = vector.shape_cast %1 : vector<1x50xf32> to vector<1x1x50xf32>
    %19 = vector.broadcast %17 : vector<8x128x1xf32> to vector<8x128x50xf32>
    %20 = vector.broadcast %18 : vector<1x1x50xf32> to vector<8x128x50xf32>
    %21 = arith.subf %19, %20 : vector<8x128x50xf32>
    %cst_10 = arith.constant 0.000000e+00 : f32
    %22 = vector.broadcast %cst_10 : f32 to vector<1x50xf32>
    %23 = arith.subf %22, %2 : vector<1x50xf32>
    %24 = arith.mulf %21, %21 : vector<8x128x50xf32>
    %25 = vector.shape_cast %23 : vector<1x50xf32> to vector<1x1x50xf32>
    %26 = vector.broadcast %25 : vector<1x1x50xf32> to vector<8x128x50xf32>
    %27 = arith.mulf %26, %24 : vector<8x128x50xf32>
    %28 = math.exp %27 : vector<8x128x50xf32>
    %29 = vector.shape_cast %13 : vector<8x128xf32> to vector<8x128x1xf32>
    %30 = vector.broadcast %29 : vector<8x128x1xf32> to vector<8x128x50xf32>
    %31 = arith.mulf %30, %28 : vector<8x128x50xf32>
    %c0_11 = arith.constant 0 : index
    %c0_12 = arith.constant 0 : index
    %c0_13 = arith.constant 0 : index
    %32 = vector.load %arg4[%c0_11, %c0_12, %c0_13] : memref<8x128x50xf32, #tpu.memory_space<vmem>>, vector<8x128x50xf32>
    tpu.vector_store %arg4[%c0_11, %c0_12, %c0_13], %31 {strides = array<i32>} : memref<8x128x50xf32, #tpu.memory_space<vmem>>, vector<8x128x50xf32>,
    return
  }
  func.func @transform_0(%arg0: i32) -> (i32, i32) {
    %c0_i32 = arith.constant 0 : i32
    %c0_i32_0 = arith.constant 0 : i32
    return %arg0, %c0_i32 : i32, i32
  }
  func.func @transform_1(%arg0: i32) -> (i32, i32) {
    %c0_i32 = arith.constant 0 : i32
    %c0_i32_0 = arith.constant 0 : i32
    %c0_i32_1 = arith.constant 0 : i32
    return %c0_i32, %c0_i32_0 : i32, i32
  }
  func.func @transform_2(%arg0: i32) -> (i32, i32) {
    %c0_i32 = arith.constant 0 : i32
    %c0_i32_0 = arith.constant 0 : i32
    %c0_i32_1 = arith.constant 0 : i32
    return %c0_i32, %c0_i32_0 : i32, i32
  }
  func.func @transform_3(%arg0: i32) -> (i32, i32, i32) {
    %c0_i32 = arith.constant 0 : i32
    %c0_i32_0 = arith.constant 0 : i32
    %c0_i32_1 = arith.constant 0 : i32
    return %arg0, %c0_i32, %c0_i32_0 : i32, i32, i32
  }
}

</mosaic_0001>

<bundles_post_ra>
// kernel: tpu_custom_call.1
= control target key start
LH: loop header
LB: loop body
LE: loop exit
PB: predicated region body
PF: predicated region fallthrough
CT: control target
= control target key end

     0   :  { %8 = vsyncpa [#allocation3], 0  ;;  %s5239_s0 = inlined_call_operand.hbm [shape: f32[16,128], index: 0, kind: input, shape index: {}]   ;;  %s5240_s1 = inlined_call_operand.hbm [shape: f32[1,50], index: 1, kind: input, shape index: {}]   ;;  %s5241_s2 = inlined_call_operand.vmem [shape: f32[1,50], index: 2, kind: input, shape index: {}]   ;;  %s5242_s3 = inlined_call_operand.vmem [shape: f32[16,128,50], index: 3, kind: output, shape index: {}]  }
   0x1   :  { %10 = vsyncpa [#allocation3 + $0x1], 0 }
   0x2   :  { %11 = vsyncpa [#allocation5], 0  ;;  %s3597_s12 = smov 0   ;;  %s3599_s13 = smov 0  }
   0x3   :  { %s3601_s14 = smov 0   ;;  %s3603_s15 = smov 0  }
   0x4 LB: > { %s2908_s16 = sadd.s32 4294967295, %s3567_s15   ;;  %p37_p0 = scmp.ne.s32.totalorder %s3559_s13, %s3555_s12  ;;  %s3567_s15 = sphi %s3603_s15, %s5404_s15   ;;  %s3563_s14 = sphi %s3601_s14, %s5403_s14   ;;  %s3559_s13 = sphi %s3599_s13, %s5402_s13   ;;  %s3555_s12 = sphi %s3597_s12, %s5401_s12  }
   0x5   : > { %p3619_p1 = scmp.eq.s32.totalorder %s2908_s16, 0  ;;  %p2910_p2 = scmp.ge.s32.totalorder %s3567_s15, 1 }
   0x6   : > { %p116_p3 = scmp.lt.s32.totalorder %s3567_s15, 3  ;;  %s128_s21 = sshll.u32 %s5240_s1, 4  ;;  %s129_s21 = int_to_ptr.hbm [resolvable:$true] %s128_s21 }
   0x7   : > { %p3627_p4 = por %p3619_p1, %p37_p0  ;;  %s3569_s23 = smov [#allocation4]  }
   0x8   : > { %p3634_p5 = pnand %p2910_p2, %p116_p3  ;;  %s130_s24 = sshll.u32 %s3569_s23, 4  ;;  %s131_s24 = int_to_ptr.vmem [resolvable:$true] %s130_s24 }
   0x9   : > { %s3643_s25 = sadd.s32 1, %s3567_s15   ;;  %s24_s26 = sadd.s32 1, %s3563_s14 }
   0xa   : > { %p2933_p6 = pneg %p3634_p5  ;;  %s21_s27 = ssub.s32 %s3567_s15, %s3643_s25 }
   0xb   : > { %p22_p8 = scmp.eq.s32.totalorder %s21_s27, 0  ;;  %p31_p9 = scmp.ne.s32.totalorder %s3563_s14, %s3559_s13 }
   0xc   : > { %p2934_p7 = pnand %p2933_p6, %p3619_p1  ;;  %p32_p10 = scmp.eq.s32.totalorder %s3567_s15, 0 }
   0xd   : > { %p2942_p11 = scmp.lt.s32.totalorder %s3567_s15, 2  ;;  %s144_s29 = sand.u32 1, %s3563_s14  }
   0xe   : > { %2936 = dma.hbm_to_vmem [thread:$0]  (!%p2934_p7), %s129_s21, 16, %s131_s24, [#allocation5]  }
   0xf   : > { %s3653_s28 = scalar_select %p22_p8, %s3563_s14, %s24_s26  }
  0x10   : > { %p33_p12 = por %p32_p10, %p31_p9  ;;  %s2913_s30 = sshll.u32 %s144_s29, 3 }
  0x11   : > { %s2914_s4 = sshll.u32 %s3567_s15, 3  ;;  %s148_s8 = scalar_lea.vmem [#allocation2], %s2913_s30 }
  0x12   : > { %s152_s7 = scalar_lea.hbm %s5239_s0, %s2914_s4  ;;  %s156_s9 = sshll.u32 %s148_s8, 4  ;;  %s157_s9 = int_to_ptr.vmem [resolvable:$true] %s156_s9 }
  0x13   : > { %s154_s10 = sshll.u32 %s152_s7, 4  ;;  %p3660_p13 = pnand %p2942_p11, %p33_p12  ;;  %s155_s10 = int_to_ptr.hbm [resolvable:$true] %s154_s10 }
  0x14   : > { %s145_s12 = scalar_lea.sflag [#allocation3], %s144_s29  ;;  %s3499_s19 = sshra.s32 %s155_s10, 4  ;;  %s3500_s19 = int_to_ptr.hbm [resolvable:$true] %s3499_s19 }
  0x15   : > { %s3501_s20 = scalar_lea.hbm %s3500_s19, 8  ;;  %p3503_p2 = pneg %p3660_p13 }
  0x16   : > { %p3502_p0 = scmp.ne.s32.totalorder %s3500_s19, %s3501_s20  ;;  %s3506_s24 = scalar_lea.hbm %s5239_s0, 16 }
  0x17   : > { %p3507_p7 = scmp.lt.s32.totalorder %s3500_s19, %s5239_s0  ;;  %p3508_p8 = scmp.lt.s32.totalorder %s3506_s24, %s3501_s20 }
  0x18   : > { %p3504_p3 = pnand %p3503_p2, %p3502_p0 }
  0x19   : > { %p3509_p9 = por %p3508_p8, %p3507_p7 }
  0x1a   : > { %p3505_p6 = pneg %p3504_p3 }
  0x1c   : > { %p3510_p10 = pnand %p3509_p9, %p3505_p6 }
  0x1e   : > { %3513 = shalt.err (!%p3510_p10)
}
  0x1f   : > { %2940 = dma.hbm_to_vmem [thread:$0]  (!%p3660_p13), %s155_s10, 128, %s157_s9, %s145_s12  }
  0x20   : > { %165 = sbr.rel (%p3634_p5) target bundleno = 1791 (0x6ff), region = 32 }
  0x25   : > { %s167_s29 = sand.u32 1, %s3559_s13  }
  0x26   : > { %s2916_s30 = sshll.u32 %s167_s29, 3  ;;  %s168_s4 = scalar_lea.sflag [#allocation3], %s167_s29 }
  0x27   : > { %s171_s5 = scalar_lea.vmem [#allocation2], %s2916_s30 }
  0x28   : > { %3546 = dma.done.wait (%p3627_p4), %s168_s4, 128  }
  0x29   : > { %3548 = vsyncadd (%p3627_p4), %s168_s4, 4294967168 }
  0x2a   : > { %3550 = dma.done.wait (%p3619_p1), [#allocation5], 16  }
  0x2b   : > { %3552 = vsyncadd (%p3619_p1), [#allocation5], 4294967280  ;;  %v374_v0 = vlaneseq  ;;  %v3695_v4 = vld [vmem:[%s171_s5] sm:$0xff]  ;;  %v3570_v23 = vmov 683565275   ;;  %s2918_s22 = sshll.u32 %s2908_s16, 3 }
  0x2c   : > { %v370_v5 = vmul.f32 -1.0, %v3695_v4  ;;  %v3699_v6 = vmul.f32 0.62831855, %v3695_v4  ;;  %v3571_v25 = vmov 2475754826   ;;  %p202_p1 = scmp.lt.s32.totalorder %s2918_s22, 15 }
  0x2d   : > { %v3685_v1 = vshrl.u32 %v374_v0, 7  ;;  %v3572_v27 = vmov 2131351028   ;;  %v3573_v30 = vmov 2102212464  }
  0x2e   : > { %v371_v7 = vmul.f32 1.442695, %v370_v5  ;;  %v215_v8 = vand.u32 2139095040, %v3699_v6  ;;  %v212_v11 = vand.u32 2147483647, %v3699_v6  ;;  %vm214_vm12 = vcmp.lt.s32.totalorder %v3699_v6, 0 }
  0x2f   : > { %v3688_v2 = vadd.s32 32, %v3685_v1  ;;  %v3691_v3 = vadd.s32 16, %v3685_v1  ;;  %v3703_v10 = vadd.s32 96, %v3685_v1  ;;  %v3722_v29 = vadd.s32 40, %v3685_v1  ;;  %s5406_s22 = smov (!%p202_p1, %s2918_s22), 15 }
  0x30   : > { %3208 = vpow2.f32 %v371_v7  ;;  %v216_v9 = vshrl.u32 %v215_v8, 23  ;;  %v219_v14 = vand.u32 8388607, %v212_v11  ;;  %v3574_v32 = vmov 920167782   ;;  %s2926_s15 = sshll.u32 %s5406_s22, 7 }
  0x31   : > { %2986 = vset.pattern.permute.xlu2 %v3688_v2  ;;  %2984 = vset.pattern.permute.xlu1 %v3691_v3  ;;  %v3726_v34 = vadd.s32 24, %v3685_v1  ;;  %v3575_v39 = vmov 1326507024   ;;  %v3741_v49 = vadd.s32 56, %v3685_v1  ;;  %vm3802_vm13 = vcmp.le.f32.partialorder %v212_v11, 0.7853982  ;;  %s4063_s7 = scalar_lea.vmem %s5242_s3, %s2926_s15 }
  0x32   : > { %v2921_v12 = vadd.s32 4294967169, %v216_v9  ;;  %3006 = vset.pattern.permute.xlu0 %v3703_v10  ;;  %v220_v20 = vor.u32 8388608, %v219_v14  ;;  %v3815_v11 = vadd.s32 112, %v3685_v1 }
  0x34   : > { %v222_v13 = vadd.s32 1, %v2921_v12  ;;  %v3729_v41 = vshll.u32 %v220_v20, 8 }
  0x36   : > { %v3709_v15 = vpop.eup %3208  ;;  %vm223_vm0 = vcmp.gt.s32.totalorder %v222_v13, 0  ;;  %v261_v54 = vand.u32 65535, %v3729_v41  ;;  %v262_v55 = vshrl.u32 %v3729_v41, 16 }
  0x37   : > { %v3712_v16 = vperm.slane %v3709_v15, 0  ;;  %v224_v17 = vsel %vm223_vm0, %v222_v13, 0  ;;  %v3717_v19 = vperm.slane %v3709_v15, 1 }
  0x38   : > { %v226_v18 = vand.u32 31, %v224_v17  ;;  %v3719_v21 = vshrl.u32 %v224_v17, 5 }
  0x39   : > { %402 = vperm.xlu2 %2986, %v3712_v16   ;;  %390 = vperm.xlu1 %2984, %v3712_v16  }
  0x3a   : > { %v227_v22 = vsub.s32 32, %v226_v18  ;;  %v229_v24 = vshll.u32 %v3570_v23, %v226_v18  ;;  %v232_v26 = vshll.u32 %v3571_v25, %v226_v18  ;;  %v235_v28 = vshll.u32 %v3572_v27, %v226_v18  ;;  %547 = vperm.xlu0 %3006, %v3717_v19  }
  0x3b   : > { %v238_v31 = vshll.u32 %v3573_v30, %v226_v18  ;;  %v241_v33 = vshll.u32 %v3574_v32, %v226_v18  ;;  %vm244_vm1 = vcmp.lt.s32.totalorder %v3719_v21, 1  ;;  %vm247_vm2 = vcmp.lt.s32.totalorder %v3719_v21, 4 }
  0x3c   : > { %v230_v35 = vshrl.u32 %v3571_v25, %v227_v22  ;;  %v233_v36 = vshrl.u32 %v3572_v27, %v227_v22  ;;  %v236_v37 = vshrl.u32 %v3573_v30, %v227_v22  ;;  %v239_v38 = vshrl.u32 %v3574_v32, %v227_v22 }
  0x3d   : > { %v242_v40 = vshrl.u32 %v3575_v39, %v227_v22  ;;  %vm246_vm3 = vcmp.lt.s32.totalorder %v3719_v21, 3  ;;  %vm245_vm4 = vcmp.lt.s32.totalorder %v3719_v21, 2  ;;  %v228_v62 = vshrl.u32 %v3570_v23, %v227_v22 }
  0x3e   : > { %v231_v42 = vor.u32 %v230_v35, %v229_v24  ;;  %v234_v43 = vor.u32 %v233_v36, %v232_v26  ;;  %v237_v44 = vor.u32 %v236_v37, %v235_v28  ;;  %v240_v45 = vor.u32 %v239_v38, %v238_v31 }
  0x3f   : > { %v243_v46 = vor.u32 %v242_v40, %v241_v33  ;;  %v3761_v24 = vadd.s32 48, %v3685_v1  ;;  %v3576_v26 = vmov 0  }
  0x40   : > { %v252_v47 = vsel %vm244_vm1, %v231_v42, %v234_v43  ;;  %v256_v48 = vsel %vm244_vm1, %v234_v43, %v237_v44  ;;  %v253_v50 = vsel %vm247_vm2, %v240_v45, 920167782  ;;  %v248_v22 = vsel %vm244_vm1, %v228_v62, %v231_v42 }
  0x41   : > { %2987 = vset.pattern.permute.xlu2 %v3722_v29  ;;  %2985 = vset.pattern.permute.xlu1 %v3726_v34  ;;  %v257_v51 = vsel %vm247_vm2, %v243_v46, 1326507024  ;;  %v254_v52 = vsel %vm246_vm3, %v237_v44, %v253_v50  ;;  %v249_v25 = vsel %vm247_vm2, %v237_v44, 2102212464  ;;  %vm355_vm1 = vweird.f32 %v3699_v6 }
  0x42   : > { %v258_v53 = vsel %vm246_vm3, %v240_v45, %v257_v51  ;;  %3007 = vset.pattern.permute.xlu0 %v3741_v49  ;;  %v255_v56 = vsel %vm245_vm4, %v252_v47, %v254_v52  ;;  %v250_v37 = vsel %vm246_vm3, %v234_v43, %v249_v25  ;;  %v3773_v47 = vperm.slane %v3709_v15, 6 }
  0x43   : > { %v259_v57 = vsel %vm245_vm4, %v256_v48, %v258_v53  ;;  %v285_v60 = vand.u32 65535, %v255_v56  ;;  %v286_v61 = vshrl.u32 %v255_v56, 16  ;;  %v251_v48 = vsel %vm245_vm4, %v248_v22, %v250_v37 }
  0x44   : > { %v263_v58 = vand.u32 65535, %v259_v57  ;;  %v264_v59 = vshrl.u32 %v259_v57, 16  ;;  %v305_v52 = vmul.u32 %v3729_v41, %v251_v48  ;;  %v3783_v57 = vadd.s32 80, %v3685_v1 }
  0x45   : > { %v287_v7 = vmul.u32 %v285_v60, %v261_v54  ;;  %v288_v8 = vmul.u32 %v286_v61, %v261_v54  ;;  %v289_v9 = vmul.u32 %v285_v60, %v262_v55  ;;  %v290_v17 = vmul.u32 %v286_v61, %v262_v55 }
  0x46   : > { %v265_v63 = vmul.u32 %v263_v58, %v261_v54  ;;  %v266_v0 = vmul.u32 %v264_v59, %v261_v54  ;;  %v267_v5 = vmul.u32 %v263_v58, %v262_v55  ;;  %v268_v12 = vmul.u32 %v264_v59, %v262_v55 }
  0x47   : > { %v291_v18 = vshll.u32 %v288_v8, 16  ;;  %v293_v20 = vshll.u32 %v289_v9, 16  ;;  %v292_v35 = vshrl.u32 %v288_v8, 16  ;;  %v294_v42 = vshrl.u32 %v289_v9, 16 }
  0x48   : > { %v269_v13 = vshll.u32 %v266_v0, 16  ;;  %v271_v14 = vshll.u32 %v267_v5, 16  ;;  %v270_v30 = vshrl.u32 %v266_v0, 16  ;;  %v272_v38 = vshrl.u32 %v267_v5, 16 }
  0x49   : > { %408 = vperm.xlu2 %2987, %v3712_v16   ;;  %396 = vperm.xlu1 %2985, %v3712_v16   ;;  %vm295_vm6 = vc.u32 %v287_v7, %v291_v18  ;;  %v297_v28 = vadd.s32 %v291_v18, %v287_v7  ;;  %v3786_v58 = vadd.s32 72, %v3685_v1  ;;  %vm368_vm2 = vcmp.lt.f32.partialorder %v3695_v4, 5.0 }
  0x4a   : > { %vm273_vm5 = vc.u32 %v265_v63, %v269_v13  ;;  %v275_v23 = vadd.s32 %v269_v13, %v265_v63  ;;  %517 = vperm.xlu0 %3007, %v3717_v19   ;;  %v296_v32 = vsel %vm295_vm6, 1, %v3576_v26  ;;  %v3851_v4 = vadd.s32 64, %v3685_v1 }
  0x4b   : > { %v274_v27 = vsel %vm273_vm5, 1, %v3576_v26  ;;  %v298_v36 = vadd.s32 %v296_v32, %v290_v17  ;;  %vm299_vm8 = vc.u32 %v297_v28, %v293_v20  ;;  %v301_v46 = vadd.s32 %v297_v28, %v293_v20 }
  0x4c   : > { %v276_v31 = vadd.s32 %v274_v27, %v268_v12  ;;  %vm277_vm7 = vc.u32 %v275_v23, %v271_v14  ;;  %v300_v40 = vsel %vm299_vm8, 1, %v3576_v26  ;;  %v3795_v12 = vadd.s32 88, %v3685_v1 }
  0x4d   : > { %v278_v33 = vsel %vm277_vm7, 1, %v3576_v26  ;;  %v302_v44 = vadd.s32 %v300_v40, %v298_v36  ;;  %vm2700_vm3 = vcmask 408576  }
  0x4e   : > { %v280_v39 = vadd.s32 %v278_v33, %v276_v31  ;;  %v3812_v33 = vadd.s32 120, %v3685_v1 }
  0x4f   : > { %v303_v50 = vadd.s32 %v302_v44, %v292_v35 }
  0x50   : > { %v281_v45 = vadd.s32 %v280_v39, %v270_v30 }
  0x51   : > { %2989 = vset.pattern.permute.xlu2 %v3741_v49  ;;  %2988 = vset.pattern.permute.xlu1 %v3761_v24  ;;  %v304_v43 = vadd.s32 %v303_v50, %v294_v42 }
  0x52   : > { %v282_v51 = vadd.s32 %v281_v45, %v272_v38  ;;  %1002 = vperm.xlu0 %3007, %v3773_v47  }
  0x53   : > { %v308_v53 = vadd.s32 1, %v304_v43 }
  0x54   : > { %vm307_vm9 = vc.u32 %v282_v51, %v301_v46  ;;  %v306_v0 = vadd.s32 %v301_v46, %v282_v51 }
  0x55   : > { %v309_v54 = vsel %vm307_vm9, %v308_v53, %v304_v43 }
  0x56   : > { %v310_v55 = vadd.s32 %v309_v54, %v305_v52 }
  0x58   : > { %v311_v56 = vadd.s32 536870912, %v310_v55 }
  0x59   : > { %420 = vperm.xlu2 %2989, %v3712_v16   ;;  %414 = vperm.xlu1 %2988, %v3712_v16  }
  0x5a   : > { %3068 = vset.pattern.permute.xlu0 %v3691_v3  ;;  %v312_v21 = vshrl.u32 %v311_v56, 30 }
  0x5c   : > { %v313_v59 = vshll.u32 %v312_v21, 30  ;;  %v336_v30 = vsub.s32 4, %v312_v21 }
  0x5e   : > { %v314_v41 = vsub.s32 %v310_v55, %v313_v59  ;;  %v337_v37 = vsel %vm214_vm12, %v336_v30, %v312_v21  ;;  %v3825_v21 = vadd.s32 8, %v3685_v1 }
  0x5f   : > { %v339_v40 = vsel %vm3802_vm13, 0, %v337_v37 }
  0x60   : > { %vm315_vm10 = vcmp.lt.s32.totalorder %v314_v41, 0  ;;  %v316_v60 = vsub.s32 0, %v314_v41  ;;  %v356_v48 = vand.u32 3, %v339_v40 }
  0x61   : > { %2991 = vset.pattern.permute.xlu2 %v3783_v57  ;;  %2990 = vset.pattern.permute.xlu1 %v3786_v58 }
  0x62   : > { %487 = vperm.xlu0 %3068, %v3717_v19   ;;  %v317_v61 = vsel %vm315_vm10, %v316_v60, %v314_v41  ;;  %vm361_vm14 = vcmp.eq.s32.totalorder %v356_v48, 2  ;;  %vm358_vm15 = vcmp.eq.s32.totalorder %v356_v48, 0  ;;  %vm357_vm0 = vcmp.lt.s32.totalorder %v356_v48, 2 }
  0x63   : > { %v318_v62 = vclz %v317_v61 }
  0x65   : > { %v2922_v63 = vadd.s32 4294967294, %v318_v62 }
  0x67   : > { %vm2923_vm11 = vcmp.lt.s32.totalorder %v2922_v63, 0 }
  0x68   : > { %v321_v5 = vsel %vm2923_vm11, 0, %v2922_v63 }
  0x69   : > { %438 = vperm.xlu2 %2991, %v3712_v16   ;;  %432 = vperm.xlu1 %2990, %v3712_v16   ;;  %v322_v7 = vsub.s32 32, %v321_v5  ;;  %v323_v8 = vshll.u32 %v314_v41, %v321_v5  ;;  %v326_v9 = vsub.s32 4294967266, %v321_v5  ;;  %v3869_v5 = vperm.slane %v3709_v15, 7 }
  0x6a   : > { %972 = vperm.xlu0 %3068, %v3773_v47  }
  0x6b   : > { %v324_v13 = vshrl.u32 %v306_v0, %v322_v7  ;;  %v327_v14 = vadd.s32 127, %v326_v9  ;;  %v3872_v7 = vadd.s32 104, %v3685_v1 }
  0x6d   : > { %v325_v17 = vor.u32 %v324_v13, %v323_v8  ;;  %v328_v18 = vshll.u32 %v327_v14, 23 }
  0x6f   : > { %v329_v20 = vor.u32 4788187, %v328_v18  ;;  %v332_v22 = vcvt.s32.f32 %v325_v17 }
  0x71   : > { %2993 = vset.pattern.permute.xlu2 %v3703_v10  ;;  %2992 = vset.pattern.permute.xlu1 %v3795_v12  ;;  %v330_v23 = vand.u32 2147483647, %v329_v20 }
  0x73   : > { %v333_v25 = vmul.f32 %v332_v22, %v330_v23 }
  0x75   : > { %v334_v27 = vxor.u32 2147483648, %v333_v25 }
  0x77   : > { %v335_v28 = vsel %vm214_vm12, %v334_v27, %v333_v25  ;;  %v3936_v27 = vperm.slane %v3709_v15, 3 }
  0x78   : > { %v338_v31 = vsel %vm3802_vm13, %v3699_v6, %v335_v28  ;;  %v3863_v6 = vperm.slane %v3709_v15, 2 }
  0x79   : > { %450 = vperm.xlu2 %2993, %v3712_v16   ;;  %444 = vperm.xlu1 %2992, %v3712_v16   ;;  %v340_v32 = vmul.f32 %v338_v31, %v338_v31 }
  0x7b   : > { %v341_v35 = vmul.f32 -0.001358992, %v340_v32  ;;  %v348_v36 = vmul.f32 -0.00019511016, %v340_v32 }
  0x7d   : > { %v342_v38 = vadd.f32 0.041655596, %v341_v35  ;;  %v349_v39 = vadd.f32 0.008332121, %v348_v36 }
  0x7f   : > { %v343_v42 = vmul.f32 %v342_v38, %v340_v32  ;;  %v350_v44 = vmul.f32 %v349_v39, %v340_v32 }
  0x81   : > { %2995 = vset.pattern.permute.xlu2 %v3812_v33  ;;  %2994 = vset.pattern.permute.xlu1 %v3815_v11  ;;  %v344_v45 = vadd.f32 -0.4999988, %v343_v42  ;;  %v351_v46 = vadd.f32 -0.16666654, %v350_v44 }
  0x83   : > { %v345_v50 = vmul.f32 %v344_v45, %v340_v32  ;;  %v352_v51 = vmul.f32 %v351_v46, %v340_v32 }
  0x85   : > { %v346_v43 = vadd.f32 1.0, %v345_v50  ;;  %v353_v52 = vadd.f32 1.0, %v352_v51 }
  0x87   : > { %v354_v53 = vmul.f32 %v353_v52, %v338_v31  ;;  %v362_v54 = vxor.u32 2147483648, %v346_v43 }
  0x89   : > { %468 = vperm.xlu2 %2995, %v3712_v16   ;;  %462 = vperm.xlu1 %2994, %v3712_v16   ;;  %v359_v55 = vxor.u32 2147483648, %v354_v53  ;;  %v363_v56 = vsel %vm361_vm14, %v362_v54, %v354_v53 }
  0x8b   : > { %v360_v59 = vsel %vm358_vm15, %v346_v43, %v359_v55 }
  0x8c   : > { %v364_v41 = vsel %vm357_vm0, %v360_v59, %v363_v56 }
  0x8d   : > { %v365_v60 = vsel %vm355_vm1, nan, %v364_v41 }
  0x8e   : > { %v366_v61 = vadd.f32 1.0, %v365_v60 }
  0x90   : > { %v367_v62 = vmul.f32 0.5, %v366_v61  ;;  %v210_v61 = vld [vmem:[%s5241_s2] sm:$0x1] }
  0x91   : > { %2997 = vset.pattern.permute.xlu2 %v3825_v21  ;;  %2996 = vset.pattern.permute.xlu1 %v3685_v1 }
  0x92   : > { %v3830_v63 = vsel %vm368_vm2, %v367_v62, 0.0  ;;  %v4035_v62 = vld [vmem:[#allocation4] ss:$0 sm:$0xff] }
  0x93   : > { %v3833_v0 = vperm.slane %v3830_v63, 3  ;;  %v3878_v8 = vperm.slane %v3830_v63, 4  ;;  %v3921_v22 = vpop.permute.xlu2 %402  ;;  %v3946_v31 = vperm.slane %v3830_v63, 0  ;;  %v3956_v36 = vperm.slane %v3830_v63, 5 }
  0x95   : > { %5259 = vst [vmem:[#allocation8_spill] sm:$0xff] %v3833_v0  ;;  %2104 = vperm.xlu0 %3068, %v3833_v0  }
  0x96   : > { %5260 = vst [vmem:[#allocation9_spill] sm:$0xff] %v3878_v8 }
  0x97   : > { %5265 = vst [vmem:[#allocation14_spill] sm:$0xff] %v3956_v36 }
  0x99   : > { %481 = vperm.xlu2 %2997, %v3717_v19   ;;  %475 = vperm.xlu1 %2996, %v3717_v19  }
  0x9d   : > { %3133 = vset.pattern.permute.xlu0 %v3741_v49 }
  0xa1   : > { %2999 = vset.pattern.permute.xlu2 %v3688_v2  ;;  %2998 = vset.pattern.permute.xlu1 %v3726_v34 }
  0xa3   : > { %v3928_v25 = vpop.permute.xlu2 %408 }
  0xa5   : > { %2134 = vperm.xlu0 %3133, %v3833_v0  }
  0xa9   : > { %499 = vperm.xlu2 %2999, %v3717_v19   ;;  %493 = vperm.xlu1 %2998, %v3717_v19  }
  0xac   : > { %v3887_v9 = vpop.permute.xlu0 %547 }
  0xad   : > { %3134 = vset.pattern.permute.xlu0 %v3703_v10  ;;  %5261 = vst [vmem:[#allocation10_spill] sm:$0xff] %v3887_v9 }
  0xb1   : > { %3001 = vset.pattern.permute.xlu2 %v3761_v24  ;;  %3000 = vset.pattern.permute.xlu1 %v3722_v29 }
  0xb3   : > { %v3933_v26 = vpop.permute.xlu2 %420 }
  0xb5   : > { %1032 = vperm.xlu0 %3134, %v3773_v47  }
  0xb9   : > { %511 = vperm.xlu2 %3001, %v3717_v19   ;;  %505 = vperm.xlu1 %3000, %v3717_v19  }
  0xbc   : > { %v3894_v13 = vpop.permute.xlu0 %517 }
  0xbd   : > { %2164 = vperm.xlu0 %3134, %v3833_v0  }
  0xc1   : > { %3003 = vset.pattern.permute.xlu2 %v3786_v58  ;;  %3002 = vset.pattern.permute.xlu1 %v3851_v4 }
  0xc3   : > { %v3943_v30 = vpop.permute.xlu2 %438 }
  0xc4   : > { %v3899_v14 = vpop.permute.xlu0 %1002 }
  0xc5   : > { %3139 = vset.pattern.permute.xlu0 %v3825_v21  ;;  %5262 = vst [vmem:[#allocation11_spill] sm:$0xff] %v3899_v14 }
  0xc9   : > { %529 = vperm.xlu2 %3003, %v3717_v19   ;;  %523 = vperm.xlu1 %3002, %v3717_v19  }
  0xcd   : > { %384 = vperm.xlu0 %3139, %v3712_v16  }
  0xd1   : > { %3005 = vset.pattern.permute.xlu2 %v3795_v12  ;;  %3004 = vset.pattern.permute.xlu1 %v3783_v57 }
  0xd3   : > { %v3953_v35 = vpop.permute.xlu2 %450 }
  0xd5   : > { %578 = vperm.xlu0 %3139, %v3863_v6  }
  0xd9   : > { %541 = vperm.xlu2 %3005, %v3717_v19   ;;  %535 = vperm.xlu1 %3004, %v3717_v19  }
  0xdd   : > { %1063 = vperm.xlu0 %3139, %v3869_v5  }
  0xe1   : > { %3009 = vset.pattern.permute.xlu2 %v3815_v11  ;;  %3008 = vset.pattern.permute.xlu1 %v3872_v7 }
  0xe3   : > { %v3963_v38 = vpop.permute.xlu2 %468 }
  0xe5   : > { %2195 = vperm.xlu0 %3139, %v3878_v8  }
  0xe9   : > { %559 = vperm.xlu2 %3009, %v3717_v19   ;;  %553 = vperm.xlu1 %3008, %v3717_v19  }
  0xed   : > { %3144 = vset.pattern.permute.xlu0 %v3761_v24 }
  0xf1   : > { %3011 = vset.pattern.permute.xlu2 %v3685_v1  ;;  %3010 = vset.pattern.permute.xlu1 %v3812_v33 }
  0xf3   : > { %v3970_v40 = vpop.permute.xlu2 %481 }
  0xf5   : > { %608 = vperm.xlu0 %3144, %v3863_v6  }
  0xf9   : > { %572 = vperm.xlu2 %3011, %v3863_v6   ;;  %565 = vperm.xlu1 %3010, %v3717_v19   ;;  %v3904_v19 = vpop.permute.xlu0 %487 }
  0xfd   : > { %1093 = vperm.xlu0 %3144, %v3869_v5  }
 0x101   : > { %3013 = vset.pattern.permute.xlu2 %v3726_v34  ;;  %3012 = vset.pattern.permute.xlu1 %v3691_v3  ;;  %v3909_v17 = vpop.permute.xlu0 %972 }
 0x102   : > { %5263 = vst [vmem:[#allocation12_spill] sm:$0xff] %v3909_v17 }
 0x103   : > { %v3975_v42 = vpop.permute.xlu2 %499 }
 0x105   : > { %2225 = vperm.xlu0 %3144, %v3878_v8  }
 0x109   : > { %590 = vperm.xlu2 %3013, %v3863_v6   ;;  %584 = vperm.xlu1 %3012, %v3863_v6   ;;  %v3914_v18 = vpop.permute.xlu0 %2104 }
 0x10d   : > { %3149 = vset.pattern.permute.xlu0 %v3795_v12 }
 0x111   : > { %3015 = vset.pattern.permute.xlu2 %v3722_v29  ;;  %3014 = vset.pattern.permute.xlu1 %v3688_v2 }
 0x113   : > { %v3982_v45 = vpop.permute.xlu2 %511 }
 0x115   : > { %638 = vperm.xlu0 %3149, %v3863_v6  }
 0x117   : > { %v3919_v20 = vpop.permute.xlu0 %2134 }
 0x119   : > { %602 = vperm.xlu2 %3015, %v3863_v6   ;;  %596 = vperm.xlu1 %3014, %v3863_v6  }
 0x11d   : > { %1123 = vperm.xlu0 %3149, %v3869_v5  }
 0x121   : > { %3017 = vset.pattern.permute.xlu2 %v3851_v4  ;;  %3016 = vset.pattern.permute.xlu1 %v3741_v49 }
 0x123   : > { %v3989_v48 = vpop.permute.xlu2 %529 }
 0x125   : > { %2255 = vperm.xlu0 %3149, %v3878_v8  }
 0x127   : > { %v3926_v23 = vpop.permute.xlu0 %1032 }
 0x128   : > { %5264 = vst [vmem:[#allocation13_spill] sm:$0xff] %v3926_v23 }
 0x129   : > { %620 = vperm.xlu2 %3017, %v3863_v6   ;;  %614 = vperm.xlu1 %3016, %v3863_v6  }
 0x12d   : > { %3154 = vset.pattern.permute.xlu0 %v3685_v1 }
 0x12f   : > { %v3938_v28 = vpop.permute.xlu0 %2164 }
 0x131   : > { %3019 = vset.pattern.permute.xlu2 %v3783_v57  ;;  %3018 = vset.pattern.permute.xlu1 %v3786_v58 }
 0x133   : > { %v3996_v51 = vpop.permute.xlu2 %541 }
 0x135   : > { %378 = vperm.xlu0 %3154, %v3712_v16  }
 0x139   : > { %632 = vperm.xlu2 %3019, %v3863_v6   ;;  %626 = vperm.xlu1 %3018, %v3863_v6  }
 0x13d   : > { %669 = vperm.xlu0 %3154, %v3936_v27  }
 0x13f   : > { %v3948_v32 = vpop.permute.xlu0 %384 }
 0x141   : > { %3021 = vset.pattern.permute.xlu2 %v3872_v7  ;;  %3020 = vset.pattern.permute.xlu1 %v3703_v10 }
 0x143   : > { %v4003_v52 = vpop.permute.xlu2 %559 }
 0x145   : > { %1801 = vperm.xlu0 %3154, %v3946_v31  }
 0x147   : > { %v3959_v37 = vpop.permute.xlu0 %578 }
 0x148   : > { %5266 = vst [vmem:[#allocation15_spill] sm:$0xff] %v3959_v37 }
 0x149   : > { %650 = vperm.xlu2 %3021, %v3863_v6   ;;  %644 = vperm.xlu1 %3020, %v3863_v6  }
 0x14d   : > { %2286 = vperm.xlu0 %3154, %v3956_v36  }
 0x14f   : > { %v3968_v39 = vpop.permute.xlu0 %1063 }
 0x150   : > { %5267 = vst [vmem:[#allocation16_spill] sm:$0xff] %v3968_v39 }
 0x151   : > { %3023 = vset.pattern.permute.xlu2 %v3812_v33  ;;  %3022 = vset.pattern.permute.xlu1 %v3815_v11 }
 0x153   : > { %v4008_v53 = vpop.permute.xlu2 %572 }
 0x155   : > { %3159 = vset.pattern.permute.xlu0 %v3722_v29 }
 0x157   : > { %v3977_v44 = vpop.permute.xlu0 %2195 }
 0x159   : > { %662 = vperm.xlu2 %3023, %v3863_v6   ;;  %656 = vperm.xlu1 %3022, %v3863_v6   ;;  %v1280_v6 = vsub.f32 0.0, %v210_v61 }
 0x15b   : > { %v4042_v23 = vperm.slane %v1280_v6, 0  ;;  %v4058_v6 = vperm.slane %v3709_v15, 4 }
 0x15d   : > { %699 = vperm.xlu0 %3159, %v3936_v27  }
 0x161   : > { %3025 = vset.pattern.permute.xlu2 %v3691_v3  ;;  %3024 = vset.pattern.permute.xlu1 %v3825_v21 }
 0x163   : > { %v4015_v55 = vpop.permute.xlu2 %590 }
 0x165   : > { %1831 = vperm.xlu0 %3159, %v3946_v31  }
 0x167   : > { %v3984_v46 = vpop.permute.xlu0 %608 }
 0x168   : > { %5268 = vst [vmem:[#allocation17_spill] sm:$0xff] %v3984_v46 }
 0x169   : > { %681 = vperm.xlu2 %3025, %v3936_v27   ;;  %675 = vperm.xlu1 %3024, %v3936_v27  }
 0x16d   : > { %2316 = vperm.xlu0 %3159, %v3956_v36  }
 0x16f   : > { %v3992_v50 = vpop.permute.xlu0 %1093 }
 0x170   : > { %5269 = vst [vmem:[#allocation18_spill] sm:$0xff] %v3992_v50 }
 0x171   : > { %3027 = vset.pattern.permute.xlu2 %v3688_v2  ;;  %3026 = vset.pattern.permute.xlu1 %v3726_v34 }
 0x173   : > { %v4022_v59 = vpop.permute.xlu2 %602 }
 0x174   : > { %5272 = vst [vmem:[#allocation21_spill] sm:$0xff] %v4022_v59 }
 0x175   : > { %3164 = vset.pattern.permute.xlu0 %v3783_v57 }
 0x177   : > { %v4001_v43 = vpop.permute.xlu0 %2225 }
 0x179   : > { %693 = vperm.xlu2 %3027, %v3936_v27   ;;  %687 = vperm.xlu1 %3026, %v3936_v27  }
 0x17d   : > { %729 = vperm.xlu0 %3164, %v3936_v27  }
 0x181   : > { %3029 = vset.pattern.permute.xlu2 %v3741_v49  ;;  %3028 = vset.pattern.permute.xlu1 %v3761_v24 }
 0x183   : > { %v4029_v60 = vpop.permute.xlu2 %620 }
 0x185   : > { %1861 = vperm.xlu0 %3164, %v3946_v31  }
 0x187   : > { %v4010_v54 = vpop.permute.xlu0 %638 }
 0x188   : > { %5270 = vst [vmem:[#allocation19_spill] sm:$0xff] %v4010_v54 }
 0x189   : > { %711 = vperm.xlu2 %3029, %v3936_v27   ;;  %705 = vperm.xlu1 %3028, %v3936_v27  }
 0x18d   : > { %2346 = vperm.xlu0 %3164, %v3956_v36  }
 0x18f   : > { %v4017_v56 = vpop.permute.xlu0 %1123 }
 0x190   : > { %5271 = vst [vmem:[#allocation20_spill] sm:$0xff] %v4017_v56 }
 0x191   : > { %3031 = vset.pattern.permute.xlu2 %v3786_v58  ;;  %3030 = vset.pattern.permute.xlu1 %v3851_v4 }
 0x193   : > { %v4040_v39 = vpop.permute.xlu2 %632 }
 0x194   : > { %5273 = vst [vmem:[#allocation22_spill] sm:$0xff] %v4040_v39  ;;  %v4086_v39 = vperm.slane %v3830_v63, 6 }
 0x195   : > { %3169 = vset.pattern.permute.xlu0 %v3812_v33 }
 0x196   : > { %5276 = vst [vmem:[#allocation25_spill] sm:$0xff] %v4086_v39 }
 0x197   : > { %v4025_v41 = vpop.permute.xlu0 %2255 }
 0x199   : > { %723 = vperm.xlu2 %3031, %v3936_v27   ;;  %717 = vperm.xlu1 %3030, %v3936_v27  }
 0x19d   : > { %759 = vperm.xlu0 %3169, %v3936_v27  }
 0x1a1   : > { %3033 = vset.pattern.permute.xlu2 %v3703_v10  ;;  %3032 = vset.pattern.permute.xlu1 %v3795_v12 }
 0x1a5   : > { %1891 = vperm.xlu0 %3169, %v3946_v31  }
 0x1a7   : > { %v379_v56 = vpop.permute.xlu0 %378 }
 0x1a8   : > { %v1152_v50 = vsub.f32 %v379_v56, %v4035_v62  ;;  %v4052_v56 = vpop.permute.xlu2 %650 }
 0x1a9   : > { %741 = vperm.xlu2 %3033, %v3936_v27   ;;  %735 = vperm.xlu1 %3032, %v3936_v27  }
 0x1aa   : > { %v1281_v14 = vmul.f32 %v1152_v50, %v1152_v50 }
 0x1ac   : > { %v1412_v17 = vmul.f32 %v4042_v23, %v1281_v14 }
 0x1ad   : > { %2376 = vperm.xlu0 %3169, %v3956_v36  }
 0x1ae   : > { %v1540_v8 = vmul.f32 1.442695, %v1412_v17 }
 0x1af   : > { %v4050_v61 = vpop.permute.xlu0 %669 }
 0x1b0   : > { %5274 = vst [vmem:[#allocation23_spill] sm:$0xff] %v4050_v61  ;;  %3210 = vpow2.f32 %v1540_v8 }
 0x1b1   : > { %3035 = vset.pattern.permute.xlu2 %v3815_v11  ;;  %3034 = vset.pattern.permute.xlu1 %v3872_v7 }
 0x1b3   : > { %v4065_v8 = vpop.permute.xlu2 %662 }
 0x1b4   : > { %5275 = vst [vmem:[#allocation24_spill] sm:$0xff] %v4065_v8 }
 0x1b5   : > { %3174 = vset.pattern.permute.xlu0 %v3688_v2 }
 0x1b6   : > { %v3211_v50 = vpop.eup %3210 }
 0x1b7   : > { %v1802_v14 = vpop.permute.xlu0 %1801 }
 0x1b8   : > { %v2572_v17 = vmul.f32 %v3211_v50, %v1802_v14  ;;  %v4075_v50 = vperm.slane %v3830_v63, 1 }
 0x1b9   : > { %753 = vperm.xlu2 %3035, %v3936_v27   ;;  %747 = vperm.xlu1 %3034, %v3936_v27   ;;  %v1157_v27 = vsub.f32 %v3928_v25, %v4035_v62 }
 0x1ba   : > { %2701 = vst.msk [vmem:[%s4063_s7] sm:$0xff] %vm2700_vm3, %v2572_v17 }
 0x1bb   : > { %v1286_v54 = vmul.f32 %v1157_v27, %v1157_v27 }
 0x1bd   : > { %790 = vperm.xlu0 %3174, %v4058_v6   ;;  %v1417_v46 = vmul.f32 %v4042_v23, %v1286_v54 }
 0x1bf   : > { %v4079_v17 = vpop.permute.xlu0 %2286 }
 0x1c1   : > { %3037 = vset.pattern.permute.xlu2 %v3825_v21  ;;  %3036 = vset.pattern.permute.xlu1 %v3685_v1 }
 0x1c3   : > { %v682_v14 = vpop.permute.xlu2 %681 }
 0x1c4   : > { %v1202_v36 = vsub.f32 %v682_v14, %v4035_v62 }
 0x1c5   : > { %1922 = vperm.xlu0 %3174, %v4075_v50  }
 0x1c6   : > { %v1331_v61 = vmul.f32 %v1202_v36, %v1202_v36  ;;  %v1550_v36 = vmul.f32 1.442695, %v1417_v46 }
 0x1c8   : > { %v1462_v8 = vmul.f32 %v4042_v23, %v1331_v61 }
 0x1c9   : > { %772 = vperm.xlu2 %3037, %v4058_v6   ;;  %766 = vperm.xlu1 %3036, %v4058_v6  }
 0x1ca   : > { %v1640_v25 = vmul.f32 1.442695, %v1462_v8 }
 0x1cc   : > { %3212 = vpow2.f32 %v1640_v25 }
 0x1cd   : > { %2407 = vperm.xlu0 %3174, %v4086_v39   ;;  %3214 = vpow2.f32 %v1550_v36 }
 0x1cf   : > { %v4089_v27 = vpop.permute.xlu0 %699 }
 0x1d0   : > { %5277 = vst [vmem:[#allocation26_spill] sm:$0xff] %v4089_v27 }
 0x1d1   : > { %3039 = vset.pattern.permute.xlu2 %v3726_v34  ;;  %3038 = vset.pattern.permute.xlu1 %v3691_v3 }
 0x1d2   : > { %v3213_v61 = vpop.eup %3212 }
 0x1d3   : > { %v2622_v8 = vmul.f32 %v3213_v61, %v3914_v18  ;;  %v3215_v54 = vpop.eup %3214  ;;  %v4099_v25 = vpop.permute.xlu2 %693  ;;  %v1162_v18 = vsub.f32 %v3943_v30, %v4035_v62 }
 0x1d4   : > { %5278 = vst [vmem:[#allocation27_spill] sm:$0xff] %v4099_v25 }
 0x1d5   : > { %2751 = vst.msk [vmem:[%s4063_s7 + $0x190] sm:$0xff] %vm2700_vm3, %v2622_v8  ;;  %3179 = vset.pattern.permute.xlu0 %v3786_v58  ;;  %v1291_v27 = vmul.f32 %v1162_v18, %v1162_v18 }
 0x1d7   : > { %v1832_v14 = vpop.permute.xlu0 %1831  ;;  %v1422_v25 = vmul.f32 %v4042_v23, %v1291_v27 }
 0x1d8   : > { %v2577_v46 = vmul.f32 %v3215_v54, %v1832_v14 }
 0x1d9   : > { %784 = vperm.xlu2 %3039, %v4058_v6   ;;  %778 = vperm.xlu1 %3038, %v4058_v6   ;;  %v1560_v30 = vmul.f32 1.442695, %v1422_v25 }
 0x1da   : > { %2706 = vst.msk [vmem:[%s4063_s7 + $0x28] sm:$0xff] %vm2700_vm3, %v2577_v46 }
 0x1dd   : > { %820 = vperm.xlu0 %3179, %v4058_v6  }
 0x1df   : > { %v4110_v54 = vpop.permute.xlu0 %2316 }
 0x1e1   : > { %3041 = vset.pattern.permute.xlu2 %v3761_v24  ;;  %3040 = vset.pattern.permute.xlu1 %v3722_v29 }
 0x1e3   : > { %v712_v36 = vpop.permute.xlu2 %711 }
 0x1e4   : > { %v1207_v61 = vsub.f32 %v712_v36, %v4035_v62 }
 0x1e5   : > { %1952 = vperm.xlu0 %3179, %v4075_v50  }
 0x1e6   : > { %v1336_v8 = vmul.f32 %v1207_v61, %v1207_v61 }
 0x1e8   : > { %v1467_v14 = vmul.f32 %v4042_v23, %v1336_v8 }
 0x1e9   : > { %802 = vperm.xlu2 %3041, %v4058_v6   ;;  %796 = vperm.xlu1 %3040, %v4058_v6  }
 0x1ea   : > { %v1650_v46 = vmul.f32 1.442695, %v1467_v14 }
 0x1ec   : > { %3216 = vpow2.f32 %v1650_v46 }
 0x1ed   : > { %2437 = vperm.xlu0 %3179, %v4086_v39   ;;  %3218 = vpow2.f32 %v1560_v30 }
 0x1ef   : > { %v4117_v18 = vpop.permute.xlu0 %729 }
 0x1f0   : > { %5279 = vst [vmem:[#allocation28_spill] sm:$0xff] %v4117_v18 }
 0x1f1   : > { %3043 = vset.pattern.permute.xlu2 %v3851_v4  ;;  %3042 = vset.pattern.permute.xlu1 %v3741_v49 }
 0x1f2   : > { %v3217_v36 = vpop.eup %3216 }
 0x1f3   : > { %v2627_v61 = vmul.f32 %v3217_v36, %v3919_v20  ;;  %v3219_v27 = vpop.eup %3218  ;;  %v4127_v14 = vpop.permute.xlu2 %723  ;;  %v1167_v20 = vsub.f32 %v3963_v38, %v4035_v62 }
 0x1f4   : > { %5280 = vst [vmem:[#allocation29_spill] sm:$0xff] %v4127_v14 }
 0x1f5   : > { %2756 = vst.msk [vmem:[%s4063_s7 + $0x1b8] sm:$0xff] %vm2700_vm3, %v2627_v61  ;;  %3184 = vset.pattern.permute.xlu0 %v3815_v11  ;;  %v1296_v61 = vmul.f32 %v1167_v20, %v1167_v20 }
 0x1f7   : > { %v1862_v8 = vpop.permute.xlu0 %1861  ;;  %v1427_v18 = vmul.f32 %v4042_v23, %v1296_v61 }
 0x1f8   : > { %v2582_v25 = vmul.f32 %v3219_v27, %v1862_v8 }
 0x1f9   : > { %814 = vperm.xlu2 %3043, %v4058_v6   ;;  %808 = vperm.xlu1 %3042, %v4058_v6   ;;  %v1570_v38 = vmul.f32 1.442695, %v1427_v18 }
 0x1fa   : > { %2711 = vst.msk [vmem:[%s4063_s7 + $0x50] sm:$0xff] %vm2700_vm3, %v2582_v25 }
 0x1fd   : > { %850 = vperm.xlu0 %3184, %v4058_v6  }
 0x1ff   : > { %v4138_v27 = vpop.permute.xlu0 %2346 }
 0x201   : > { %3045 = vset.pattern.permute.xlu2 %v3795_v12  ;;  %3044 = vset.pattern.permute.xlu1 %v3783_v57 }
 0x203   : > { %v742_v46 = vpop.permute.xlu2 %741 }
 0x204   : > { %v1212_v30 = vsub.f32 %v742_v46, %v4035_v62 }
 0x205   : > { %1982 = vperm.xlu0 %3184, %v4075_v50  }
 0x206   : > { %v1341_v36 = vmul.f32 %v1212_v30, %v1212_v30 }
 0x208   : > { %v1472_v8 = vmul.f32 %v4042_v23, %v1341_v36 }
 0x209   : > { %832 = vperm.xlu2 %3045, %v4058_v6   ;;  %826 = vperm.xlu1 %3044, %v4058_v6  }
 0x20a   : > { %v1660_v25 = vmul.f32 1.442695, %v1472_v8  ;;  %v4156_v8 = vperm.slane %v3709_v15, 5 }
 0x20c   : > { %3220 = vpow2.f32 %v1660_v25 }
 0x20d   : > { %2467 = vperm.xlu0 %3184, %v4086_v39   ;;  %3222 = vpow2.f32 %v1570_v38  ;;  %v4168_v38 = vperm.slane %v3830_v63, 2 }
 0x20f   : > { %v4145_v20 = vpop.permute.xlu0 %759 }
 0x210   : > { %5281 = vst [vmem:[#allocation30_spill] sm:$0xff] %v4145_v20  ;;  %v4179_v20 = vperm.slane %v3830_v63, 7 }
 0x211   : > { %3047 = vset.pattern.permute.xlu2 %v3872_v7  ;;  %3046 = vset.pattern.permute.xlu1 %v3703_v10 }
 0x212   : > { %v3221_v46 = vpop.eup %3220  ;;  %5283 = vst [vmem:[#allocation32_spill] sm:$0xff] %v4179_v20 }
 0x213   : > { %v2632_v30 = vmul.f32 %v3221_v46, %v3938_v28  ;;  %v3223_v36 = vpop.eup %3222  ;;  %v4158_v25 = vpop.permute.xlu2 %753  ;;  %v1172_v28 = vsub.f32 %v3975_v42, %v4035_v62 }
 0x214   : > { %5282 = vst [vmem:[#allocation31_spill] sm:$0xff] %v4158_v25 }
 0x215   : > { %2761 = vst.msk [vmem:[%s4063_s7 + $0x1e0] sm:$0xff] %vm2700_vm3, %v2632_v30  ;;  %3189 = vset.pattern.permute.xlu0 %v3726_v34 }
 0x217   : > { %v1892_v61 = vpop.permute.xlu0 %1891 }
 0x218   : > { %v2587_v18 = vmul.f32 %v3223_v36, %v1892_v61  ;;  %v1301_v36 = vmul.f32 %v1172_v28, %v1172_v28 }
 0x219   : > { %844 = vperm.xlu2 %3047, %v4058_v6   ;;  %838 = vperm.xlu1 %3046, %v4058_v6  }
 0x21a   : > { %2716 = vst.msk [vmem:[%s4063_s7 + $0x78] sm:$0xff] %vm2700_vm3, %v2587_v18  ;;  %v1432_v39 = vmul.f32 %v4042_v23, %v1301_v36 }
 0x21d   : > { %881 = vperm.xlu0 %3189, %v4156_v8  }
 0x21f   : > { %v4172_v61 = vpop.permute.xlu0 %2376 }
 0x221   : > { %3049 = vset.pattern.permute.xlu2 %v3685_v1  ;;  %3048 = vset.pattern.permute.xlu1 %v3812_v33 }
 0x223   : > { %v773_v46 = vpop.permute.xlu2 %772 }
 0x224   : > { %v1217_v15 = vsub.f32 %v773_v46, %v4035_v62  ;;  %v1580_v46 = vmul.f32 1.442695, %v1432_v39 }
 0x225   : > { %2013 = vperm.xlu0 %3189, %v4168_v38  }
 0x226   : > { %v1346_v30 = vmul.f32 %v1217_v15, %v1217_v15 }
 0x228   : > { %v1477_v18 = vmul.f32 %v4042_v23, %v1346_v30 }
 0x229   : > { %863 = vperm.xlu2 %3049, %v4156_v8   ;;  %856 = vperm.xlu1 %3048, %v4058_v6  }
 0x22a   : > { %v1670_v42 = vmul.f32 1.442695, %v1477_v18  ;;  %v1177_v18 = vsub.f32 %v3989_v48, %v4035_v62 }
 0x22c   : > { %3224 = vpow2.f32 %v1670_v42 }
 0x22d   : > { %2498 = vperm.xlu0 %3189, %v4179_v20   ;;  %3226 = vpow2.f32 %v1580_v46 }
 0x22f   : > { %v4182_v28 = vpop.permute.xlu0 %790 }
 0x230   : > { %5284 = vst [vmem:[#allocation33_spill] sm:$0xff] %v4182_v28 }
 0x231   : > { %3051 = vset.pattern.permute.xlu2 %v3691_v3  ;;  %3050 = vset.pattern.permute.xlu1 %v3825_v21 }
 0x232   : > { %v3225_v15 = vpop.eup %3224 }
 0x233   : > { %v2637_v6 = vmul.f32 %v3225_v15, %v3977_v44  ;;  %v3227_v63 = vpop.eup %3226  ;;  %v4192_v36 = vpop.permute.xlu2 %784 }
 0x234   : > { %5285 = vst [vmem:[#allocation34_spill] sm:$0xff] %v4192_v36  ;;  %v4199_v44 = vpop.permute.xlu1 %390 }
 0x235   : > { %2766 = vst.msk [vmem:[%s4063_s7 + $0x208] sm:$0xff] %vm2700_vm3, %v2637_v6  ;;  %3194 = vset.pattern.permute.xlu0 %v3851_v4  ;;  %v1306_v6 = vmul.f32 %v1177_v18, %v1177_v18 }
 0x237   : > { %v1923_v30 = vpop.permute.xlu0 %1922  ;;  %v1437_v48 = vmul.f32 %v4042_v23, %v1306_v6 }
 0x238   : > { %v2592_v39 = vmul.f32 %v3227_v63, %v1923_v30 }
 0x239   : > { %875 = vperm.xlu2 %3051, %v4156_v8   ;;  %869 = vperm.xlu1 %3050, %v4156_v8  }
 0x23a   : > { %2721 = vst.msk [vmem:[%s4063_s7 + $0xa0] sm:$0xff] %vm2700_vm3, %v2592_v39 }
 0x23c   : > { %v4210_v28 = vpop.permute.xlu1 %396 }
 0x23d   : > { %426 = vperm.xlu0 %3194, %v3712_v16  }
 0x23f   : > { %v4205_v63 = vpop.permute.xlu0 %2407 }
 0x241   : > { %3053 = vset.pattern.permute.xlu2 %v3722_v29  ;;  %3052 = vset.pattern.permute.xlu1 %v3688_v2 }
 0x243   : > { %v803_v42 = vpop.permute.xlu2 %802 }
 0x244   : > { %v1222_v46 = vsub.f32 %v803_v42, %v4035_v62  ;;  %v1590_v42 = vmul.f32 1.442695, %v1437_v48 }
 0x245   : > { %911 = vperm.xlu0 %3194, %v4156_v8  }
 0x246   : > { %v1351_v15 = vmul.f32 %v1222_v46, %v1222_v46 }
 0x248   : > { %v1482_v30 = vmul.f32 %v4042_v23, %v1351_v15  ;;  %v4218_v15 = vpop.permute.xlu1 %414 }
 0x249   : > { %893 = vperm.xlu2 %3053, %v4156_v8   ;;  %887 = vperm.xlu1 %3052, %v4156_v8  }
 0x24a   : > { %v1680_v39 = vmul.f32 1.442695, %v1482_v30 }
 0x24c   : > { %3228 = vpow2.f32 %v1680_v39 }
 0x24d   : > { %2043 = vperm.xlu0 %3194, %v4168_v38   ;;  %3230 = vpow2.f32 %v1590_v42  ;;  %v1182_v42 = vsub.f32 %v4003_v52, %v4035_v62 }
 0x24f   : > { %v4214_v18 = vpop.permute.xlu0 %820 }
 0x250   : > { %5286 = vst [vmem:[#allocation35_spill] sm:$0xff] %v4214_v18  ;;  %v4226_v18 = vpop.permute.xlu1 %432 }
 0x251   : > { %3055 = vset.pattern.permute.xlu2 %v3741_v49  ;;  %3054 = vset.pattern.permute.xlu1 %v3761_v24 }
 0x252   : > { %v3229_v46 = vpop.eup %3228 }
 0x253   : > { %v2642_v30 = vmul.f32 %v3229_v46, %v4001_v43  ;;  %v3231_v6 = vpop.eup %3230  ;;  %v4228_v36 = vpop.permute.xlu2 %814 }
 0x254   : > { %5287 = vst [vmem:[#allocation36_spill] sm:$0xff] %v4228_v36 }
 0x255   : > { %2771 = vst.msk [vmem:[%s4063_s7 + $0x230] sm:$0xff] %vm2700_vm3, %v2642_v30  ;;  %2528 = vperm.xlu0 %3194, %v4179_v20  }
 0x257   : > { %v1953_v39 = vpop.permute.xlu0 %1952 }
 0x258   : > { %v2597_v48 = vmul.f32 %v3231_v6, %v1953_v39  ;;  %v4235_v43 = vpop.permute.xlu1 %444  ;;  %v1311_v39 = vmul.f32 %v1182_v42, %v1182_v42 }
 0x259   : > { %905 = vperm.xlu2 %3055, %v4156_v8   ;;  %899 = vperm.xlu1 %3054, %v4156_v8  }
 0x25a   : > { %2726 = vst.msk [vmem:[%s4063_s7 + $0xc8] sm:$0xff] %vm2700_vm3, %v2597_v48  ;;  %v1442_v52 = vmul.f32 %v4042_v23, %v1311_v39 }
 0x25d   : > { %3199 = vset.pattern.permute.xlu0 %v3872_v7 }
 0x25f   : > { %v4241_v36 = vpop.permute.xlu0 %2437 }
 0x260   : > { %v4246_v14 = vpop.permute.xlu1 %462 }
 0x261   : > { %3057 = vset.pattern.permute.xlu2 %v3783_v57  ;;  %3056 = vset.pattern.permute.xlu1 %v3786_v58 }
 0x263   : > { %v833_v46 = vpop.permute.xlu2 %832 }
 0x264   : > { %v1227_v30 = vsub.f32 %v833_v46, %v4035_v62  ;;  %v1600_v46 = vmul.f32 1.442695, %v1442_v52 }
 0x265   : > { %456 = vperm.xlu0 %3199, %v3712_v16  }
 0x266   : > { %v1356_v6 = vmul.f32 %v1227_v30, %v1227_v30 }
 0x268   : > { %v1487_v48 = vmul.f32 %v4042_v23, %v1356_v6  ;;  %v4254_v30 = vpop.permute.xlu1 %475 }
 0x269   : > { %923 = vperm.xlu2 %3057, %v4156_v8   ;;  %917 = vperm.xlu1 %3056, %v4156_v8  }
 0x26a   : > { %v1690_v25 = vmul.f32 1.442695, %v1487_v48 }
 0x26c   : > { %3232 = vpow2.f32 %v1690_v25 }
 0x26d   : > { %941 = vperm.xlu0 %3199, %v4156_v8   ;;  %3234 = vpow2.f32 %v1600_v46  ;;  %v1187_v46 = vsub.f32 %v4015_v55, %v4035_v62 }
 0x26f   : > { %v4250_v42 = vpop.permute.xlu0 %850 }
 0x270   : > { %5288 = vst [vmem:[#allocation37_spill] sm:$0xff] %v4250_v42  ;;  %v4262_v52 = vpop.permute.xlu1 %493 }
 0x271   : > { %3059 = vset.pattern.permute.xlu2 %v3703_v10  ;;  %3058 = vset.pattern.permute.xlu1 %v3795_v12 }
 0x272   : > { %v3233_v16 = vpop.eup %3232 }
 0x273   : > { %v2647_v6 = vmul.f32 %v3233_v16, %v4025_v41  ;;  %v3235_v25 = vpop.eup %3234  ;;  %v4264_v42 = vpop.permute.xlu2 %844 }
 0x274   : > { %5289 = vst [vmem:[#allocation38_spill] sm:$0xff] %v4264_v42 }
 0x275   : > { %2776 = vst.msk [vmem:[%s4063_s7 + $0x258] sm:$0xff] %vm2700_vm3, %v2647_v6  ;;  %2073 = vperm.xlu0 %3199, %v4168_v38  }
 0x277   : > { %v1983_v39 = vpop.permute.xlu0 %1982 }
 0x278   : > { %v2602_v48 = vmul.f32 %v3235_v25, %v1983_v39  ;;  %v4271_v41 = vpop.permute.xlu1 %505  ;;  %v1316_v39 = vmul.f32 %v1187_v46, %v1187_v46 }
 0x279   : > { %935 = vperm.xlu2 %3059, %v4156_v8   ;;  %929 = vperm.xlu1 %3058, %v4156_v8  }
 0x27a   : > { %2731 = vst.msk [vmem:[%s4063_s7 + $0xf0] sm:$0xff] %vm2700_vm3, %v2602_v48  ;;  %v1447_v55 = vmul.f32 %v4042_v23, %v1316_v39 }
 0x27d   : > { %2558 = vperm.xlu0 %3199, %v4179_v20  }
 0x27f   : > { %v4276_v0 = vpop.permute.xlu0 %2467 }
 0x280   : > { %v4282_v42 = vpop.permute.xlu1 %523 }
 0x281   : > { %3061 = vset.pattern.permute.xlu2 %v3812_v33  ;;  %3060 = vset.pattern.permute.xlu1 %v3815_v11 }
 0x283   : > { %v864_v16 = vpop.permute.xlu2 %863 }
 0x284   : > { %v1232_v6 = vsub.f32 %v864_v16, %v4035_v62  ;;  %v1610_v16 = vmul.f32 1.442695, %v1447_v55 }
 0x285   : > { %3206 = vset.pattern.permute.xlu0 %v3812_v33 }
 0x286   : > { %v1361_v25 = vmul.f32 %v1232_v6, %v1232_v6 }
 0x288   : > { %v1492_v48 = vmul.f32 %v4042_v23, %v1361_v25  ;;  %v4289_v25 = vpop.permute.xlu1 %535 }
 0x289   : > { %953 = vperm.xlu2 %3061, %v4156_v8   ;;  %947 = vperm.xlu1 %3060, %v4156_v8  }
 0x28a   : > { %v1700_v20 = vmul.f32 1.442695, %v1492_v48 }
 0x28c   : > { %3236 = vpow2.f32 %v1700_v20 }
 0x28d   : > { %3238 = vpow2.f32 %v1610_v16 }
 0x28f   : > { %v4285_v46 = vpop.permute.xlu0 %881 }
 0x290   : > { %5290 = vst [vmem:[#allocation39_spill] sm:$0xff] %v4285_v46  ;;  %v4296_v39 = vpop.permute.xlu1 %553 }
 0x291   : > { %3063 = vset.pattern.permute.xlu2 %v3825_v21  ;;  %3062 = vset.pattern.permute.xlu1 %v3685_v1 }
 0x292   : > { %v3237_v6 = vpop.eup %3236 }
 0x293   : > { %v2652_v8 = vmul.f32 %v3237_v6, %v4079_v17  ;;  %v3239_v48 = vpop.eup %3238  ;;  %v4298_v55 = vpop.permute.xlu2 %875 }
 0x294   : > { %5291 = vst [vmem:[#allocation40_spill] sm:$0xff] %v4298_v55  ;;  %v1192_v55 = vsub.f32 %v4029_v60, %v4035_v62 }
 0x295   : > { %2781 = vst.msk [vmem:[%s4063_s7 + $0x280] sm:$0xff] %vm2700_vm3, %v2652_v8 }
 0x296   : > { %v1321_v59 = vmul.f32 %v1192_v55, %v1192_v55 }
 0x297   : > { %v2014_v37 = vpop.permute.xlu0 %2013 }
 0x298   : > { %v2607_v20 = vmul.f32 %v3239_v48, %v2014_v37  ;;  %v4304_v17 = vpop.permute.xlu1 %565 }
 0x299   : > { %966 = vperm.xlu2 %3063, %v3773_v47   ;;  %960 = vperm.xlu1 %3062, %v3773_v47   ;;  %5292 = vst [vmem:[#allocation41_spill] sm:$0xff] %v4304_v17 }
 0x29a   : > { %2736 = vst.msk [vmem:[%s4063_s7 + $0x118] sm:$0xff] %vm2700_vm3, %v2607_v20 }
 0x29f   : > { %v4307_v46 = vpop.permute.xlu0 %2498 }
 0x2a0   : > { %v4312_v20 = vpop.permute.xlu1 %584 }
 0x2a1   : > { %3065 = vset.pattern.permute.xlu2 %v3688_v2  ;;  %3064 = vset.pattern.permute.xlu1 %v3726_v34  ;;  %5293 = vst [vmem:[#allocation42_spill] sm:$0xff] %v4312_v20 }
 0x2a3   : > { %v894_v16 = vpop.permute.xlu2 %893 }
 0x2a4   : > { %v1237_v6 = vsub.f32 %v894_v16, %v4035_v62 }
 0x2a6   : > { %v1366_v8 = vmul.f32 %v1237_v6, %v1237_v6 }
 0x2a8   : > { %v1497_v37 = vmul.f32 %v4042_v23, %v1366_v8  ;;  %v4320_v6 = vpop.permute.xlu1 %596  ;;  %v1452_v8 = vmul.f32 %v4042_v23, %v1321_v59 }
 0x2a9   : > { %984 = vperm.xlu2 %3065, %v3773_v47   ;;  %978 = vperm.xlu1 %3064, %v3773_v47   ;;  %5294 = vst [vmem:[#allocation43_spill] sm:$0xff] %v4320_v6 }
 0x2aa   : > { %v1710_v48 = vmul.f32 1.442695, %v1497_v37  ;;  %v1620_v20 = vmul.f32 1.442695, %v1452_v8 }
 0x2ac   : > { %3240 = vpow2.f32 %v1710_v48 }
 0x2ad   : > { %3242 = vpow2.f32 %v1620_v20 }
 0x2af   : > { %v4316_v17 = vpop.permute.xlu0 %426 }
 0x2b0   : > { %v4330_v55 = vpop.permute.xlu1 %614 }
 0x2b1   : > { %3067 = vset.pattern.permute.xlu2 %v3761_v24  ;;  %3066 = vset.pattern.permute.xlu1 %v3722_v29  ;;  %5296 = vst [vmem:[#allocation45_spill] sm:$0xff] %v4330_v55 }
 0x2b2   : > { %v3241_v16 = vpop.eup %3240 }
 0x2b3   : > { %v2657_v37 = vmul.f32 %v3241_v16, %v4110_v54  ;;  %v4332_v48 = vpop.permute.xlu2 %905  ;;  %v3243_v6 = vpop.eup %3242 }
 0x2b4   : > { %5297 = vst [vmem:[#allocation46_spill] sm:$0xff] %v4332_v48 }
 0x2b5   : > { %2786 = vst.msk [vmem:[%s4063_s7 + $0x2a8] sm:$0xff] %vm2700_vm3, %v2657_v37 }
 0x2b7   : > { %v4326_v60 = vpop.permute.xlu0 %911 }
 0x2b8   : > { %5295 = vst [vmem:[#allocation44_spill] sm:$0xff] %v4326_v60  ;;  %v4336_v54 = vpop.permute.xlu1 %626 }
 0x2b9   : > { %996 = vperm.xlu2 %3067, %v3773_v47   ;;  %990 = vperm.xlu1 %3066, %v3773_v47   ;;  %5298 = vst [vmem:[#allocation47_spill] sm:$0xff] %v4336_v54 }
 0x2bf   : > { %v2044_v9 = vpop.permute.xlu0 %2043 }
 0x2c0   : > { %v2612_v59 = vmul.f32 %v3243_v6, %v2044_v9  ;;  %v4344_v48 = vpop.permute.xlu1 %644 }
 0x2c1   : > { %3070 = vset.pattern.permute.xlu2 %v3786_v58  ;;  %3069 = vset.pattern.permute.xlu1 %v3851_v4  ;;  %5299 = vst [vmem:[#allocation48_spill] sm:$0xff] %v4344_v48 }
 0x2c2   : > { %2741 = vst.msk [vmem:[%s4063_s7 + $0x140] sm:$0xff] %vm2700_vm3, %v2612_v59  ;;  %v1197_v59 = vsub.f32 %v4052_v56, %v4035_v62 }
 0x2c3   : > { %v924_v16 = vpop.permute.xlu2 %923 }
 0x2c4   : > { %v1242_v8 = vsub.f32 %v924_v16, %v4035_v62 }
 0x2c6   : > { %v1371_v20 = vmul.f32 %v1242_v8, %v1242_v8 }
 0x2c7   : > { %v4346_v9 = vpop.permute.xlu0 %2528 }
 0x2c8   : > { %v1502_v37 = vmul.f32 %v4042_v23, %v1371_v20  ;;  %v4352_v16 = vpop.permute.xlu1 %656  ;;  %v1326_v20 = vmul.f32 %v1197_v59, %v1197_v59 }
 0x2c9   : > { %1014 = vperm.xlu2 %3070, %v3773_v47   ;;  %1008 = vperm.xlu1 %3069, %v3773_v47   ;;  %5300 = vst [vmem:[#allocation49_spill] sm:$0xff] %v4352_v16 }
 0x2ca   : > { %v1720_v60 = vmul.f32 1.442695, %v1502_v37 }
 0x2cc   : > { %3244 = vpow2.f32 %v1720_v60  ;;  %v1457_v60 = vmul.f32 %v4042_v23, %v1326_v20 }
 0x2ce   : > { %v1630_v56 = vmul.f32 1.442695, %v1457_v60 }
 0x2d0   : > { %v4362_v54 = vpop.permute.xlu1 %675  ;;  %3246 = vpow2.f32 %v1630_v56 }
 0x2d1   : > { %3072 = vset.pattern.permute.xlu2 %v3795_v12  ;;  %3071 = vset.pattern.permute.xlu1 %v3783_v57  ;;  %5301 = vst [vmem:[#allocation50_spill] sm:$0xff] %v4362_v54 }
 0x2d2   : > { %v3245_v6 = vpop.eup %3244 }
 0x2d3   : > { %v2662_v8 = vmul.f32 %v3245_v6, %v4138_v27  ;;  %v4364_v48 = vpop.permute.xlu2 %935 }
 0x2d4   : > { %5302 = vst [vmem:[#allocation51_spill] sm:$0xff] %v4364_v48 }
 0x2d5   : > { %2791 = vst.msk [vmem:[%s4063_s7 + $0x2d0] sm:$0xff] %vm2700_vm3, %v2662_v8 }
 0x2d6   : > { %v3247_v16 = vpop.eup %3246 }
 0x2d7   : > { %v4357_v37 = vpop.permute.xlu0 %456 }
 0x2d8   : > { %v4370_v27 = vpop.permute.xlu1 %687 }
 0x2d9   : > { %1026 = vperm.xlu2 %3072, %v3773_v47   ;;  %1020 = vperm.xlu1 %3071, %v3773_v47  }
 0x2df   : > { %v4366_v55 = vpop.permute.xlu0 %941 }
 0x2e0   : > { %5303 = vst [vmem:[#allocation52_spill] sm:$0xff] %v4366_v55  ;;  %v4376_v54 = vpop.permute.xlu1 %705 }
 0x2e1   : > { %3074 = vset.pattern.permute.xlu2 %v3815_v11  ;;  %3073 = vset.pattern.permute.xlu1 %v3872_v7 }
 0x2e3   : > { %v954_v6 = vpop.permute.xlu2 %953 }
 0x2e4   : > { %v1247_v59 = vsub.f32 %v954_v6, %v4035_v62 }
 0x2e6   : > { %v1376_v8 = vmul.f32 %v1247_v59, %v1247_v59 }
 0x2e7   : > { %v2074_v48 = vpop.permute.xlu0 %2073 }
 0x2e8   : > { %v1507_v20 = vmul.f32 %v4042_v23, %v1376_v8  ;;  %v2617_v60 = vmul.f32 %v3247_v16, %v2074_v48  ;;  %v4382_v6 = vpop.permute.xlu1 %717 }
 0x2e9   : > { %1044 = vperm.xlu2 %3074, %v3773_v47   ;;  %1038 = vperm.xlu1 %3073, %v3773_v47  }
 0x2ea   : > { %v1730_v55 = vmul.f32 1.442695, %v1507_v20  ;;  %2746 = vst.msk [vmem:[%s4063_s7 + $0x168] sm:$0xff] %vm2700_vm3, %v2617_v60 }
 0x2ec   : > { %3248 = vpow2.f32 %v1730_v55 }
 0x2f0   : > { %v4389_v48 = vpop.permute.xlu1 %735 }
 0x2f1   : > { %3076 = vset.pattern.permute.xlu2 %v3685_v1  ;;  %3075 = vset.pattern.permute.xlu1 %v3812_v33 }
 0x2f2   : > { %v3249_v56 = vpop.eup %3248 }
 0x2f3   : > { %v2667_v59 = vmul.f32 %v3249_v56, %v4172_v61  ;;  %v4391_v16 = vpop.permute.xlu2 %966 }
 0x2f4   : > { %5304 = vst [vmem:[#allocation53_spill] sm:$0xff] %v4391_v16 }
 0x2f5   : > { %2796 = vst.msk [vmem:[%s4063_s7 + $0x2f8] sm:$0xff] %vm2700_vm3, %v2667_v59 }
 0x2f8   : > { %v4395_v55 = vpop.permute.xlu1 %747 }
 0x2f9   : > { %1057 = vperm.xlu2 %3076, %v3869_v5   ;;  %1050 = vperm.xlu1 %3075, %v3773_v47  }
 0x300   : > { %v4401_v56 = vpop.permute.xlu1 %766 }
 0x301   : > { %3078 = vset.pattern.permute.xlu2 %v3726_v34  ;;  %3077 = vset.pattern.permute.xlu1 %v3691_v3 }
 0x303   : > { %v985_v8 = vpop.permute.xlu2 %984 }
 0x304   : > { %v1252_v61 = vsub.f32 %v985_v8, %v4035_v62 }
 0x306   : > { %v1381_v20 = vmul.f32 %v1252_v61, %v1252_v61 }
 0x308   : > { %v1512_v60 = vmul.f32 %v4042_v23, %v1381_v20  ;;  %v4405_v16 = vpop.permute.xlu1 %778 }
 0x309   : > { %1075 = vperm.xlu2 %3078, %v3869_v5   ;;  %1069 = vperm.xlu1 %3077, %v3869_v5   ;;  %5305 = vst [vmem:[#allocation54_spill] sm:$0xff] %v4405_v16 }
 0x30a   : > { %v1740_v47 = vmul.f32 1.442695, %v1512_v60 }
 0x30c   : > { %3250 = vpow2.f32 %v1740_v47 }
 0x310   : > { %v4412_v61 = vpop.permute.xlu1 %796 }
 0x311   : > { %3080 = vset.pattern.permute.xlu2 %v3722_v29  ;;  %3079 = vset.pattern.permute.xlu1 %v3688_v2  ;;  %5306 = vst [vmem:[#allocation55_spill] sm:$0xff] %v4412_v61 }
 0x312   : > { %v3251_v59 = vpop.eup %3250 }
 0x313   : > { %v2672_v8 = vmul.f32 %v3251_v59, %v4205_v63  ;;  %v4414_v20 = vpop.permute.xlu2 %996 }
 0x314   : > { %5307 = vst [vmem:[#allocation56_spill] sm:$0xff] %v4414_v20 }
 0x315   : > { %2801 = vst.msk [vmem:[%s4063_s7 + $0x320] sm:$0xff] %vm2700_vm3, %v2672_v8 }
 0x318   : > { %v4418_v60 = vpop.permute.xlu1 %808 }
 0x319   : > { %1087 = vperm.xlu2 %3080, %v3869_v5   ;;  %1081 = vperm.xlu1 %3079, %v3869_v5   ;;  %5308 = vst [vmem:[#allocation57_spill] sm:$0xff] %v4418_v60 }
 0x320   : > { %v4424_v61 = vpop.permute.xlu1 %826 }
 0x321   : > { %3082 = vset.pattern.permute.xlu2 %v3851_v4  ;;  %3081 = vset.pattern.permute.xlu1 %v3741_v49 }
 0x323   : > { %v1015_v47 = vpop.permute.xlu2 %1014 }
 0x324   : > { %v1257_v63 = vsub.f32 %v1015_v47, %v4035_v62 }
 0x326   : > { %v1386_v59 = vmul.f32 %v1257_v63, %v1257_v63 }
 0x328   : > { %v1517_v8 = vmul.f32 %v4042_v23, %v1386_v59  ;;  %v4428_v60 = vpop.permute.xlu1 %838 }
 0x329   : > { %1105 = vperm.xlu2 %3082, %v3869_v5   ;;  %1099 = vperm.xlu1 %3081, %v3869_v5   ;;  %5309 = vst [vmem:[#allocation58_spill] sm:$0xff] %v4428_v60 }
 0x32a   : > { %v1750_v16 = vmul.f32 1.442695, %v1517_v8 }
 0x32c   : > { %3252 = vpow2.f32 %v1750_v16 }
 0x330   : > { %v4435_v63 = vpop.permute.xlu1 %856 }
 0x331   : > { %3084 = vset.pattern.permute.xlu2 %v3783_v57  ;;  %3083 = vset.pattern.permute.xlu1 %v3786_v58  ;;  %5310 = vst [vmem:[#allocation59_spill] sm:$0xff] %v4435_v63 }
 0x332   : > { %v3253_v20 = vpop.eup %3252 }
 0x333   : > { %v2677_v47 = vmul.f32 %v3253_v20, %v4241_v36  ;;  %v4437_v59 = vpop.permute.xlu2 %1026 }
 0x334   : > { %5311 = vst [vmem:[#allocation60_spill] sm:$0xff] %v4437_v59 }
 0x335   : > { %2806 = vst.msk [vmem:[%s4063_s7 + $0x348] sm:$0xff] %vm2700_vm3, %v2677_v47 }
 0x338   : > { %v4441_v16 = vpop.permute.xlu1 %869 }
 0x339   : > { %1117 = vperm.xlu2 %3084, %v3869_v5   ;;  %1111 = vperm.xlu1 %3083, %v3869_v5   ;;  %5312 = vst [vmem:[#allocation61_spill] sm:$0xff] %v4441_v16 }
 0x340   : > { %v4447_v63 = vpop.permute.xlu1 %887 }
 0x341   : > { %3086 = vset.pattern.permute.xlu2 %v3872_v7  ;;  %3085 = vset.pattern.permute.xlu1 %v3703_v10 }
 0x343   : > { %v1045_v8 = vpop.permute.xlu2 %1044 }
 0x344   : > { %v1262_v36 = vsub.f32 %v1045_v8, %v4035_v62 }
 0x346   : > { %v1391_v20 = vmul.f32 %v1262_v36, %v1262_v36 }
 0x348   : > { %v1522_v47 = vmul.f32 %v4042_v23, %v1391_v20  ;;  %v4451_v16 = vpop.permute.xlu1 %899 }
 0x349   : > { %1135 = vperm.xlu2 %3086, %v3869_v5   ;;  %1129 = vperm.xlu1 %3085, %v3869_v5   ;;  %5313 = vst [vmem:[#allocation62_spill] sm:$0xff] %v4451_v16 }
 0x34a   : > { %v1760_v60 = vmul.f32 1.442695, %v1522_v47 }
 0x34c   : > { %3254 = vpow2.f32 %v1760_v60 }
 0x350   : > { %v4458_v36 = vpop.permute.xlu1 %917 }
 0x351   : > { %3088 = vset.pattern.permute.xlu2 %v3812_v33  ;;  %3087 = vset.pattern.permute.xlu1 %v3815_v11 }
 0x352   : > { %v3255_v59 = vpop.eup %3254 }
 0x353   : > { %v2682_v8 = vmul.f32 %v3255_v59, %v4276_v0  ;;  %v4460_v20 = vpop.permute.xlu2 %1057 }
 0x354   : > { %5314 = vst [vmem:[#allocation63_spill] sm:$0xff] %v4460_v20 }
 0x355   : > { %2811 = vst.msk [vmem:[%s4063_s7 + $0x370] sm:$0xff] %vm2700_vm3, %v2682_v8 }
 0x358   : > { %v4464_v60 = vpop.permute.xlu1 %929 }
 0x359   : > { %1147 = vperm.xlu2 %3088, %v3869_v5   ;;  %1141 = vperm.xlu1 %3087, %v3869_v5   ;;  %5315 = vst [vmem:[#allocation64_spill] sm:$0xff] %v4464_v60 }
 0x360   : > { %v4470_v16 = vpop.permute.xlu1 %947 }
 0x361   : > { %3090 = vset.pattern.permute.xlu2 %v3691_v3  ;;  %3089 = vset.pattern.permute.xlu1 %v3825_v21  ;;  %5316 = vst [vmem:[#allocation65_spill] sm:$0xff] %v4470_v16 }
 0x363   : > { %v1076_v47 = vpop.permute.xlu2 %1075 }
 0x364   : > { %v1267_v0 = vsub.f32 %v1076_v47, %v4035_v62 }
 0x366   : > { %v1396_v59 = vmul.f32 %v1267_v0, %v1267_v0 }
 0x368   : > { %v1527_v8 = vmul.f32 %v4042_v23, %v1396_v59  ;;  %v4474_v60 = vpop.permute.xlu1 %960 }
 0x369   : > { %1813 = vperm.xlu2 %3090, %v3946_v31   ;;  %1807 = vperm.xlu1 %3089, %v3946_v31   ;;  %5317 = vst [vmem:[#allocation66_spill] sm:$0xff] %v4474_v60 }
 0x36a   : > { %v1770_v5 = vmul.f32 1.442695, %v1527_v8 }
 0x36c   : > { %3256 = vpow2.f32 %v1770_v5 }
 0x370   : > { %v4481_v0 = vpop.permute.xlu1 %978 }
 0x371   : > { %3092 = vset.pattern.permute.xlu2 %v3688_v2  ;;  %3091 = vset.pattern.permute.xlu1 %v3726_v34  ;;  %5318 = vst [vmem:[#allocation67_spill] sm:$0xff] %v4481_v0 }
 0x372   : > { %v3257_v20 = vpop.eup %3256 }
 0x373   : > { %v2687_v47 = vmul.f32 %v3257_v20, %v4307_v46  ;;  %v4483_v59 = vpop.permute.xlu2 %1087 }
 0x374   : > { %5319 = vst [vmem:[#allocation68_spill] sm:$0xff] %v4483_v59 }
 0x375   : > { %2816 = vst.msk [vmem:[%s4063_s7 + $0x398] sm:$0xff] %vm2700_vm3, %v2687_v47 }
 0x378   : > { %v4487_v8 = vpop.permute.xlu1 %990 }
 0x379   : > { %1825 = vperm.xlu2 %3092, %v3946_v31   ;;  %1819 = vperm.xlu1 %3091, %v3946_v31   ;;  %5320 = vst [vmem:[#allocation69_spill] sm:$0xff] %v4487_v8 }
 0x380   : > { %v4493_v0 = vpop.permute.xlu1 %1008 }
 0x381   : > { %3094 = vset.pattern.permute.xlu2 %v3741_v49  ;;  %3093 = vset.pattern.permute.xlu1 %v3761_v24  ;;  %5321 = vst [vmem:[#allocation70_spill] sm:$0xff] %v4493_v0  ;;  %v2559_v0 = vpop.permute.xlu0 %2558 }
 0x383   : > { %v1106_v5 = vpop.permute.xlu2 %1105 }
 0x384   : > { %v1272_v46 = vsub.f32 %v1106_v5, %v4035_v62 }
 0x386   : > { %v1401_v20 = vmul.f32 %v1272_v46, %v1272_v46 }
 0x388   : > { %v1532_v47 = vmul.f32 %v4042_v23, %v1401_v20  ;;  %v4497_v8 = vpop.permute.xlu1 %1020 }
 0x389   : > { %1843 = vperm.xlu2 %3094, %v3946_v31   ;;  %1837 = vperm.xlu1 %3093, %v3946_v31   ;;  %5322 = vst [vmem:[#allocation71_spill] sm:$0xff] %v4497_v8 }
 0x38a   : > { %v1780_v60 = vmul.f32 1.442695, %v1532_v47 }
 0x38c   : > { %3258 = vpow2.f32 %v1780_v60 }
 0x390   : > { %v4506_v20 = vpop.permute.xlu1 %1038 }
 0x391   : > { %3096 = vset.pattern.permute.xlu2 %v3786_v58  ;;  %3095 = vset.pattern.permute.xlu1 %v3851_v4  ;;  %5324 = vst [vmem:[#allocation73_spill] sm:$0xff] %v4506_v20  ;;  %v1154_v20 = vsub.f32 %v4199_v44, %v4035_v62 }
 0x392   : > { %v3259_v59 = vpop.eup %3258 }
 0x393   : > { %v2692_v5 = vmul.f32 %v3259_v59, %v4346_v9  ;;  %v4504_v46 = vpop.permute.xlu2 %1117 }
 0x394   : > { %5323 = vst [vmem:[#allocation72_spill] sm:$0xff] %v4504_v46 }
 0x395   : > { %2821 = vst.msk [vmem:[%s4063_s7 + $0x3c0] sm:$0xff] %vm2700_vm3, %v2692_v5 }
 0x398   : > { %v4510_v60 = vpop.permute.xlu1 %1050 }
 0x399   : > { %1855 = vperm.xlu2 %3096, %v3946_v31   ;;  %1849 = vperm.xlu1 %3095, %v3946_v31   ;;  %5325 = vst [vmem:[#allocation74_spill] sm:$0xff] %v4510_v60  ;;  %v1283_v60 = vmul.f32 %v1154_v20, %v1154_v20 }
 0x39b   : > { %v1414_v16 = vmul.f32 %v4042_v23, %v1283_v60 }
 0x3a0   : > { %v4516_v46 = vpop.permute.xlu1 %1069 }
 0x3a1   : > { %3098 = vset.pattern.permute.xlu2 %v3703_v10  ;;  %3097 = vset.pattern.permute.xlu1 %v3795_v12 }
 0x3a3   : > { %v1136_v47 = vpop.permute.xlu2 %1135 }
 0x3a4   : > { %v1277_v8 = vsub.f32 %v1136_v47, %v4035_v62 }
 0x3a6   : > { %v1406_v9 = vmul.f32 %v1277_v8, %v1277_v8 }
 0x3a8   : > { %v1537_v59 = vmul.f32 %v4042_v23, %v1406_v9  ;;  %v4522_v47 = vpop.permute.xlu1 %1081 }
 0x3a9   : > { %1873 = vperm.xlu2 %3098, %v3946_v31   ;;  %1867 = vperm.xlu1 %3097, %v3946_v31   ;;  %5326 = vst [vmem:[#allocation75_spill] sm:$0xff] %v4522_v47 }
 0x3aa   : > { %v1790_v5 = vmul.f32 1.442695, %v1537_v59  ;;  %v1544_v59 = vmul.f32 1.442695, %v1414_v16  ;;  %v1153_v16 = vsub.f32 %v3948_v32, %v4035_v62  ;;  %v4549_v32 = vld [vmem:[#allocation4] ss:$0 sm:$0xff] }
 0x3ac   : > { %3260 = vpow2.f32 %v1790_v5  ;;  %v1156_v5 = vsub.f32 %v3921_v22, %v4035_v62  ;;  %v1159_v62 = vsub.f32 %v3933_v26, %v4549_v32 }
 0x3ad   : > { %3262 = vpow2.f32 %v1544_v59 }
 0x3ae   : > { %v1285_v47 = vmul.f32 %v1156_v5, %v1156_v5 }
 0x3b0   : > { %v4531_v20 = vpop.permute.xlu1 %1099 }
 0x3b1   : > { %3100 = vset.pattern.permute.xlu2 %v3815_v11  ;;  %3099 = vset.pattern.permute.xlu1 %v3872_v7 }
 0x3b2   : > { %v3261_v8 = vpop.eup %3260 }
 0x3b3   : > { %v2697_v9 = vmul.f32 %v3261_v8, %v2559_v0  ;;  %v4529_v44 = vpop.permute.xlu2 %1147  ;;  %v3263_v0 = vpop.eup %3262 }
 0x3b4   : > { %5327 = vst [vmem:[#allocation76_spill] sm:$0xff] %v4529_v44  ;;  %v1282_v44 = vmul.f32 %v1153_v16, %v1153_v16 }
 0x3b5   : > { %2826 = vst.msk [vmem:[%s4063_s7 + $0x3e8] sm:$0xff] %vm2700_vm3, %v2697_v9  ;;  %v1416_v9 = vmul.f32 %v4042_v23, %v1285_v47 }
 0x3b6   : > { %v1413_v59 = vmul.f32 %v4042_v23, %v1282_v44 }
 0x3b7   : > { %v1548_v22 = vmul.f32 1.442695, %v1416_v9  ;;  %v1155_v9 = vsub.f32 %v4210_v28, %v4549_v32  ;;  %v1161_v28 = vsub.f32 %v4226_v18, %v4549_v32 }
 0x3b8   : > { %v4539_v60 = vpop.permute.xlu1 %1111  ;;  %v1542_v47 = vmul.f32 1.442695, %v1413_v59 }
 0x3b9   : > { %1885 = vperm.xlu2 %3100, %v3946_v31   ;;  %1879 = vperm.xlu1 %3099, %v3946_v31   ;;  %5328 = vst [vmem:[#allocation77_spill] sm:$0xff] %v4539_v60  ;;  %3264 = vpow2.f32 %v1548_v22  ;;  %v1284_v59 = vmul.f32 %v1155_v9, %v1155_v9 }
 0x3ba   : > { %3266 = vpow2.f32 %v1542_v47 }
 0x3bb   : > { %v1415_v60 = vmul.f32 %v4042_v23, %v1284_v59 }
 0x3bf   : > { %v3265_v16 = vpop.eup %3264 }
 0x3c0   : > { %v4547_v5 = vpop.permute.xlu1 %1129  ;;  %v3267_v26 = vpop.eup %3266 }
 0x3c1   : > { %3102 = vset.pattern.permute.xlu2 %v3825_v21  ;;  %3101 = vset.pattern.permute.xlu1 %v3685_v1 }
 0x3c3   : > { %v1814_v31 = vpop.permute.xlu2 %1813 }
 0x3c4   : > { %v2574_v8 = vmul.f32 %v3263_v0, %v1814_v31  ;;  %v1288_v0 = vmul.f32 %v1159_v62, %v1159_v62 }
 0x3c6   : > { %2703 = vst.msk [vmem:[%s4063_s7 + $0x10] sm:$0xff] %vm2700_vm3, %v2574_v8  ;;  %v1419_v22 = vmul.f32 %v4042_v23, %v1288_v0  ;;  %v1546_v0 = vmul.f32 1.442695, %v1415_v60 }
 0x3c8   : > { %v1554_v62 = vmul.f32 1.442695, %v1419_v22  ;;  %v1158_v22 = vsub.f32 %v4218_v15, %v4549_v32  ;;  %v1164_v15 = vsub.f32 %v3953_v35, %v4549_v32 }
 0x3c9   : > { %1904 = vperm.xlu2 %3102, %v4075_v50   ;;  %1898 = vperm.xlu1 %3101, %v4075_v50  }
 0x3ca   : > { %3268 = vpow2.f32 %v1554_v62  ;;  %v1287_v18 = vmul.f32 %v1158_v22, %v1158_v22 }
 0x3cb   : > { %v4555_v31 = vpop.permute.xlu1 %1141  ;;  %3270 = vpow2.f32 %v1546_v0  ;;  %v1293_v0 = vmul.f32 %v1164_v15, %v1164_v15 }
 0x3cc   : > { %5329 = vst [vmem:[#allocation78_spill] sm:$0xff] %v4555_v31 }
 0x3cd   : > { %v1424_v22 = vmul.f32 %v4042_v23, %v1293_v0 }
 0x3d1   : > { %3104 = vset.pattern.permute.xlu2 %v3726_v34  ;;  %3103 = vset.pattern.permute.xlu1 %v3691_v3 }
 0x3d3   : > { %v1826_v44 = vpop.permute.xlu2 %1825 }
 0x3d4   : > { %v2576_v8 = vmul.f32 %v3265_v16, %v1826_v44  ;;  %v1290_v16 = vmul.f32 %v1161_v28, %v1161_v28  ;;  %v3269_v44 = vpop.eup %3268 }
 0x3d5   : > { %v3271_v60 = vpop.eup %3270 }
 0x3d6   : > { %2705 = vst.msk [vmem:[%s4063_s7 + $0x20] sm:$0xff] %vm2700_vm3, %v2576_v8 }
 0x3d9   : > { %1916 = vperm.xlu2 %3104, %v4075_v50   ;;  %1910 = vperm.xlu1 %3103, %v4075_v50  }
 0x3db   : > { %v1808_v47 = vpop.permute.xlu1 %1807 }
 0x3dc   : > { %v2573_v31 = vmul.f32 %v3267_v26, %v1808_v47  ;;  %v1421_v26 = vmul.f32 %v4042_v23, %v1290_v16  ;;  %v1418_v47 = vmul.f32 %v4042_v23, %v1287_v18 }
 0x3de   : > { %2702 = vst.msk [vmem:[%s4063_s7 + $0x8] sm:$0xff] %vm2700_vm3, %v2573_v31  ;;  %v1558_v31 = vmul.f32 1.442695, %v1421_v26  ;;  %v1552_v28 = vmul.f32 1.442695, %v1418_v47 }
 0x3df   : > { %v1564_v26 = vmul.f32 1.442695, %v1424_v22 }
 0x3e0   : > { %3272 = vpow2.f32 %v1558_v31 }
 0x3e1   : > { %3106 = vset.pattern.permute.xlu2 %v3761_v24  ;;  %3105 = vset.pattern.permute.xlu1 %v3722_v29  ;;  %3274 = vpow2.f32 %v1552_v28 }
 0x3e2   : > { %3276 = vpow2.f32 %v1564_v26 }
 0x3e3   : > { %v1844_v8 = vpop.permute.xlu2 %1843 }
 0x3e4   : > { %v2579_v9 = vmul.f32 %v3269_v44, %v1844_v8  ;;  %v1160_v44 = vsub.f32 %v4316_v17, %v4549_v32 }
 0x3e6   : > { %2708 = vst.msk [vmem:[%s4063_s7 + $0x38] sm:$0xff] %vm2700_vm3, %v2579_v9  ;;  %v3273_v16 = vpop.eup %3272  ;;  %v1289_v35 = vmul.f32 %v1160_v44, %v1160_v44 }
 0x3e7   : > { %v3275_v18 = vpop.eup %3274 }
 0x3e8   : > { %v1420_v31 = vmul.f32 %v4042_v23, %v1289_v35  ;;  %v3277_v15 = vpop.eup %3276 }
 0x3e9   : > { %1934 = vperm.xlu2 %3106, %v4075_v50   ;;  %1928 = vperm.xlu1 %3105, %v4075_v50  }
 0x3eb   : > { %v1820_v59 = vpop.permute.xlu1 %1819 }
 0x3ec   : > { %v2575_v62 = vmul.f32 %v3271_v60, %v1820_v59  ;;  %v1166_v59 = vsub.f32 %v4246_v14, %v4549_v32 }
 0x3ee   : > { %2704 = vst.msk [vmem:[%s4063_s7 + $0x18] sm:$0xff] %vm2700_vm3, %v2575_v62  ;;  %v1556_v62 = vmul.f32 1.442695, %v1420_v31  ;;  %v1295_v47 = vmul.f32 %v1166_v59, %v1166_v59 }
 0x3f0   : > { %3278 = vpow2.f32 %v1556_v62  ;;  %v1426_v44 = vmul.f32 %v4042_v23, %v1295_v47 }
 0x3f1   : > { %3108 = vset.pattern.permute.xlu2 %v3851_v4  ;;  %3107 = vset.pattern.permute.xlu1 %v3741_v49 }
 0x3f3   : > { %v1856_v8 = vpop.permute.xlu2 %1855 }
 0x3f4   : > { %v2581_v9 = vmul.f32 %v3273_v16, %v1856_v8  ;;  %v1163_v16 = vsub.f32 %v4235_v43, %v4549_v32  ;;  %v1169_v43 = vsub.f32 %v3970_v40, %v4549_v32 }
 0x3f6   : > { %2710 = vst.msk [vmem:[%s4063_s7 + $0x48] sm:$0xff] %vm2700_vm3, %v2581_v9  ;;  %v3279_v14 = vpop.eup %3278  ;;  %v1292_v8 = vmul.f32 %v1163_v16, %v1163_v16  ;;  %v1568_v9 = vmul.f32 1.442695, %v1426_v44  ;;  %v1298_v31 = vmul.f32 %v1169_v43, %v1169_v43  ;;  %v1171_v44 = vsub.f32 %v4262_v52, %v4549_v32 }
 0x3f8   : > { %v1423_v26 = vmul.f32 %v4042_v23, %v1292_v8  ;;  %3280 = vpow2.f32 %v1568_v9  ;;  %v1429_v47 = vmul.f32 %v4042_v23, %v1298_v31  ;;  %v1300_v8 = vmul.f32 %v1171_v44, %v1171_v44 }
 0x3f9   : > { %1946 = vperm.xlu2 %3108, %v4075_v50   ;;  %1940 = vperm.xlu1 %3107, %v4075_v50  }
 0x3fa   : > { %v1431_v43 = vmul.f32 %v4042_v23, %v1300_v8  ;;  %v1176_v8 = vsub.f32 %v4282_v42, %v4549_v32 }
 0x3fb   : > { %v1838_v60 = vpop.permute.xlu1 %1837 }
 0x3fc   : > { %v2578_v17 = vmul.f32 %v3275_v18, %v1838_v60  ;;  %v1562_v18 = vmul.f32 1.442695, %v1423_v26  ;;  %v1168_v26 = vsub.f32 %v4254_v30, %v4549_v32  ;;  %v1578_v31 = vmul.f32 1.442695, %v1431_v43 }
 0x3fd   : > { %v1174_v30 = vsub.f32 %v3982_v45, %v4549_v32 }
 0x3fe   : > { %2707 = vst.msk [vmem:[%s4063_s7 + $0x30] sm:$0xff] %vm2700_vm3, %v2578_v17  ;;  %v3281_v60 = vpop.eup %3280  ;;  %v1165_v17 = vsub.f32 %v4357_v37, %v4549_v32  ;;  %3282 = vpow2.f32 %v1562_v18  ;;  %v1297_v18 = vmul.f32 %v1168_v26, %v1168_v26 }
 0x400   : > { %v1294_v40 = vmul.f32 %v1165_v17, %v1165_v17 }
 0x401   : > { %3110 = vset.pattern.permute.xlu2 %v3795_v12  ;;  %3109 = vset.pattern.permute.xlu1 %v3783_v57 }
 0x403   : > { %v1874_v28 = vpop.permute.xlu2 %1873 }
 0x404   : > { %v2584_v0 = vmul.f32 %v3277_v15, %v1874_v28  ;;  %v1574_v15 = vmul.f32 1.442695, %v1429_v47  ;;  %v3283_v28 = vpop.eup %3282  ;;  %v1303_v47 = vmul.f32 %v1174_v30, %v1174_v30 }
 0x406   : > { %2713 = vst.msk [vmem:[%s4063_s7 + $0x60] sm:$0xff] %vm2700_vm3, %v2584_v0  ;;  %v1425_v0 = vmul.f32 %v4042_v23, %v1294_v40  ;;  %3284 = vpow2.f32 %v1574_v15 }
 0x409   : > { %1964 = vperm.xlu2 %3110, %v4075_v50   ;;  %1958 = vperm.xlu1 %3109, %v4075_v50  }
 0x40b   : > { %v1850_v22 = vpop.permute.xlu1 %1849 }
 0x40c   : > { %v2580_v35 = vmul.f32 %v3279_v14, %v1850_v22  ;;  %v1566_v14 = vmul.f32 1.442695, %v1425_v0  ;;  %v3285_v9 = vpop.eup %3284  ;;  %v1434_v0 = vmul.f32 %v4042_v23, %v1303_v47 }
 0x40e   : > { %2709 = vst.msk [vmem:[%s4063_s7 + $0x40] sm:$0xff] %vm2700_vm3, %v2580_v35  ;;  %3286 = vpow2.f32 %v1566_v14 }
 0x40f   : > { %3288 = vpow2.f32 %v1578_v31 }
 0x411   : > { %3112 = vset.pattern.permute.xlu2 %v3872_v7  ;;  %3111 = vset.pattern.permute.xlu1 %v3703_v10 }
 0x413   : > { %v1886_v59 = vpop.permute.xlu2 %1885 }
 0x414   : > { %v2586_v62 = vmul.f32 %v3281_v60, %v1886_v59  ;;  %v3287_v52 = vpop.eup %3286  ;;  %v1428_v59 = vmul.f32 %v4042_v23, %v1297_v18 }
 0x415   : > { %v3289_v40 = vpop.eup %3288 }
 0x416   : > { %2715 = vst.msk [vmem:[%s4063_s7 + $0x70] sm:$0xff] %vm2700_vm3, %v2586_v62  ;;  %v1572_v62 = vmul.f32 1.442695, %v1428_v59 }
 0x418   : > { %3290 = vpow2.f32 %v1572_v62 }
 0x419   : > { %1976 = vperm.xlu2 %3112, %v4075_v50   ;;  %1970 = vperm.xlu1 %3111, %v4075_v50  }
 0x41b   : > { %v1868_v16 = vpop.permute.xlu1 %1867 }
 0x41c   : > { %v2583_v37 = vmul.f32 %v3283_v28, %v1868_v16  ;;  %v1584_v16 = vmul.f32 1.442695, %v1434_v0 }
 0x41e   : > { %2712 = vst.msk [vmem:[%s4063_s7 + $0x58] sm:$0xff] %vm2700_vm3, %v2583_v37  ;;  %v3291_v37 = vpop.eup %3290  ;;  %3292 = vpow2.f32 %v1584_v16 }
 0x421   : > { %3114 = vset.pattern.permute.xlu2 %v3685_v1  ;;  %3113 = vset.pattern.permute.xlu1 %v3812_v33 }
 0x423   : > { %v1905_v22 = vpop.permute.xlu2 %1904 }
 0x424   : > { %v2589_v35 = vmul.f32 %v3285_v9, %v1905_v22  ;;  %v1305_v22 = vmul.f32 %v1176_v8, %v1176_v8 }
 0x426   : > { %2718 = vst.msk [vmem:[%s4063_s7 + $0x88] sm:$0xff] %vm2700_vm3, %v2589_v35  ;;  %v3293_v35 = vpop.eup %3292  ;;  %v1436_v18 = vmul.f32 %v4042_v23, %v1305_v22 }
 0x429   : > { %1995 = vperm.xlu2 %3114, %v4168_v38   ;;  %1988 = vperm.xlu1 %3113, %v4075_v50   ;;  %v1170_v50 = vsub.f32 %v3904_v19, %v4549_v32 }
 0x42b   : > { %v1880_v60 = vpop.permute.xlu1 %1879  ;;  %v1299_v45 = vmul.f32 %v1170_v50, %v1170_v50  ;;  %v1175_v50 = vsub.f32 %v3894_v13, %v4549_v32 }
 0x42c   : > { %v2585_v17 = vmul.f32 %v3287_v52, %v1880_v60  ;;  %v1173_v52 = vsub.f32 %v4271_v41, %v4549_v32  ;;  %v1588_v60 = vmul.f32 1.442695, %v1436_v18  ;;  %v1179_v41 = vsub.f32 %v3996_v51, %v4549_v32 }
 0x42d   : > { %v1430_v44 = vmul.f32 %v4042_v23, %v1299_v45  ;;  %v1304_v51 = vmul.f32 %v1175_v50, %v1175_v50 }
 0x42e   : > { %2714 = vst.msk [vmem:[%s4063_s7 + $0x68] sm:$0xff] %vm2700_vm3, %v2585_v17  ;;  %v1302_v31 = vmul.f32 %v1173_v52, %v1173_v52  ;;  %v1308_v47 = vmul.f32 %v1179_v41, %v1179_v41  ;;  %v5330_v41 = vld [vmem:[#allocation10_spill] sm:$0xff] }
 0x42f   : > { %v1576_v9 = vmul.f32 1.442695, %v1430_v44 }
 0x430   : > { %v1433_v30 = vmul.f32 %v4042_v23, %v1302_v31  ;;  %v1439_v0 = vmul.f32 %v4042_v23, %v1308_v47 }
 0x431   : > { %3116 = vset.pattern.permute.xlu2 %v3691_v3  ;;  %3115 = vset.pattern.permute.xlu1 %v3825_v21  ;;  %3294 = vpow2.f32 %v1576_v9 }
 0x432   : > { %3296 = vpow2.f32 %v1588_v60  ;;  %v1582_v62 = vmul.f32 1.442695, %v1433_v30  ;;  %v1594_v45 = vmul.f32 1.442695, %v1439_v0 }
 0x433   : > { %v1917_v15 = vpop.permute.xlu2 %1916 }
 0x434   : > { %v2591_v28 = vmul.f32 %v3289_v40, %v1917_v15  ;;  %3298 = vpow2.f32 %v1582_v62  ;;  %v1180_v62 = vsub.f32 %v5330_v41, %v4549_v32 }
 0x435   : > { %3300 = vpow2.f32 %v1594_v45 }
 0x436   : > { %2720 = vst.msk [vmem:[%s4063_s7 + $0x98] sm:$0xff] %vm2700_vm3, %v2591_v28 }
 0x437   : > { %v3295_v42 = vpop.eup %3294 }
 0x438   : > { %v3297_v40 = vpop.eup %3296 }
 0x439   : > { %2007 = vperm.xlu2 %3116, %v4168_v38   ;;  %2001 = vperm.xlu1 %3115, %v4168_v38  }
 0x43a   : > { %v3299_v16 = vpop.eup %3298 }
 0x43b   : > { %v1899_v14 = vpop.permute.xlu1 %1898  ;;  %v3301_v9 = vpop.eup %3300 }
 0x43c   : > { %v2588_v19 = vmul.f32 %v3291_v37, %v1899_v14  ;;  %v1435_v37 = vmul.f32 %v4042_v23, %v1304_v51  ;;  %v1181_v14 = vsub.f32 %v4296_v39, %v4549_v32 }
 0x43e   : > { %2717 = vst.msk [vmem:[%s4063_s7 + $0x80] sm:$0xff] %vm2700_vm3, %v2588_v19  ;;  %v1586_v19 = vmul.f32 1.442695, %v1435_v37  ;;  %v1310_v8 = vmul.f32 %v1181_v14, %v1181_v14 }
 0x440   : > { %3302 = vpow2.f32 %v1586_v19 }
 0x441   : > { %3118 = vset.pattern.permute.xlu2 %v3722_v29  ;;  %3117 = vset.pattern.permute.xlu1 %v3688_v2 }
 0x443   : > { %v1935_v26 = vpop.permute.xlu2 %1934 }
 0x444   : > { %v2594_v43 = vmul.f32 %v3293_v35, %v1935_v26  ;;  %v1178_v26 = vsub.f32 %v4289_v25, %v4549_v32  ;;  %v1184_v25 = vsub.f32 %v4008_v53, %v4549_v32  ;;  %v1309_v53 = vmul.f32 %v1180_v62, %v1180_v62 }
 0x446   : > { %2723 = vst.msk [vmem:[%s4063_s7 + $0xb0] sm:$0xff] %vm2700_vm3, %v2594_v43  ;;  %v1441_v43 = vmul.f32 %v4042_v23, %v1310_v8  ;;  %v3303_v39 = vpop.eup %3302  ;;  %v1307_v52 = vmul.f32 %v1178_v26, %v1178_v26  ;;  %v1440_v0 = vmul.f32 %v4042_v23, %v1309_v53  ;;  %v5335_v53 = vld [vmem:[#allocation8_spill] sm:$0xff] }
 0x448   : > { %v1598_v18 = vmul.f32 1.442695, %v1441_v43  ;;  %v1438_v60 = vmul.f32 %v4042_v23, %v1307_v52 }
 0x449   : > { %2025 = vperm.xlu2 %3118, %v4168_v38   ;;  %2019 = vperm.xlu1 %3117, %v4168_v38  }
 0x44a   : > { %3304 = vpow2.f32 %v1598_v18 }
 0x44b   : > { %v1911_v17 = vpop.permute.xlu1 %1910 }
 0x44c   : > { %v2590_v59 = vmul.f32 %v3295_v42, %v1911_v17  ;;  %v1592_v17 = vmul.f32 1.442695, %v1438_v60 }
 0x44e   : > { %2719 = vst.msk [vmem:[%s4063_s7 + $0x90] sm:$0xff] %vm2700_vm3, %v2590_v59  ;;  %v1313_v59 = vmul.f32 %v1184_v25, %v1184_v25  ;;  %3306 = vpow2.f32 %v1592_v17 }
 0x450   : > { %v3305_v30 = vpop.eup %3304  ;;  %v1444_v50 = vmul.f32 %v4042_v23, %v1313_v59 }
 0x451   : > { %3120 = vset.pattern.permute.xlu2 %v3741_v49  ;;  %3119 = vset.pattern.permute.xlu1 %v3761_v24 }
 0x453   : > { %v1947_v15 = vpop.permute.xlu2 %1946 }
 0x454   : > { %v2596_v28 = vmul.f32 %v3297_v40, %v1947_v15  ;;  %v1604_v15 = vmul.f32 1.442695, %v1444_v50 }
 0x456   : > { %2725 = vst.msk [vmem:[%s4063_s7 + $0xc0] sm:$0xff] %vm2700_vm3, %v2596_v28  ;;  %v3307_v28 = vpop.eup %3306  ;;  %3308 = vpow2.f32 %v1604_v15 }
 0x459   : > { %2037 = vperm.xlu2 %3120, %v4168_v38   ;;  %2031 = vperm.xlu1 %3119, %v4168_v38  }
 0x45b   : > { %v1929_v44 = vpop.permute.xlu1 %1928 }
 0x45c   : > { %v2593_v13 = vmul.f32 %v3299_v16, %v1929_v44  ;;  %v5331_v16 = vld [vmem:[#allocation42_spill] sm:$0xff]  ;;  %v1596_v44 = vmul.f32 1.442695, %v1440_v0  ;;  %v3309_v14 = vpop.eup %3308 }
 0x45d   : > { %v1186_v37 = vsub.f32 %v5331_v16, %v4549_v32 }
 0x45e   : > { %2722 = vst.msk [vmem:[%s4063_s7 + $0xa8] sm:$0xff] %vm2700_vm3, %v2593_v13  ;;  %3310 = vpow2.f32 %v1596_v44 }
 0x45f   : > { %v1315_v13 = vmul.f32 %v1186_v37, %v1186_v37 }
 0x461   : > { %3122 = vset.pattern.permute.xlu2 %v3783_v57  ;;  %3121 = vset.pattern.permute.xlu1 %v3786_v58 }
 0x463   : > { %v1965_v22 = vpop.permute.xlu2 %1964 }
 0x464   : > { %v2599_v35 = vmul.f32 %v3301_v9, %v1965_v22  ;;  %v5332_v9 = vld [vmem:[#allocation41_spill] sm:$0xff]  ;;  %v3311_v26 = vpop.eup %3310 }
 0x465   : > { %v1183_v22 = vsub.f32 %v5332_v9, %v4549_v32 }
 0x466   : > { %2728 = vst.msk [vmem:[%s4063_s7 + $0xd8] sm:$0xff] %vm2700_vm3, %v2599_v35  ;;  %v1446_v35 = vmul.f32 %v4042_v23, %v1315_v13 }
 0x467   : > { %v1312_v43 = vmul.f32 %v1183_v22, %v1183_v22 }
 0x469   : > { %2055 = vperm.xlu2 %3122, %v4168_v38   ;;  %2049 = vperm.xlu1 %3121, %v4168_v38  }
 0x46b   : > { %v1941_v42 = vpop.permute.xlu1 %1940 }
 0x46c   : > { %v2595_v31 = vmul.f32 %v3303_v39, %v1941_v42  ;;  %v1608_v39 = vmul.f32 1.442695, %v1446_v35  ;;  %v1443_v42 = vmul.f32 %v4042_v23, %v1312_v43 }
 0x46e   : > { %2724 = vst.msk [vmem:[%s4063_s7 + $0xb8] sm:$0xff] %vm2700_vm3, %v2595_v31  ;;  %3312 = vpow2.f32 %v1608_v39  ;;  %v5333_v31 = vld [vmem:[#allocation21_spill] sm:$0xff]  ;;  %v1602_v25 = vmul.f32 1.442695, %v1443_v42  ;;  %v5338_v42 = vld [vmem:[#allocation22_spill] sm:$0xff] }
 0x46f   : > { %v1189_v60 = vsub.f32 %v5333_v31, %v4549_v32  ;;  %v1194_v31 = vsub.f32 %v5338_v42, %v4549_v32 }
 0x470   : > { %3314 = vpow2.f32 %v1602_v25 }
 0x471   : > { %3124 = vset.pattern.permute.xlu2 %v3703_v10  ;;  %3123 = vset.pattern.permute.xlu1 %v3795_v12  ;;  %v1318_v17 = vmul.f32 %v1189_v60, %v1189_v60  ;;  %v1323_v25 = vmul.f32 %v1194_v31, %v1194_v31 }
 0x473   : > { %v1977_v47 = vpop.permute.xlu2 %1976 }
 0x474   : > { %v2601_v40 = vmul.f32 %v3305_v30, %v1977_v47  ;;  %v3313_v59 = vpop.eup %3312  ;;  %v1449_v47 = vmul.f32 %v4042_v23, %v1318_v17 }
 0x476   : > { %2730 = vst.msk [vmem:[%s4063_s7 + $0xe8] sm:$0xff] %vm2700_vm3, %v2601_v40  ;;  %v1614_v50 = vmul.f32 1.442695, %v1449_v47  ;;  %v3315_v15 = vpop.eup %3314 }
 0x478   : > { %3316 = vpow2.f32 %v1614_v50 }
 0x479   : > { %2067 = vperm.xlu2 %3124, %v4168_v38   ;;  %2061 = vperm.xlu1 %3123, %v4168_v38  }
 0x47b   : > { %v1959_v51 = vpop.permute.xlu1 %1958 }
 0x47c   : > { %v2598_v45 = vmul.f32 %v3307_v28, %v1959_v51 }
 0x47e   : > { %2727 = vst.msk [vmem:[%s4063_s7 + $0xd0] sm:$0xff] %vm2700_vm3, %v2598_v45  ;;  %v5336_v45 = vld [vmem:[#allocation45_spill] sm:$0xff]  ;;  %v3317_v13 = vpop.eup %3316 }
 0x47f   : > { %v1191_v16 = vsub.f32 %v5336_v45, %v4549_v32 }
 0x481   : > { %3126 = vset.pattern.permute.xlu2 %v3812_v33  ;;  %3125 = vset.pattern.permute.xlu1 %v3815_v11  ;;  %v1320_v44 = vmul.f32 %v1191_v16, %v1191_v16 }
 0x483   : > { %v1996_v19 = vpop.permute.xlu2 %1995  ;;  %v1451_v22 = vmul.f32 %v4042_v23, %v1320_v44 }
 0x484   : > { %v2604_v8 = vmul.f32 %v3309_v14, %v1996_v19 }
 0x485   : > { %v1618_v43 = vmul.f32 1.442695, %v1451_v22 }
 0x486   : > { %2733 = vst.msk [vmem:[%s4063_s7 + $0x100] sm:$0xff] %vm2700_vm3, %v2604_v8  ;;  %v5337_v8 = vld [vmem:[#allocation43_spill] sm:$0xff] }
 0x487   : > { %v1188_v9 = vsub.f32 %v5337_v8, %v4549_v32 }
 0x489   : > { %2085 = vperm.xlu2 %3126, %v4168_v38   ;;  %2079 = vperm.xlu1 %3125, %v4168_v38   ;;  %v5334_v38 = vld [vmem:[#allocation15_spill] sm:$0xff] }
 0x48a   : > { %v1185_v30 = vsub.f32 %v5334_v38, %v4549_v32 }
 0x48b   : > { %v1971_v52 = vpop.permute.xlu1 %1970 }
 0x48c   : > { %v2600_v18 = vmul.f32 %v3311_v26, %v1971_v52  ;;  %v1314_v40 = vmul.f32 %v1185_v30, %v1185_v30  ;;  %v1317_v26 = vmul.f32 %v1188_v9, %v1188_v9 }
 0x48e   : > { %2729 = vst.msk [vmem:[%s4063_s7 + $0xe0] sm:$0xff] %vm2700_vm3, %v2600_v18  ;;  %v1445_v28 = vmul.f32 %v4042_v23, %v1314_v40  ;;  %v1448_v18 = vmul.f32 %v4042_v23, %v1317_v26 }
 0x490   : > { %v1606_v37 = vmul.f32 1.442695, %v1445_v28  ;;  %v1612_v60 = vmul.f32 1.442695, %v1448_v18  ;;  %v5342_v18 = vld [vmem:[#allocation24_spill] sm:$0xff] }
 0x491   : > { %3128 = vset.pattern.permute.xlu2 %v3825_v21  ;;  %3127 = vset.pattern.permute.xlu1 %v3685_v1  ;;  %v1199_v42 = vsub.f32 %v5342_v18, %v4549_v32 }
 0x492   : > { %3318 = vpow2.f32 %v1606_v37 }
 0x493   : > { %v2008_v41 = vpop.permute.xlu2 %2007  ;;  %3320 = vpow2.f32 %v1618_v43 }
 0x494   : > { %v2606_v62 = vmul.f32 %v3313_v59, %v2008_v41  ;;  %v5339_v59 = vld [vmem:[#allocation17_spill] sm:$0xff]  ;;  %3322 = vpow2.f32 %v1612_v60  ;;  %v1328_v60 = vmul.f32 %v1199_v42, %v1199_v42 }
 0x495   : > { %v1190_v38 = vsub.f32 %v5339_v59, %v4549_v32 }
 0x496   : > { %2735 = vst.msk [vmem:[%s4063_s7 + $0x110] sm:$0xff] %vm2700_vm3, %v2606_v62  ;;  %v1454_v62 = vmul.f32 %v4042_v23, %v1323_v25 }
 0x497   : > { %v1319_v47 = vmul.f32 %v1190_v38, %v1190_v38 }
 0x498   : > { %v3319_v35 = vpop.eup %3318  ;;  %v1624_v40 = vmul.f32 1.442695, %v1454_v62 }
 0x499   : > { %2098 = vperm.xlu2 %3128, %v5335_v53   ;;  %2092 = vperm.xlu1 %3127, %v5335_v53   ;;  %v3321_v17 = vpop.eup %3320 }
 0x49a   : > { %v3323_v50 = vpop.eup %3322  ;;  %3324 = vpow2.f32 %v1624_v40 }
 0x49b   : > { %v1989_v0 = vpop.permute.xlu1 %1988 }
 0x49c   : > { %v2603_v51 = vmul.f32 %v3315_v15, %v1989_v0  ;;  %v1450_v15 = vmul.f32 %v4042_v23, %v1319_v47 }
 0x49e   : > { %2732 = vst.msk [vmem:[%s4063_s7 + $0xf8] sm:$0xff] %vm2700_vm3, %v2603_v51  ;;  %v5340_v51 = vld [vmem:[#allocation48_spill] sm:$0xff]  ;;  %v1616_v16 = vmul.f32 1.442695, %v1450_v15 }
 0x49f   : > { %v1196_v45 = vsub.f32 %v5340_v51, %v4549_v32 }
 0x4a0   : > { %v3325_v44 = vpop.eup %3324  ;;  %3326 = vpow2.f32 %v1616_v16 }
 0x4a1   : > { %3130 = vset.pattern.permute.xlu2 %v3688_v2  ;;  %3129 = vset.pattern.permute.xlu1 %v3726_v34  ;;  %v1325_v37 = vmul.f32 %v1196_v45, %v1196_v45 }
 0x4a3   : > { %v2026_v14 = vpop.permute.xlu2 %2025  ;;  %v1456_v9 = vmul.f32 %v4042_v23, %v1325_v37 }
 0x4a4   : > { %v2609_v19 = vmul.f32 %v3317_v13, %v2026_v14 }
 0x4a5   : > { %v1628_v26 = vmul.f32 1.442695, %v1456_v9 }
 0x4a6   : > { %2738 = vst.msk [vmem:[%s4063_s7 + $0x128] sm:$0xff] %vm2700_vm3, %v2609_v19  ;;  %v5341_v19 = vld [vmem:[#allocation47_spill] sm:$0xff]  ;;  %v3327_v22 = vpop.eup %3326 }
 0x4a7   : > { %v1193_v8 = vsub.f32 %v5341_v19, %v4549_v32  ;;  %3328 = vpow2.f32 %v1628_v26 }
 0x4a9   : > { %2116 = vperm.xlu2 %3130, %v5335_v53   ;;  %2110 = vperm.xlu1 %3129, %v5335_v53  }
 0x4ab   : > { %v2002_v39 = vpop.permute.xlu1 %2001 }
 0x4ac   : > { %v2605_v52 = vmul.f32 %v3319_v35, %v2002_v39  ;;  %v1322_v35 = vmul.f32 %v1193_v8, %v1193_v8 }
 0x4ad   : > { %v3329_v25 = vpop.eup %3328 }
 0x4ae   : > { %2734 = vst.msk [vmem:[%s4063_s7 + $0x108] sm:$0xff] %vm2700_vm3, %v2605_v52  ;;  %v1453_v52 = vmul.f32 %v4042_v23, %v1322_v35 }
 0x4b0   : > { %v1622_v31 = vmul.f32 1.442695, %v1453_v52  ;;  %v5346_v52 = vld [vmem:[#allocation27_spill] sm:$0xff] }
 0x4b1   : > { %3132 = vset.pattern.permute.xlu2 %v3761_v24  ;;  %3131 = vset.pattern.permute.xlu1 %v3722_v29  ;;  %v1204_v18 = vsub.f32 %v5346_v52, %v4549_v32  ;;  %v5350_v52 = vld [vmem:[#allocation26_spill] sm:$0xff] }
 0x4b2   : > { %3330 = vpow2.f32 %v1622_v31 }
 0x4b3   : > { %v2038_v30 = vpop.permute.xlu2 %2037  ;;  %v1333_v31 = vmul.f32 %v1204_v18, %v1204_v18  ;;  %v1205_v18 = vsub.f32 %v5350_v52, %v4549_v32 }
 0x4b4   : > { %v2611_v41 = vmul.f32 %v3321_v17, %v2038_v30  ;;  %v5343_v17 = vld [vmem:[#allocation19_spill] sm:$0xff] }
 0x4b5   : > { %v1195_v59 = vsub.f32 %v5343_v17, %v4549_v32 }
 0x4b6   : > { %2740 = vst.msk [vmem:[%s4063_s7 + $0x138] sm:$0xff] %vm2700_vm3, %v2611_v41  ;;  %v1459_v41 = vmul.f32 %v4042_v23, %v1328_v60 }
 0x4b7   : > { %v1324_v62 = vmul.f32 %v1195_v59, %v1195_v59 }
 0x4b8   : > { %v1634_v47 = vmul.f32 1.442695, %v1459_v41  ;;  %v3331_v40 = vpop.eup %3330 }
 0x4b9   : > { %2128 = vperm.xlu2 %3132, %v5335_v53   ;;  %2122 = vperm.xlu1 %3131, %v5335_v53  }
 0x4ba   : > { %3332 = vpow2.f32 %v1634_v47  ;;  %v5348_v47 = vld [vmem:[#allocation9_spill] sm:$0xff] }
 0x4bb   : > { %v2020_v28 = vpop.permute.xlu1 %2019 }
 0x4bc   : > { %v2608_v0 = vmul.f32 %v3323_v50, %v2020_v28  ;;  %v1455_v50 = vmul.f32 %v4042_v23, %v1324_v62 }
 0x4be   : > { %2737 = vst.msk [vmem:[%s4063_s7 + $0x120] sm:$0xff] %vm2700_vm3, %v2608_v0  ;;  %v5344_v0 = vld [vmem:[#allocation50_spill] sm:$0xff]  ;;  %v1626_v45 = vmul.f32 1.442695, %v1455_v50 }
 0x4bf   : > { %v1201_v51 = vsub.f32 %v5344_v0, %v4549_v32  ;;  %v1206_v0 = vsub.f32 %v4376_v54, %v4549_v32 }
 0x4c0   : > { %v3333_v37 = vpop.eup %3332  ;;  %3334 = vpow2.f32 %v1626_v45 }
 0x4c1   : > { %3136 = vset.pattern.permute.xlu2 %v3786_v58  ;;  %3135 = vset.pattern.permute.xlu1 %v3851_v4  ;;  %v1330_v16 = vmul.f32 %v1201_v51, %v1201_v51  ;;  %v1335_v45 = vmul.f32 %v1206_v0, %v1206_v0 }
 0x4c3   : > { %v2056_v13 = vpop.permute.xlu2 %2055  ;;  %v1461_v8 = vmul.f32 %v4042_v23, %v1330_v16 }
 0x4c4   : > { %v2614_v14 = vmul.f32 %v3325_v44, %v2056_v13 }
 0x4c5   : > { %v1638_v35 = vmul.f32 1.442695, %v1461_v8 }
 0x4c6   : > { %2743 = vst.msk [vmem:[%s4063_s7 + $0x150] sm:$0xff] %vm2700_vm3, %v2614_v14  ;;  %v5345_v14 = vld [vmem:[#allocation49_spill] sm:$0xff]  ;;  %v3335_v9 = vpop.eup %3334 }
 0x4c7   : > { %v1198_v19 = vsub.f32 %v5345_v14, %v4549_v32  ;;  %3336 = vpow2.f32 %v1638_v35  ;;  %v5349_v35 = vld [vmem:[#allocation29_spill] sm:$0xff] }
 0x4c9   : > { %2146 = vperm.xlu2 %3136, %v5335_v53   ;;  %2140 = vperm.xlu1 %3135, %v5335_v53  }
 0x4cb   : > { %v2032_v43 = vpop.permute.xlu1 %2031 }
 0x4cc   : > { %v2610_v39 = vmul.f32 %v3327_v22, %v2032_v43  ;;  %v1327_v22 = vmul.f32 %v1198_v19, %v1198_v19 }
 0x4cd   : > { %v3337_v60 = vpop.eup %3336 }
 0x4ce   : > { %2739 = vst.msk [vmem:[%s4063_s7 + $0x130] sm:$0xff] %vm2700_vm3, %v2610_v39  ;;  %v1458_v39 = vmul.f32 %v4042_v23, %v1327_v22 }
 0x4d0   : > { %v1632_v42 = vmul.f32 1.442695, %v1458_v39 }
 0x4d1   : > { %3138 = vset.pattern.permute.xlu2 %v3795_v12  ;;  %3137 = vset.pattern.permute.xlu1 %v3783_v57 }
 0x4d2   : > { %3338 = vpow2.f32 %v1632_v42 }
 0x4d3   : > { %v2068_v38 = vpop.permute.xlu2 %2067 }
 0x4d4   : > { %v2616_v30 = vmul.f32 %v3329_v25, %v2068_v38  ;;  %v5347_v25 = vld [vmem:[#allocation23_spill] sm:$0xff] }
 0x4d5   : > { %v1200_v17 = vsub.f32 %v5347_v25, %v4549_v32  ;;  %v1334_v25 = vmul.f32 %v1205_v18, %v1205_v18 }
 0x4d6   : > { %2745 = vst.msk [vmem:[%s4063_s7 + $0x160] sm:$0xff] %vm2700_vm3, %v2616_v30  ;;  %v1464_v30 = vmul.f32 %v4042_v23, %v1333_v31 }
 0x4d7   : > { %v1329_v41 = vmul.f32 %v1200_v17, %v1200_v17 }
 0x4d8   : > { %v1644_v62 = vmul.f32 1.442695, %v1464_v30 }
 0x4d9   : > { %2158 = vperm.xlu2 %3138, %v5335_v53   ;;  %2152 = vperm.xlu1 %3137, %v5335_v53   ;;  %v1460_v50 = vmul.f32 %v4042_v23, %v1329_v41 }
 0x4da   : > { %3340 = vpow2.f32 %v1644_v62  ;;  %v1211_v62 = vsub.f32 %v4389_v48, %v4549_v32 }
 0x4db   : > { %v2050_v15 = vpop.permute.xlu1 %2049  ;;  %v1636_v51 = vmul.f32 1.442695, %v1460_v50 }
 0x4dc   : > { %v2613_v28 = vmul.f32 %v3331_v40, %v2050_v15  ;;  %v3339_v40 = vpop.eup %3338  ;;  %v1340_v50 = vmul.f32 %v1211_v62, %v1211_v62 }
 0x4dd   : > { %3342 = vpow2.f32 %v1636_v51  ;;  %v1208_v51 = vsub.f32 %v4382_v6, %v4549_v32 }
 0x4de   : > { %2742 = vst.msk [vmem:[%s4063_s7 + $0x148] sm:$0xff] %vm2700_vm3, %v2613_v28 }
 0x4e0   : > { %v3341_v16 = vpop.eup %3340 }
 0x4e1   : > { %3141 = vset.pattern.permute.xlu2 %v3815_v11  ;;  %3140 = vset.pattern.permute.xlu1 %v3872_v7 }
 0x4e3   : > { %v2086_v44 = vpop.permute.xlu2 %2085  ;;  %v3343_v54 = vpop.eup %3342 }
 0x4e4   : > { %v2619_v13 = vmul.f32 %v3333_v37, %v2086_v44  ;;  %v1203_v44 = vsub.f32 %v4370_v27, %v4549_v32  ;;  %v1209_v27 = vsub.f32 %v5349_v35, %v4549_v32 }
 0x4e6   : > { %2748 = vst.msk [vmem:[%s4063_s7 + $0x178] sm:$0xff] %vm2700_vm3, %v2619_v13  ;;  %v1466_v13 = vmul.f32 %v4042_v23, %v1335_v45  ;;  %v1332_v14 = vmul.f32 %v1203_v44, %v1203_v44  ;;  %v1471_v45 = vmul.f32 %v4042_v23, %v1340_v50 }
 0x4e8   : > { %v1648_v19 = vmul.f32 1.442695, %v1466_v13  ;;  %v1463_v22 = vmul.f32 %v4042_v23, %v1332_v14 }
 0x4e9   : > { %2176 = vperm.xlu2 %3141, %v5335_v53   ;;  %2170 = vperm.xlu1 %3140, %v5335_v53  }
 0x4ea   : > { %3344 = vpow2.f32 %v1648_v19 }
 0x4eb   : > { %v2062_v26 = vpop.permute.xlu1 %2061 }
 0x4ec   : > { %v2615_v43 = vmul.f32 %v3335_v9, %v2062_v26  ;;  %v1642_v26 = vmul.f32 1.442695, %v1463_v22 }
 0x4ee   : > { %2744 = vst.msk [vmem:[%s4063_s7 + $0x158] sm:$0xff] %vm2700_vm3, %v2615_v43  ;;  %v1338_v43 = vmul.f32 %v1209_v27, %v1209_v27  ;;  %3346 = vpow2.f32 %v1642_v26 }
 0x4f0   : > { %v3345_v39 = vpop.eup %3344 }
 0x4f1   : > { %3143 = vset.pattern.permute.xlu2 %v3685_v1  ;;  %3142 = vset.pattern.permute.xlu1 %v3812_v33 }
 0x4f3   : > { %v2099_v59 = vpop.permute.xlu2 %2098 }
 0x4f4   : > { %v2621_v38 = vmul.f32 %v3337_v60, %v2099_v59  ;;  %v1469_v60 = vmul.f32 %v4042_v23, %v1338_v43  ;;  %v3347_v59 = vpop.eup %3346 }
 0x4f6   : > { %2750 = vst.msk [vmem:[%s4063_s7 + $0x188] sm:$0xff] %vm2700_vm3, %v2621_v38  ;;  %v1654_v17 = vmul.f32 1.442695, %v1469_v60  ;;  %v1465_v38 = vmul.f32 %v4042_v23, %v1334_v25  ;;  %v1216_v60 = vsub.f32 %v4401_v56, %v4549_v32 }
 0x4f8   : > { %3348 = vpow2.f32 %v1654_v17  ;;  %v1345_v17 = vmul.f32 %v1216_v60, %v1216_v60 }
 0x4f9   : > { %2189 = vperm.xlu2 %3143, %v5348_v47   ;;  %2182 = vperm.xlu1 %3142, %v5335_v53  }
 0x4fa   : > { %v1476_v56 = vmul.f32 %v4042_v23, %v1345_v17 }
 0x4fb   : > { %v2080_v15 = vpop.permute.xlu1 %2079 }
 0x4fc   : > { %v2618_v28 = vmul.f32 %v3339_v40, %v2080_v15  ;;  %v1646_v40 = vmul.f32 1.442695, %v1465_v38  ;;  %v1668_v50 = vmul.f32 1.442695, %v1476_v56  ;;  %v5358_v56 = vld [vmem:[#allocation36_spill] sm:$0xff] }
 0x4fe   : > { %2747 = vst.msk [vmem:[%s4063_s7 + $0x170] sm:$0xff] %vm2700_vm3, %v2618_v28  ;;  %v3349_v15 = vpop.eup %3348  ;;  %3350 = vpow2.f32 %v1646_v40 }
 0x501   : > { %3146 = vset.pattern.permute.xlu2 %v3726_v34  ;;  %3145 = vset.pattern.permute.xlu1 %v3691_v3 }
 0x503   : > { %v2117_v53 = vpop.permute.xlu2 %2116 }
 0x504   : > { %v2624_v37 = vmul.f32 %v3341_v16, %v2117_v53  ;;  %v3351_v48 = vpop.eup %3350  ;;  %v1337_v16 = vmul.f32 %v1208_v51, %v1208_v51  ;;  %v1658_v53 = vmul.f32 1.442695, %v1471_v45  ;;  %v5353_v51 = vld [vmem:[#allocation34_spill] sm:$0xff] }
 0x506   : > { %2753 = vst.msk [vmem:[%s4063_s7 + $0x1a0] sm:$0xff] %vm2700_vm3, %v2624_v37  ;;  %v1468_v13 = vmul.f32 %v4042_v23, %v1337_v16  ;;  %3352 = vpow2.f32 %v1658_v53  ;;  %v5354_v53 = vld [vmem:[#allocation30_spill] sm:$0xff] }
 0x508   : > { %v1652_v14 = vmul.f32 1.442695, %v1468_v13 }
 0x509   : > { %2207 = vperm.xlu2 %3146, %v5348_v47   ;;  %2201 = vperm.xlu1 %3145, %v5348_v47  }
 0x50a   : > { %3354 = vpow2.f32 %v1652_v14 }
 0x50b   : > { %v2093_v8 = vpop.permute.xlu1 %2092 }
 0x50c   : > { %v2620_v9 = vmul.f32 %v3343_v54, %v2093_v8  ;;  %v5351_v54 = vld [vmem:[#allocation31_spill] sm:$0xff]  ;;  %v3353_v8 = vpop.eup %3352 }
 0x50d   : > { %v1214_v6 = vsub.f32 %v5351_v54, %v4549_v32 }
 0x50e   : > { %2749 = vst.msk [vmem:[%s4063_s7 + $0x180] sm:$0xff] %vm2700_vm3, %v2620_v9  ;;  %v5352_v9 = vld [vmem:[#allocation28_spill] sm:$0xff] }
 0x50f   : > { %v1343_v19 = vmul.f32 %v1214_v6, %v1214_v6  ;;  %v1210_v22 = vsub.f32 %v5352_v9, %v4549_v32 }
 0x510   : > { %v3355_v52 = vpop.eup %3354 }
 0x511   : > { %3148 = vset.pattern.permute.xlu2 %v3722_v29  ;;  %3147 = vset.pattern.permute.xlu1 %v3688_v2  ;;  %v1474_v26 = vmul.f32 %v4042_v23, %v1343_v19  ;;  %v1339_v43 = vmul.f32 %v1210_v22, %v1210_v22 }
 0x513   : > { %v2129_v42 = vpop.permute.xlu2 %2128  ;;  %v1470_v18 = vmul.f32 %v4042_v23, %v1339_v43 }
 0x514   : > { %v2626_v31 = vmul.f32 %v3345_v39, %v2129_v42  ;;  %v1664_v39 = vmul.f32 1.442695, %v1474_v26 }
 0x515   : > { %v1656_v25 = vmul.f32 1.442695, %v1470_v18  ;;  %v5356_v18 = vld [vmem:[#allocation54_spill] sm:$0xff] }
 0x516   : > { %2755 = vst.msk [vmem:[%s4063_s7 + $0x1b0] sm:$0xff] %vm2700_vm3, %v2626_v31  ;;  %3356 = vpow2.f32 %v1664_v39 }
 0x517   : > { %3358 = vpow2.f32 %v1656_v25 }
 0x518   : > { %3360 = vpow2.f32 %v1668_v50 }
 0x519   : > { %2219 = vperm.xlu2 %3148, %v5348_v47   ;;  %2213 = vperm.xlu1 %3147, %v5348_v47  }
 0x51b   : > { %v2111_v30 = vpop.permute.xlu1 %2110 }
 0x51c   : > { %v2623_v41 = vmul.f32 %v3347_v59, %v2111_v30  ;;  %v3357_v59 = vpop.eup %3356 }
 0x51d   : > { %v3359_v32 = vpop.eup %3358 }
 0x51e   : > { %2752 = vst.msk [vmem:[%s4063_s7 + $0x198] sm:$0xff] %vm2700_vm3, %v2623_v41  ;;  %v4879_v41 = vld [vmem:[#allocation4] ss:$0 sm:$0xff]  ;;  %v3361_v16 = vpop.eup %3360 }
 0x51f   : > { %v1213_v62 = vsub.f32 %v4395_v55, %v4879_v41  ;;  %v1219_v55 = vsub.f32 %v5353_v51, %v4879_v41 }
 0x521   : > { %3151 = vset.pattern.permute.xlu2 %v3851_v4  ;;  %3150 = vset.pattern.permute.xlu1 %v3741_v49  ;;  %v1342_v40 = vmul.f32 %v1213_v62, %v1213_v62 }
 0x523   : > { %v2147_v28 = vpop.permute.xlu2 %2146 }
 0x524   : > { %v2629_v0 = vmul.f32 %v3349_v15, %v2147_v28 }
 0x526   : > { %2758 = vst.msk [vmem:[%s4063_s7 + $0x1c8] sm:$0xff] %vm2700_vm3, %v2629_v0  ;;  %v1473_v0 = vmul.f32 %v4042_v23, %v1342_v40 }
 0x528   : > { %v1662_v45 = vmul.f32 1.442695, %v1473_v0 }
 0x529   : > { %2237 = vperm.xlu2 %3151, %v5348_v47   ;;  %2231 = vperm.xlu1 %3150, %v5348_v47  }
 0x52a   : > { %3362 = vpow2.f32 %v1662_v45 }
 0x52b   : > { %v2123_v37 = vpop.permute.xlu1 %2122 }
 0x52c   : > { %v2625_v44 = vmul.f32 %v3351_v48, %v2123_v37  ;;  %v1348_v48 = vmul.f32 %v1219_v55, %v1219_v55  ;;  %v1215_v37 = vsub.f32 %v5354_v53, %v4879_v41 }
 0x52e   : > { %2754 = vst.msk [vmem:[%s4063_s7 + $0x1a8] sm:$0xff] %vm2700_vm3, %v2625_v44  ;;  %v1479_v54 = vmul.f32 %v4042_v23, %v1348_v48  ;;  %v1344_v6 = vmul.f32 %v1215_v37, %v1215_v37 }
 0x530   : > { %v1674_v14 = vmul.f32 1.442695, %v1479_v54  ;;  %v3363_v19 = vpop.eup %3362  ;;  %v1226_v54 = vsub.f32 %v4424_v61, %v4879_v41 }
 0x531   : > { %3153 = vset.pattern.permute.xlu2 %v3783_v57  ;;  %3152 = vset.pattern.permute.xlu1 %v3786_v58 }
 0x532   : > { %3364 = vpow2.f32 %v1674_v14  ;;  %v1355_v14 = vmul.f32 %v1226_v54, %v1226_v54 }
 0x533   : > { %v2159_v35 = vpop.permute.xlu2 %2158 }
 0x534   : > { %v2631_v27 = vmul.f32 %v3353_v8, %v2159_v35  ;;  %v1475_v8 = vmul.f32 %v4042_v23, %v1344_v6  ;;  %v5355_v35 = vld [vmem:[#allocation55_spill] sm:$0xff] }
 0x536   : > { %2760 = vst.msk [vmem:[%s4063_s7 + $0x1d8] sm:$0xff] %vm2700_vm3, %v2631_v27  ;;  %v1221_v27 = vsub.f32 %v5355_v35, %v4879_v41  ;;  %v1666_v26 = vmul.f32 1.442695, %v1475_v8 }
 0x538   : > { %v1350_v43 = vmul.f32 %v1221_v27, %v1221_v27  ;;  %v3365_v39 = vpop.eup %3364  ;;  %3366 = vpow2.f32 %v1666_v26  ;;  %v1486_v27 = vmul.f32 %v4042_v23, %v1355_v14 }
 0x539   : > { %2249 = vperm.xlu2 %3153, %v5348_v47   ;;  %2243 = vperm.xlu1 %3152, %v5348_v47  }
 0x53b   : > { %v2141_v42 = vpop.permute.xlu1 %2140 }
 0x53c   : > { %v2628_v31 = vmul.f32 %v3355_v52, %v2141_v42  ;;  %v1218_v42 = vsub.f32 %v5356_v18, %v4879_v41  ;;  %v5361_v18 = vld [vmem:[#allocation38_spill] sm:$0xff] }
 0x53e   : > { %2757 = vst.msk [vmem:[%s4063_s7 + $0x1c0] sm:$0xff] %vm2700_vm3, %v2628_v31  ;;  %v1481_v31 = vmul.f32 %v4042_v23, %v1350_v43  ;;  %v3367_v60 = vpop.eup %3366  ;;  %v1347_v25 = vmul.f32 %v1218_v42, %v1218_v42  ;;  %v1688_v43 = vmul.f32 1.442695, %v1486_v27  ;;  %v1229_v42 = vsub.f32 %v5361_v18, %v4879_v41 }
 0x540   : > { %v1678_v17 = vmul.f32 1.442695, %v1481_v31  ;;  %v1478_v62 = vmul.f32 %v4042_v23, %v1347_v25 }
 0x541   : > { %3156 = vset.pattern.permute.xlu2 %v3872_v7  ;;  %3155 = vset.pattern.permute.xlu1 %v3703_v10 }
 0x542   : > { %3368 = vpow2.f32 %v1678_v17  ;;  %v1672_v40 = vmul.f32 1.442695, %v1478_v62  ;;  %v5362_v17 = vld [vmem:[#allocation35_spill] sm:$0xff] }
 0x543   : > { %v2177_v38 = vpop.permute.xlu2 %2176 }
 0x544   : > { %v2634_v30 = vmul.f32 %v3357_v59, %v2177_v38  ;;  %v5357_v59 = vld [vmem:[#allocation14_spill] sm:$0xff]  ;;  %3370 = vpow2.f32 %v1672_v40 }
 0x546   : > { %2763 = vst.msk [vmem:[%s4063_s7 + $0x1f0] sm:$0xff] %vm2700_vm3, %v2634_v30 }
 0x549   : > { %2267 = vperm.xlu2 %3156, %v5348_v47   ;;  %2261 = vperm.xlu1 %3155, %v5348_v47  }
 0x54b   : > { %v2153_v15 = vpop.permute.xlu1 %2152 }
 0x54c   : > { %v2630_v28 = vmul.f32 %v3359_v32, %v2153_v15  ;;  %v1224_v32 = vsub.f32 %v5358_v56, %v4879_v41  ;;  %v3369_v15 = vpop.eup %3368 }
 0x54d   : > { %v3371_v53 = vpop.eup %3370 }
 0x54e   : > { %2759 = vst.msk [vmem:[%s4063_s7 + $0x1d0] sm:$0xff] %vm2700_vm3, %v2630_v28  ;;  %v1353_v50 = vmul.f32 %v1224_v32, %v1224_v32  ;;  %v5359_v28 = vld [vmem:[#allocation33_spill] sm:$0xff] }
 0x54f   : > { %v1220_v0 = vsub.f32 %v5359_v28, %v4879_v41 }
 0x550   : > { %v1484_v45 = vmul.f32 %v4042_v23, %v1353_v50 }
 0x551   : > { %3158 = vset.pattern.permute.xlu2 %v3812_v33  ;;  %3157 = vset.pattern.permute.xlu1 %v3815_v11  ;;  %v1349_v48 = vmul.f32 %v1220_v0, %v1220_v0 }
 0x553   : > { %v2190_v44 = vpop.permute.xlu2 %2189  ;;  %v1480_v37 = vmul.f32 %v4042_v23, %v1349_v48 }
 0x554   : > { %v2636_v13 = vmul.f32 %v3361_v16, %v2190_v44  ;;  %v1684_v16 = vmul.f32 1.442695, %v1484_v45 }
 0x555   : > { %v1676_v6 = vmul.f32 1.442695, %v1480_v37 }
 0x556   : > { %2765 = vst.msk [vmem:[%s4063_s7 + $0x200] sm:$0xff] %vm2700_vm3, %v2636_v13  ;;  %3372 = vpow2.f32 %v1684_v16 }
 0x557   : > { %3374 = vpow2.f32 %v1676_v6 }
 0x558   : > { %3376 = vpow2.f32 %v1688_v43 }
 0x559   : > { %2279 = vperm.xlu2 %3158, %v5348_v47   ;;  %2273 = vperm.xlu1 %3157, %v5348_v47  }
 0x55b   : > { %v2171_v9 = vpop.permute.xlu1 %2170 }
 0x55c   : > { %v2633_v22 = vmul.f32 %v3363_v19, %v2171_v9  ;;  %v3373_v19 = vpop.eup %3372 }
 0x55d   : > { %v3375_v61 = vpop.eup %3374 }
 0x55e   : > { %2762 = vst.msk [vmem:[%s4063_s7 + $0x1e8] sm:$0xff] %vm2700_vm3, %v2633_v22  ;;  %v5360_v22 = vld [vmem:[#allocation57_spill] sm:$0xff]  ;;  %v3377_v25 = vpop.eup %3376 }
 0x55f   : > { %v1223_v35 = vsub.f32 %v5360_v22, %v4879_v41 }
 0x561   : > { %3161 = vset.pattern.permute.xlu2 %v3691_v3  ;;  %3160 = vset.pattern.permute.xlu1 %v3825_v21  ;;  %v1352_v26 = vmul.f32 %v1223_v35, %v1223_v35  ;;  %v5365_v35 = vld [vmem:[#allocation40_spill] sm:$0xff] }
 0x562   : > { %v1234_v27 = vsub.f32 %v5365_v35, %v4879_v41 }
 0x563   : > { %v2208_v47 = vpop.permute.xlu2 %2207 }
 0x564   : > { %v2639_v52 = vmul.f32 %v3365_v39, %v2208_v47 }
 0x566   : > { %2768 = vst.msk [vmem:[%s4063_s7 + $0x218] sm:$0xff] %vm2700_vm3, %v2639_v52  ;;  %v1483_v52 = vmul.f32 %v4042_v23, %v1352_v26  ;;  %v1363_v26 = vmul.f32 %v1234_v27, %v1234_v27 }
 0x568   : > { %v1682_v31 = vmul.f32 1.442695, %v1483_v52 }
 0x569   : > { %2298 = vperm.xlu2 %3161, %v5357_v59   ;;  %2292 = vperm.xlu1 %3160, %v5357_v59  }
 0x56a   : > { %3378 = vpow2.f32 %v1682_v31 }
 0x56b   : > { %v2183_v38 = vpop.permute.xlu1 %2182 }
 0x56c   : > { %v2635_v30 = vmul.f32 %v3367_v60, %v2183_v38  ;;  %v1358_v60 = vmul.f32 %v1229_v42, %v1229_v42  ;;  %v1225_v38 = vsub.f32 %v5362_v17, %v4879_v41  ;;  %v1494_v42 = vmul.f32 %v4042_v23, %v1363_v26 }
 0x56e   : > { %2764 = vst.msk [vmem:[%s4063_s7 + $0x1f8] sm:$0xff] %vm2700_vm3, %v2635_v30  ;;  %v1489_v56 = vmul.f32 %v4042_v23, %v1358_v60  ;;  %v1354_v32 = vmul.f32 %v1225_v38, %v1225_v38  ;;  %v1704_v60 = vmul.f32 1.442695, %v1494_v42 }
 0x570   : > { %v1694_v40 = vmul.f32 1.442695, %v1489_v56  ;;  %v3379_v50 = vpop.eup %3378 }
 0x571   : > { %3163 = vset.pattern.permute.xlu2 %v3688_v2  ;;  %3162 = vset.pattern.permute.xlu1 %v3726_v34 }
 0x572   : > { %3380 = vpow2.f32 %v1694_v40 }
 0x573   : > { %v2220_v51 = vpop.permute.xlu2 %2219 }
 0x574   : > { %v2641_v55 = vmul.f32 %v3369_v15, %v2220_v51  ;;  %v1485_v15 = vmul.f32 %v4042_v23, %v1354_v32  ;;  %v5363_v51 = vld [vmem:[#allocation59_spill] sm:$0xff] }
 0x576   : > { %2770 = vst.msk [vmem:[%s4063_s7 + $0x228] sm:$0xff] %vm2700_vm3, %v2641_v55  ;;  %v1231_v55 = vsub.f32 %v5363_v51, %v4879_v41  ;;  %v1686_v45 = vmul.f32 1.442695, %v1485_v15  ;;  %v5367_v15 = vld [vmem:[#allocation61_spill] sm:$0xff] }
 0x578   : > { %v1360_v48 = vmul.f32 %v1231_v55, %v1231_v55  ;;  %v3381_v16 = vpop.eup %3380  ;;  %3382 = vpow2.f32 %v1686_v45  ;;  %v5368_v45 = vld [vmem:[#allocation25_spill] sm:$0xff] }
 0x579   : > { %2310 = vperm.xlu2 %3163, %v5357_v59   ;;  %2304 = vperm.xlu1 %3162, %v5357_v59  }
 0x57a   : > { %v1491_v54 = vmul.f32 %v4042_v23, %v1360_v48 }
 0x57b   : > { %v2202_v44 = vpop.permute.xlu1 %2201 }
 0x57c   : > { %v2638_v13 = vmul.f32 %v3371_v53, %v2202_v44  ;;  %v5364_v44 = vld [vmem:[#allocation58_spill] sm:$0xff] }
 0x57e   : > { %2767 = vst.msk [vmem:[%s4063_s7 + $0x210] sm:$0xff] %vm2700_vm3, %v2638_v13  ;;  %v1228_v13 = vsub.f32 %v5364_v44, %v4879_v41  ;;  %v3383_v6 = vpop.eup %3382 }
 0x580   : > { %v1357_v14 = vmul.f32 %v1228_v13, %v1228_v13 }
 0x581   : > { %3166 = vset.pattern.permute.xlu2 %v3741_v49  ;;  %3165 = vset.pattern.permute.xlu1 %v3761_v24 }
 0x582   : > { %v1488_v22 = vmul.f32 %v4042_v23, %v1357_v14  ;;  %v5370_v14 = vld [vmem:[#allocation39_spill] sm:$0xff] }
 0x583   : > { %v2238_v8 = vpop.permute.xlu2 %2237 }
 0x584   : > { %v2644_v9 = vmul.f32 %v3373_v19, %v2238_v8  ;;  %v1698_v19 = vmul.f32 1.442695, %v1491_v54 }
 0x586   : > { %2773 = vst.msk [vmem:[%s4063_s7 + $0x240] sm:$0xff] %vm2700_vm3, %v2644_v9  ;;  %3384 = vpow2.f32 %v1698_v19  ;;  %v1235_v19 = vsub.f32 %v5370_v14, %v4879_v41 }
 0x588   : > { %v1364_v35 = vmul.f32 %v1235_v19, %v1235_v19 }
 0x589   : > { %2328 = vperm.xlu2 %3166, %v5357_v59   ;;  %2322 = vperm.xlu1 %3165, %v5357_v59  }
 0x58b   : > { %v2214_v39 = vpop.permute.xlu1 %2213 }
 0x58c   : > { %v2640_v47 = vmul.f32 %v3375_v61, %v2214_v39  ;;  %v1692_v61 = vmul.f32 1.442695, %v1488_v22  ;;  %v3385_v43 = vpop.eup %3384  ;;  %v5366_v39 = vld [vmem:[#allocation37_spill] sm:$0xff] }
 0x58e   : > { %2769 = vst.msk [vmem:[%s4063_s7 + $0x220] sm:$0xff] %vm2700_vm3, %v2640_v47  ;;  %v1230_v47 = vsub.f32 %v5366_v39, %v4879_v41  ;;  %3386 = vpow2.f32 %v1692_v61  ;;  %v1495_v61 = vmul.f32 %v4042_v23, %v1364_v35  ;;  %v1241_v39 = vsub.f32 %v4458_v36, %v4879_v41  ;;  %v5375_v35 = vld [vmem:[#allocation64_spill] sm:$0xff] }
 0x58f   : > { %3388 = vpow2.f32 %v1704_v60  ;;  %v5371_v60 = vld [vmem:[#allocation62_spill] sm:$0xff] }
 0x590   : > { %v1359_v31 = vmul.f32 %v1230_v47, %v1230_v47  ;;  %v1706_v47 = vmul.f32 1.442695, %v1495_v61 }
 0x591   : > { %3168 = vset.pattern.permute.xlu2 %v3786_v58  ;;  %3167 = vset.pattern.permute.xlu1 %v3851_v4 }
 0x592   : > { %v1490_v17 = vmul.f32 %v4042_v23, %v1359_v31 }
 0x593   : > { %v2250_v30 = vpop.permute.xlu2 %2249 }
 0x594   : > { %v2646_v62 = vmul.f32 %v3377_v25, %v2250_v30  ;;  %v3387_v25 = vpop.eup %3386  ;;  %v1696_v56 = vmul.f32 1.442695, %v1490_v17 }
 0x595   : > { %v3389_v40 = vpop.eup %3388 }
 0x596   : > { %2775 = vst.msk [vmem:[%s4063_s7 + $0x250] sm:$0xff] %vm2700_vm3, %v2646_v62  ;;  %v1236_v62 = vsub.f32 %v4447_v63, %v4879_v41  ;;  %3390 = vpow2.f32 %v1696_v56 }
 0x598   : > { %v1365_v32 = vmul.f32 %v1236_v62, %v1236_v62 }
 0x599   : > { %2340 = vperm.xlu2 %3168, %v5357_v59   ;;  %2334 = vperm.xlu1 %3167, %v5357_v59  }
 0x59b   : > { %v2232_v28 = vpop.permute.xlu1 %2231 }
 0x59c   : > { %v2643_v0 = vmul.f32 %v3379_v50, %v2232_v28  ;;  %v1233_v28 = vsub.f32 %v5367_v15, %v4879_v41  ;;  %v3391_v63 = vpop.eup %3390 }
 0x59e   : > { %2772 = vst.msk [vmem:[%s4063_s7 + $0x238] sm:$0xff] %vm2700_vm3, %v2643_v0  ;;  %v1496_v0 = vmul.f32 %v4042_v23, %v1365_v32  ;;  %v1362_v51 = vmul.f32 %v1233_v28, %v1233_v28 }
 0x5a0   : > { %v1708_v55 = vmul.f32 1.442695, %v1496_v0  ;;  %v5373_v0 = vld [vmem:[#allocation44_spill] sm:$0xff] }
 0x5a1   : > { %3171 = vset.pattern.permute.xlu2 %v3703_v10  ;;  %3170 = vset.pattern.permute.xlu1 %v3795_v12 }
 0x5a2   : > { %3392 = vpow2.f32 %v1708_v55 }
 0x5a3   : > { %v2268_v53 = vpop.permute.xlu2 %2267 }
 0x5a4   : > { %v2649_v37 = vmul.f32 %v3381_v16, %v2268_v53  ;;  %v1493_v53 = vmul.f32 %v4042_v23, %v1362_v51 }
 0x5a6   : > { %2778 = vst.msk [vmem:[%s4063_s7 + $0x268] sm:$0xff] %vm2700_vm3, %v2649_v37  ;;  %v5369_v37 = vld [vmem:[#allocation46_spill] sm:$0xff]  ;;  %v1702_v13 = vmul.f32 1.442695, %v1493_v53 }
 0x5a7   : > { %v1239_v44 = vsub.f32 %v5369_v37, %v4879_v41 }
 0x5a8   : > { %3394 = vpow2.f32 %v1702_v13 }
 0x5a9   : > { %2358 = vperm.xlu2 %3171, %v5357_v59   ;;  %2352 = vperm.xlu1 %3170, %v5357_v59   ;;  %v1368_v54 = vmul.f32 %v1239_v44, %v1239_v44 }
 0x5ab   : > { %v2244_v8 = vpop.permute.xlu1 %2243  ;;  %v1499_v22 = vmul.f32 %v4042_v23, %v1368_v54  ;;  %v5374_v54 = vld [vmem:[#allocation65_spill] sm:$0xff] }
 0x5ac   : > { %v2645_v9 = vmul.f32 %v3383_v6, %v2244_v8  ;;  %v3393_v6 = vpop.eup %3392 }
 0x5ad   : > { %v1714_v27 = vmul.f32 1.442695, %v1499_v22 }
 0x5ae   : > { %2774 = vst.msk [vmem:[%s4063_s7 + $0x248] sm:$0xff] %vm2700_vm3, %v2645_v9 }
 0x5af   : > { %3396 = vpow2.f32 %v1714_v27  ;;  %v1243_v27 = vsub.f32 %v5375_v35, %v4879_v41 }
 0x5b0   : > { %3398 = vpow2.f32 %v1706_v47 }
 0x5b1   : > { %3173 = vset.pattern.permute.xlu2 %v3815_v11  ;;  %3172 = vset.pattern.permute.xlu1 %v3872_v7 }
 0x5b3   : > { %v2280_v52 = vpop.permute.xlu2 %2279 }
 0x5b4   : > { %v2651_v18 = vmul.f32 %v3385_v43, %v2280_v52  ;;  %v1370_v52 = vmul.f32 %v1241_v39, %v1241_v39 }
 0x5b6   : > { %2780 = vst.msk [vmem:[%s4063_s7 + $0x278] sm:$0xff] %vm2700_vm3, %v2651_v18  ;;  %v1501_v17 = vmul.f32 %v4042_v23, %v1370_v52 }
 0x5b9   : > { %2370 = vperm.xlu2 %3173, %v5357_v59   ;;  %2364 = vperm.xlu1 %3172, %v5357_v59  }
 0x5bb   : > { %v2262_v38 = vpop.permute.xlu1 %2261 }
 0x5bc   : > { %v2648_v30 = vmul.f32 %v3387_v25, %v2262_v38  ;;  %v1238_v25 = vsub.f32 %v5371_v60, %v4879_v41 }
 0x5be   : > { %2777 = vst.msk [vmem:[%s4063_s7 + $0x260] sm:$0xff] %vm2700_vm3, %v2648_v30  ;;  %v1367_v38 = vmul.f32 %v1238_v25, %v1238_v25  ;;  %v1718_v30 = vmul.f32 1.442695, %v1501_v17  ;;  %v5377_v17 = vld [vmem:[#allocation52_spill] sm:$0xff] }
 0x5c0   : > { %v1498_v32 = vmul.f32 %v4042_v23, %v1367_v38  ;;  %3400 = vpow2.f32 %v1718_v30 }
 0x5c1   : > { %3176 = vset.pattern.permute.xlu2 %v3825_v21  ;;  %3175 = vset.pattern.permute.xlu1 %v3685_v1 }
 0x5c3   : > { %v2299_v59 = vpop.permute.xlu2 %2298 }
 0x5c4   : > { %v2654_v50 = vmul.f32 %v3389_v40, %v2299_v59  ;;  %v5372_v40 = vld [vmem:[#allocation51_spill] sm:$0xff] }
 0x5c5   : > { %v1244_v59 = vsub.f32 %v5372_v40, %v4879_v41 }
 0x5c6   : > { %2783 = vst.msk [vmem:[%s4063_s7 + $0x290] sm:$0xff] %vm2700_vm3, %v2654_v50  ;;  %v1712_v50 = vmul.f32 1.442695, %v1498_v32 }
 0x5c7   : > { %v1373_v15 = vmul.f32 %v1244_v59, %v1244_v59 }
 0x5c8   : > { %3402 = vpow2.f32 %v1712_v50 }
 0x5c9   : > { %2389 = vperm.xlu2 %3176, %v5368_v45   ;;  %2383 = vperm.xlu1 %3175, %v5368_v45  }
 0x5cb   : > { %v2274_v48 = vpop.permute.xlu1 %2273 }
 0x5cc   : > { %v2650_v16 = vmul.f32 %v3391_v63, %v2274_v48  ;;  %v1240_v63 = vsub.f32 %v5373_v0, %v4879_v41  ;;  %v1504_v48 = vmul.f32 %v4042_v23, %v1373_v15  ;;  %v5378_v15 = vld [vmem:[#allocation67_spill] sm:$0xff] }
 0x5ce   : > { %2779 = vst.msk [vmem:[%s4063_s7 + $0x270] sm:$0xff] %vm2700_vm3, %v2650_v16  ;;  %v1369_v16 = vmul.f32 %v1240_v63, %v1240_v63  ;;  %v1724_v53 = vmul.f32 1.442695, %v1504_v48 }
 0x5d0   : > { %v1500_v37 = vmul.f32 %v4042_v23, %v1369_v16  ;;  %3404 = vpow2.f32 %v1724_v53  ;;  %v5379_v16 = vld [vmem:[#allocation66_spill] sm:$0xff] }
 0x5d1   : > { %3178 = vset.pattern.permute.xlu2 %v3726_v34  ;;  %3177 = vset.pattern.permute.xlu1 %v3691_v3  ;;  %v3395_v34 = vpop.eup %3394  ;;  %v1248_v53 = vsub.f32 %v5379_v16, %v4879_v41 }
 0x5d2   : > { %v3397_v18 = vpop.eup %3396  ;;  %v1716_v14 = vmul.f32 1.442695, %v1500_v37 }
 0x5d3   : > { %v2311_v8 = vpop.permute.xlu2 %2310  ;;  %v3399_v36 = vpop.eup %3398 }
 0x5d4   : > { %v2656_v9 = vmul.f32 %v3393_v6, %v2311_v8  ;;  %v3401_v28 = vpop.eup %3400  ;;  %v1246_v6 = vsub.f32 %v5374_v54, %v4879_v41  ;;  %3406 = vpow2.f32 %v1716_v14  ;;  %v5380_v54 = vld [vmem:[#allocation32_spill] sm:$0xff] }
 0x5d6   : > { %2785 = vst.msk [vmem:[%s4063_s7 + $0x2a0] sm:$0xff] %vm2700_vm3, %v2656_v9  ;;  %v1375_v19 = vmul.f32 %v1246_v6, %v1246_v6 }
 0x5d9   : > { %2401 = vperm.xlu2 %3178, %v5368_v45   ;;  %2395 = vperm.xlu1 %3177, %v5368_v45  }
 0x5db   : > { %v2293_v26 = vpop.permute.xlu1 %2292 }
 0x5dc   : > { %v2653_v43 = vmul.f32 %v3395_v34, %v2293_v26  ;;  %v1506_v34 = vmul.f32 %v4042_v23, %v1375_v19  ;;  %v1372_v26 = vmul.f32 %v1243_v27, %v1243_v27  ;;  %v5381_v19 = vld [vmem:[#allocation56_spill] sm:$0xff] }
 0x5de   : > { %2782 = vst.msk [vmem:[%s4063_s7 + $0x288] sm:$0xff] %vm2700_vm3, %v2653_v43  ;;  %v1728_v43 = vmul.f32 1.442695, %v1506_v34  ;;  %v1503_v52 = vmul.f32 %v4042_v23, %v1372_v26  ;;  %v5382_v34 = vld [vmem:[#allocation12_spill] sm:$0xff] }
 0x5e0   : > { %3408 = vpow2.f32 %v1728_v43 }
 0x5e1   : > { %3181 = vset.pattern.permute.xlu2 %v3761_v24  ;;  %3180 = vset.pattern.permute.xlu1 %v3722_v29 }
 0x5e3   : > { %v2329_v42 = vpop.permute.xlu2 %2328 }
 0x5e4   : > { %v2659_v31 = vmul.f32 %v3397_v18, %v2329_v42  ;;  %v5376_v18 = vld [vmem:[#allocation53_spill] sm:$0xff] }
 0x5e5   : > { %v1249_v42 = vsub.f32 %v5376_v18, %v4879_v41  ;;  %v5383_v18 = vld [vmem:[#allocation70_spill] sm:$0xff] }
 0x5e6   : > { %2788 = vst.msk [vmem:[%s4063_s7 + $0x2b8] sm:$0xff] %vm2700_vm3, %v2659_v31  ;;  %v1722_v31 = vmul.f32 1.442695, %v1503_v52 }
 0x5e7   : > { %v1378_v60 = vmul.f32 %v1249_v42, %v1249_v42  ;;  %v1256_v42 = vsub.f32 %v5383_v18, %v4879_v41 }
 0x5e8   : > { %3410 = vpow2.f32 %v1722_v31 }
 0x5e9   : > { %2419 = vperm.xlu2 %3181, %v5368_v45   ;;  %2413 = vperm.xlu1 %3180, %v5368_v45  }
 0x5eb   : > { %v2305_v62 = vpop.permute.xlu1 %2304 }
 0x5ec   : > { %v2655_v56 = vmul.f32 %v3399_v36, %v2305_v62  ;;  %v1245_v36 = vsub.f32 %v5377_v17, %v4879_v41  ;;  %v1509_v62 = vmul.f32 %v4042_v23, %v1378_v60  ;;  %v1385_v60 = vmul.f32 %v1256_v42, %v1256_v42  ;;  %v5390_v42 = vld [vmem:[#allocation13_spill] sm:$0xff] }
 0x5ee   : > { %2784 = vst.msk [vmem:[%s4063_s7 + $0x298] sm:$0xff] %vm2700_vm3, %v2655_v56  ;;  %v1374_v56 = vmul.f32 %v1245_v36, %v1245_v36  ;;  %v1734_v32 = vmul.f32 1.442695, %v1509_v62  ;;  %v1516_v62 = vmul.f32 %v4042_v23, %v1385_v60 }
 0x5f0   : > { %v1505_v40 = vmul.f32 %v4042_v23, %v1374_v56  ;;  %3412 = vpow2.f32 %v1734_v32  ;;  %v1748_v32 = vmul.f32 1.442695, %v1516_v62 }
 0x5f1   : > { %3183 = vset.pattern.permute.xlu2 %v3851_v4  ;;  %3182 = vset.pattern.permute.xlu1 %v3741_v49  ;;  %v3403_v4 = vpop.eup %3402 }
 0x5f2   : > { %v3405_v8 = vpop.eup %3404  ;;  %v1726_v0 = vmul.f32 1.442695, %v1505_v40 }
 0x5f3   : > { %v2341_v51 = vpop.permute.xlu2 %2340  ;;  %v3407_v61 = vpop.eup %3406 }
 0x5f4   : > { %v2661_v55 = vmul.f32 %v3401_v28, %v2341_v51  ;;  %v3409_v25 = vpop.eup %3408  ;;  %v1251_v28 = vsub.f32 %v5378_v15, %v4879_v41  ;;  %3414 = vpow2.f32 %v1726_v0 }
 0x5f6   : > { %2790 = vst.msk [vmem:[%s4063_s7 + $0x2c8] sm:$0xff] %vm2700_vm3, %v2661_v55  ;;  %v1380_v63 = vmul.f32 %v1251_v28, %v1251_v28 }
 0x5f9   : > { %2431 = vperm.xlu2 %3183, %v5368_v45   ;;  %2425 = vperm.xlu1 %3182, %v5368_v45  }
 0x5fb   : > { %v2323_v44 = vpop.permute.xlu1 %2322 }
 0x5fc   : > { %v2658_v13 = vmul.f32 %v3403_v4, %v2323_v44  ;;  %v1511_v4 = vmul.f32 %v4042_v23, %v1380_v63  ;;  %v1377_v44 = vmul.f32 %v1248_v53, %v1248_v53 }
 0x5fe   : > { %2787 = vst.msk [vmem:[%s4063_s7 + $0x2b0] sm:$0xff] %vm2700_vm3, %v2658_v13  ;;  %v1738_v13 = vmul.f32 1.442695, %v1511_v4  ;;  %v1508_v14 = vmul.f32 %v4042_v23, %v1377_v44 }
 0x600   : > { %3416 = vpow2.f32 %v1738_v13  ;;  %v5387_v13 = vld [vmem:[#allocation73_spill] sm:$0xff] }
 0x601   : > { %3186 = vset.pattern.permute.xlu2 %v3795_v12  ;;  %3185 = vset.pattern.permute.xlu1 %v3783_v57 }
 0x603   : > { %v2359_v9 = vpop.permute.xlu2 %2358 }
 0x604   : > { %v2664_v22 = vmul.f32 %v3405_v8, %v2359_v9  ;;  %v1254_v8 = vsub.f32 %v5381_v19, %v4879_v41  ;;  %v1732_v9 = vmul.f32 1.442695, %v1508_v14 }
 0x606   : > { %2793 = vst.msk [vmem:[%s4063_s7 + $0x2e0] sm:$0xff] %vm2700_vm3, %v2664_v22  ;;  %v1383_v22 = vmul.f32 %v1254_v8, %v1254_v8  ;;  %3418 = vpow2.f32 %v1732_v9 }
 0x608   : > { %v1514_v26 = vmul.f32 %v4042_v23, %v1383_v22  ;;  %v5388_v22 = vld [vmem:[#allocation71_spill] sm:$0xff] }
 0x609   : > { %2449 = vperm.xlu2 %3186, %v5368_v45   ;;  %2443 = vperm.xlu1 %3185, %v5368_v45  }
 0x60b   : > { %v2335_v39 = vpop.permute.xlu1 %2334 }
 0x60c   : > { %v2660_v47 = vmul.f32 %v3407_v61, %v2335_v39  ;;  %v1250_v61 = vsub.f32 %v5382_v34, %v4879_v41  ;;  %v1744_v39 = vmul.f32 1.442695, %v1514_v26 }
 0x60e   : > { %2789 = vst.msk [vmem:[%s4063_s7 + $0x2c0] sm:$0xff] %vm2700_vm3, %v2660_v47  ;;  %v1379_v43 = vmul.f32 %v1250_v61, %v1250_v61  ;;  %3420 = vpow2.f32 %v1744_v39 }
 0x610   : > { %v1510_v52 = vmul.f32 %v4042_v23, %v1379_v43  ;;  %v5389_v43 = vld [vmem:[#allocation63_spill] sm:$0xff] }
 0x611   : > { %3188 = vset.pattern.permute.xlu2 %v3872_v7  ;;  %3187 = vset.pattern.permute.xlu1 %v3703_v10  ;;  %v3411_v7 = vpop.eup %3410  ;;  %v1264_v39 = vsub.f32 %v5389_v43, %v4879_v41 }
 0x612   : > { %v3413_v51 = vpop.eup %3412  ;;  %v1736_v31 = vmul.f32 1.442695, %v1510_v52 }
 0x613   : > { %v2371_v38 = vpop.permute.xlu2 %2370  ;;  %v3415_v37 = vpop.eup %3414 }
 0x614   : > { %v2666_v30 = vmul.f32 %v3409_v25, %v2371_v38  ;;  %v3417_v35 = vpop.eup %3416  ;;  %3422 = vpow2.f32 %v1736_v31  ;;  %v5384_v38 = vld [vmem:[#allocation69_spill] sm:$0xff]  ;;  %v1260_v31 = vsub.f32 %v5390_v42, %v4879_v41 }
 0x615   : > { %3424 = vpow2.f32 %v1748_v32 }
 0x616   : > { %2795 = vst.msk [vmem:[%s4063_s7 + $0x2f0] sm:$0xff] %vm2700_vm3, %v2666_v30  ;;  %v1253_v30 = vsub.f32 %v5384_v38, %v4879_v41 }
 0x618   : > { %v1382_v56 = vmul.f32 %v1253_v30, %v1253_v30  ;;  %v1266_v30 = vsub.f32 %v4516_v46, %v4879_v41 }
 0x619   : > { %2461 = vperm.xlu2 %3188, %v5368_v45   ;;  %2455 = vperm.xlu1 %3187, %v5368_v45  }
 0x61a   : > { %v1513_v40 = vmul.f32 %v4042_v23, %v1382_v56  ;;  %v1395_v56 = vmul.f32 %v1266_v30, %v1266_v30 }
 0x61b   : > { %v2353_v59 = vpop.permute.xlu1 %2352 }
 0x61c   : > { %v2663_v50 = vmul.f32 %v3411_v7, %v2353_v59  ;;  %v5385_v59 = vld [vmem:[#allocation60_spill] sm:$0xff]  ;;  %v1742_v15 = vmul.f32 1.442695, %v1513_v40 }
 0x61e   : > { %2792 = vst.msk [vmem:[%s4063_s7 + $0x2d8] sm:$0xff] %vm2700_vm3, %v2663_v50  ;;  %v1259_v50 = vsub.f32 %v5385_v59, %v4879_v41  ;;  %3426 = vpow2.f32 %v1742_v15  ;;  %v1526_v59 = vmul.f32 %v4042_v23, %v1395_v56 }
 0x620   : > { %v1388_v28 = vmul.f32 %v1259_v50, %v1259_v50  ;;  %v1768_v50 = vmul.f32 1.442695, %v1526_v59  ;;  %v5397_v59 = vld [vmem:[#allocation77_spill] sm:$0xff] }
 0x621   : > { %3191 = vset.pattern.permute.xlu2 %v3685_v1  ;;  %3190 = vset.pattern.permute.xlu1 %v3812_v33 }
 0x622   : > { %v1519_v16 = vmul.f32 %v4042_v23, %v1388_v28 }
 0x623   : > { %v2390_v55 = vpop.permute.xlu2 %2389 }
 0x624   : > { %v2669_v48 = vmul.f32 %v3413_v51, %v2390_v55  ;;  %v5386_v55 = vld [vmem:[#allocation11_spill] sm:$0xff]  ;;  %v1754_v4 = vmul.f32 1.442695, %v1519_v16 }
 0x626   : > { %2798 = vst.msk [vmem:[%s4063_s7 + $0x308] sm:$0xff] %vm2700_vm3, %v2669_v48  ;;  %v1255_v48 = vsub.f32 %v5386_v55, %v4879_v41  ;;  %3428 = vpow2.f32 %v1754_v4 }
 0x628   : > { %v1384_v53 = vmul.f32 %v1255_v48, %v1255_v48 }
 0x629   : > { %2480 = vperm.xlu2 %3191, %v5380_v54   ;;  %2473 = vperm.xlu1 %3190, %v5368_v45  }
 0x62a   : > { %v1515_v44 = vmul.f32 %v4042_v23, %v1384_v53 }
 0x62b   : > { %v2365_v1 = vpop.permute.xlu1 %2364 }
 0x62c   : > { %v2665_v6 = vmul.f32 %v3415_v37, %v2365_v1  ;;  %v1261_v1 = vsub.f32 %v5387_v13, %v4879_v41 }
 0x62e   : > { %2794 = vst.msk [vmem:[%s4063_s7 + $0x2e8] sm:$0xff] %vm2700_vm3, %v2665_v6  ;;  %v1746_v6 = vmul.f32 1.442695, %v1515_v44  ;;  %v1390_v14 = vmul.f32 %v1261_v1, %v1261_v1 }
 0x630   : > { %3430 = vpow2.f32 %v1746_v6 }
 0x631   : > { %3193 = vset.pattern.permute.xlu2 %v3691_v3  ;;  %3192 = vset.pattern.permute.xlu1 %v3825_v21  ;;  %v3419_v3 = vpop.eup %3418 }
 0x632   : > { %v3421_v25 = vpop.eup %3420 }
 0x633   : > { %v2402_v27 = vpop.permute.xlu2 %2401 }
 0x634   : > { %v2671_v45 = vmul.f32 %v3417_v35, %v2402_v27  ;;  %v1258_v35 = vsub.f32 %v5388_v22, %v4879_v41  ;;  %v1521_v27 = vmul.f32 %v4042_v23, %v1390_v14  ;;  %v1271_v14 = vsub.f32 %v4531_v20, %v4879_v41 }
 0x636   : > { %2800 = vst.msk [vmem:[%s4063_s7 + $0x318] sm:$0xff] %vm2700_vm3, %v2671_v45  ;;  %v1387_v45 = vmul.f32 %v1258_v35, %v1258_v35  ;;  %v1758_v34 = vmul.f32 1.442695, %v1521_v27  ;;  %v5394_v27 = vld [vmem:[#allocation75_spill] sm:$0xff] }
 0x638   : > { %v1518_v26 = vmul.f32 %v4042_v23, %v1387_v45  ;;  %3432 = vpow2.f32 %v1758_v34  ;;  %v1268_v45 = vsub.f32 %v5394_v27, %v4879_v41 }
 0x639   : > { %2492 = vperm.xlu2 %3193, %v5380_v54   ;;  %2486 = vperm.xlu1 %3192, %v5380_v54  }
 0x63b   : > { %v2384_v21 = vpop.permute.xlu1 %2383 }
 0x63c   : > { %v2668_v47 = vmul.f32 %v3419_v3, %v2384_v21  ;;  %v1752_v3 = vmul.f32 1.442695, %v1518_v26  ;;  %v1393_v21 = vmul.f32 %v1264_v39, %v1264_v39  ;;  %v5395_v39 = vld [vmem:[#allocation72_spill] sm:$0xff] }
 0x63e   : > { %2797 = vst.msk [vmem:[%s4063_s7 + $0x300] sm:$0xff] %vm2700_vm3, %v2668_v47  ;;  %3434 = vpow2.f32 %v1752_v3  ;;  %v1524_v60 = vmul.f32 %v4042_v23, %v1393_v21  ;;  %v1274_v3 = vsub.f32 %v5395_v39, %v4879_v41 }
 0x641   : > { %3196 = vset.pattern.permute.xlu2 %v3722_v29  ;;  %3195 = vset.pattern.permute.xlu1 %v3688_v2  ;;  %v3423_v29 = vpop.eup %3422 }
 0x642   : > { %v3425_v0 = vpop.eup %3424 }
 0x643   : > { %v2420_v17 = vpop.permute.xlu2 %2419 }
 0x644   : > { %v2674_v36 = vmul.f32 %v3421_v25, %v2420_v17  ;;  %v1389_v25 = vmul.f32 %v1260_v31, %v1260_v31  ;;  %v1764_v17 = vmul.f32 1.442695, %v1524_v60  ;;  %v5396_v31 = vld [vmem:[#allocation18_spill] sm:$0xff] }
 0x645   : > { %v1270_v60 = vsub.f32 %v5396_v31, %v4879_v41 }
 0x646   : > { %2803 = vst.msk [vmem:[%s4063_s7 + $0x330] sm:$0xff] %vm2700_vm3, %v2674_v36  ;;  %v1520_v38 = vmul.f32 %v4042_v23, %v1389_v25  ;;  %3436 = vpow2.f32 %v1764_v17 }
 0x647   : > { %v1399_v17 = vmul.f32 %v1270_v60, %v1270_v60 }
 0x648   : > { %v1756_v62 = vmul.f32 1.442695, %v1520_v38 }
 0x649   : > { %2510 = vperm.xlu2 %3196, %v5380_v54   ;;  %2504 = vperm.xlu1 %3195, %v5380_v54   ;;  %v1530_v30 = vmul.f32 %v4042_v23, %v1399_v17 }
 0x64a   : > { %3438 = vpow2.f32 %v1756_v62  ;;  %v1276_v62 = vsub.f32 %v4547_v5, %v4879_v41 }
 0x64b   : > { %v2396_v2 = vpop.permute.xlu1 %2395  ;;  %3440 = vpow2.f32 %v1768_v50  ;;  %v1776_v56 = vmul.f32 1.442695, %v1530_v30 }
 0x64c   : > { %v2670_v7 = vmul.f32 %v3423_v29, %v2396_v2 }
 0x64e   : > { %2799 = vst.msk [vmem:[%s4063_s7 + $0x310] sm:$0xff] %vm2700_vm3, %v2670_v7  ;;  %v5391_v7 = vld [vmem:[#allocation74_spill] sm:$0xff] }
 0x64f   : > { %v1263_v40 = vsub.f32 %v5391_v7, %v4879_v41 }
 0x651   : > { %3198 = vset.pattern.permute.xlu2 %v3741_v49  ;;  %3197 = vset.pattern.permute.xlu1 %v3761_v24  ;;  %v3427_v49 = vpop.eup %3426  ;;  %v1392_v46 = vmul.f32 %v1263_v40, %v1263_v40  ;;  %v3468_v40 = vld [vmem:[#allocation4] ss:$0 sm:$0xff] }
 0x652   : > { %v3429_v19 = vpop.eup %3428 }
 0x653   : > { %v2432_v63 = vpop.permute.xlu2 %2431  ;;  %v1523_v28 = vmul.f32 %v4042_v23, %v1392_v46  ;;  %v1273_v46 = vsub.f32 %v5397_v59, %v3468_v40 }
 0x654   : > { %v2676_v51 = vmul.f32 %v3425_v0, %v2432_v63  ;;  %v5392_v0 = vld [vmem:[#allocation68_spill] sm:$0xff] }
 0x655   : > { %v1269_v63 = vsub.f32 %v5392_v0, %v4879_v41  ;;  %v5398_v0 = vld [vmem:[#allocation76_spill] sm:$0xff] }
 0x656   : > { %2805 = vst.msk [vmem:[%s4063_s7 + $0x340] sm:$0xff] %vm2700_vm3, %v2676_v51  ;;  %v1762_v51 = vmul.f32 1.442695, %v1523_v28 }
 0x657   : > { %v1398_v55 = vmul.f32 %v1269_v63, %v1269_v63  ;;  %v1279_v63 = vsub.f32 %v5398_v0, %v3468_v40 }
 0x658   : > { %3442 = vpow2.f32 %v1762_v51 }
 0x659   : > { %2522 = vperm.xlu2 %3198, %v5380_v54   ;;  %2516 = vperm.xlu1 %3197, %v5380_v54  }
 0x65b   : > { %v2414_v24 = vpop.permute.xlu1 %2413 }
 0x65c   : > { %v2673_v37 = vmul.f32 %v3427_v49, %v2414_v24  ;;  %v1529_v49 = vmul.f32 %v4042_v23, %v1398_v55  ;;  %v1408_v55 = vmul.f32 %v1279_v63, %v1279_v63 }
 0x65e   : > { %2802 = vst.msk [vmem:[%s4063_s7 + $0x328] sm:$0xff] %vm2700_vm3, %v2673_v37  ;;  %v1774_v37 = vmul.f32 1.442695, %v1529_v49  ;;  %v1539_v49 = vmul.f32 %v4042_v23, %v1408_v55 }
 0x660   : > { %3444 = vpow2.f32 %v1774_v37  ;;  %v1794_v37 = vmul.f32 1.442695, %v1539_v49 }
 0x661   : > { %3201 = vset.pattern.permute.xlu2 %v3783_v57  ;;  %3200 = vset.pattern.permute.xlu1 %v3786_v58  ;;  %v3431_v57 = vpop.eup %3430 }
 0x662   : > { %v3433_v47 = vpop.eup %3432 }
 0x663   : > { %v2450_v8 = vpop.permute.xlu2 %2449 }
 0x664   : > { %v2679_v9 = vmul.f32 %v3429_v19, %v2450_v8  ;;  %v1400_v8 = vmul.f32 %v1271_v14, %v1271_v14 }
 0x666   : > { %2808 = vst.msk [vmem:[%s4063_s7 + $0x358] sm:$0xff] %vm2700_vm3, %v2679_v9  ;;  %v1531_v34 = vmul.f32 %v4042_v23, %v1400_v8 }
 0x669   : > { %2540 = vperm.xlu2 %3201, %v5380_v54   ;;  %2534 = vperm.xlu1 %3200, %v5380_v54  }
 0x66b   : > { %v2426_v58 = vpop.permute.xlu1 %2425 }
 0x66c   : > { %v2675_v61 = vmul.f32 %v3431_v57, %v2426_v58  ;;  %v1397_v57 = vmul.f32 %v1268_v45, %v1268_v45  ;;  %v1778_v58 = vmul.f32 1.442695, %v1531_v34 }
 0x66e   : > { %2804 = vst.msk [vmem:[%s4063_s7 + $0x338] sm:$0xff] %vm2700_vm3, %v2675_v61  ;;  %v1528_v43 = vmul.f32 %v4042_v23, %v1397_v57 }
 0x670   : > { %v1772_v21 = vmul.f32 1.442695, %v1528_v43 }
 0x671   : > { %3203 = vset.pattern.permute.xlu2 %v3703_v10  ;;  %3202 = vset.pattern.permute.xlu1 %v3795_v12  ;;  %v3435_v10 = vpop.eup %3434 }
 0x672   : > { %v3437_v32 = vpop.eup %3436 }
 0x673   : > { %v2462_v52 = vpop.permute.xlu2 %2461 }
 0x674   : > { %v2681_v18 = vmul.f32 %v3433_v47, %v2462_v52  ;;  %v1403_v47 = vmul.f32 %v1274_v3, %v1274_v3 }
 0x676   : > { %2810 = vst.msk [vmem:[%s4063_s7 + $0x368] sm:$0xff] %vm2700_vm3, %v2681_v18  ;;  %v1534_v25 = vmul.f32 %v4042_v23, %v1403_v47 }
 0x679   : > { %2552 = vperm.xlu2 %3203, %v5380_v54   ;;  %2546 = vperm.xlu1 %3202, %v5380_v54  }
 0x67b   : > { %v2444_v12 = vpop.permute.xlu1 %2443 }
 0x67c   : > { %v2678_v36 = vmul.f32 %v3435_v10, %v2444_v12  ;;  %v1784_v10 = vmul.f32 1.442695, %v1534_v25 }
 0x67e   : > { %2807 = vst.msk [vmem:[%s4063_s7 + $0x350] sm:$0xff] %vm2700_vm3, %v2678_v36 }
 0x681   : > { %3205 = vset.pattern.permute.xlu2 %v3812_v33  ;;  %3204 = vset.pattern.permute.xlu1 %v3815_v11  ;;  %v3439_v33 = vpop.eup %3438 }
 0x682   : > { %v3441_v48 = vpop.eup %3440 }
 0x683   : > { %v2481_v29 = vpop.permute.xlu2 %2480  ;;  %v3443_v44 = vpop.eup %3442 }
 0x684   : > { %v2684_v2 = vmul.f32 %v3437_v32, %v2481_v29  ;;  %v3445_v9 = vpop.eup %3444  ;;  %v1405_v32 = vmul.f32 %v1276_v62, %v1276_v62 }
 0x686   : > { %2813 = vst.msk [vmem:[%s4063_s7 + $0x380] sm:$0xff] %vm2700_vm3, %v2684_v2  ;;  %v1536_v50 = vmul.f32 %v4042_v23, %v1405_v32 }
 0x689   : > { %2570 = vperm.xlu2 %3205, %v5380_v54   ;;  %2564 = vperm.xlu1 %3204, %v5380_v54   ;;  %v5393_v54 = vld [vmem:[#allocation16_spill] sm:$0xff] }
 0x68a   : > { %v1265_v4 = vsub.f32 %v5393_v54, %v4879_v41  ;;  %v5399_v54 = vld [vmem:[#allocation20_spill] sm:$0xff] }
 0x68b   : > { %v2456_v11 = vpop.permute.xlu1 %2455 }
 0x68c   : > { %v2680_v15 = vmul.f32 %v3439_v33, %v2456_v11  ;;  %v1394_v24 = vmul.f32 %v1265_v4, %v1265_v4  ;;  %v1402_v33 = vmul.f32 %v1273_v46, %v1273_v46  ;;  %v1788_v11 = vmul.f32 1.442695, %v1536_v50 }
 0x68d   : > { %v1275_v4 = vsub.f32 %v5399_v54, %v3468_v40 }
 0x68e   : > { %2809 = vst.msk [vmem:[%s4063_s7 + $0x360] sm:$0xff] %vm2700_vm3, %v2680_v15  ;;  %v1525_v6 = vmul.f32 %v4042_v23, %v1394_v24  ;;  %v1533_v28 = vmul.f32 %v4042_v23, %v1402_v33 }
 0x68f   : > { %v1404_v24 = vmul.f32 %v1275_v4, %v1275_v4 }
 0x690   : > { %v1766_v19 = vmul.f32 1.442695, %v1525_v6  ;;  %v1782_v51 = vmul.f32 1.442695, %v1533_v28 }
 0x691   : > { %v1535_v6 = vmul.f32 %v4042_v23, %v1404_v24 }
 0x692   : > { %3446 = vpow2.f32 %v1766_v19 }
 0x693   : > { %v2493_v16 = vpop.permute.xlu2 %2492  ;;  %3448 = vpow2.f32 %v1778_v58  ;;  %v1786_v14 = vmul.f32 1.442695, %v1535_v6 }
 0x694   : > { %v2686_v53 = vmul.f32 %v3441_v48, %v2493_v16  ;;  %3450 = vpow2.f32 %v1772_v21 }
 0x695   : > { %3452 = vpow2.f32 %v1784_v10 }
 0x696   : > { %2815 = vst.msk [vmem:[%s4063_s7 + $0x390] sm:$0xff] %vm2700_vm3, %v2686_v53  ;;  %3454 = vpow2.f32 %v1776_v56 }
 0x697   : > { %3456 = vpow2.f32 %v1788_v11 }
 0x698   : > { %v3447_v20 = vpop.eup %3446  ;;  %3458 = vpow2.f32 %v1782_v51 }
 0x699   : > { %v3449_v52 = vpop.eup %3448  ;;  %3460 = vpow2.f32 %v1794_v37 }
 0x69a   : > { %v3451_v12 = vpop.eup %3450  ;;  %3462 = vpow2.f32 %v1786_v14 }
 0x69b   : > { %v2474_v13 = vpop.permute.xlu1 %2473  ;;  %v3453_v29 = vpop.eup %3452 }
 0x69c   : > { %v2683_v1 = vmul.f32 %v3443_v44, %v2474_v13  ;;  %v3455_v5 = vpop.eup %3454 }
 0x69d   : > { %v3457_v48 = vpop.eup %3456 }
 0x69e   : > { %2812 = vst.msk [vmem:[%s4063_s7 + $0x378] sm:$0xff] %vm2700_vm3, %v2683_v1  ;;  %v3459_v44 = vpop.eup %3458 }
 0x69f   : > { %v3461_v19 = vpop.eup %3460 }
 0x6a0   : > { %v3463_v45 = vpop.eup %3462 }
 0x6a3   : > { %v2511_v22 = vpop.permute.xlu2 %2510 }
 0x6a4   : > { %v2689_v35 = vmul.f32 %v3445_v9, %v2511_v22  ;;  %v5400_v22 = vld [vmem:[#allocation78_spill] sm:$0xff] }
 0x6a6   : > { %2818 = vst.msk [vmem:[%s4063_s7 + $0x3a8] sm:$0xff] %vm2700_vm3, %v2689_v35  ;;  %v1278_v35 = vsub.f32 %v5400_v22, %v3468_v40 }
 0x6a8   : > { %v1407_v27 = vmul.f32 %v1278_v35, %v1278_v35 }
 0x6aa   : > { %v1538_v58 = vmul.f32 %v4042_v23, %v1407_v27 }
 0x6ab   : > { %v2487_v61 = vpop.permute.xlu1 %2486 }
 0x6ac   : > { %v2685_v26 = vmul.f32 %v3447_v20, %v2487_v61  ;;  %v1792_v20 = vmul.f32 1.442695, %v1538_v58 }
 0x6ae   : > { %2814 = vst.msk [vmem:[%s4063_s7 + $0x388] sm:$0xff] %vm2700_vm3, %v2685_v26  ;;  %3464 = vpow2.f32 %v1792_v20 }
 0x6b3   : > { %v2523_v18 = vpop.permute.xlu2 %2522 }
 0x6b4   : > { %v2691_v42 = vmul.f32 %v3449_v52, %v2523_v18  ;;  %v3465_v61 = vpop.eup %3464 }
 0x6b6   : > { %2820 = vst.msk [vmem:[%s4063_s7 + $0x3b8] sm:$0xff] %vm2700_vm3, %v2691_v42 }
 0x6bb   : > { %v2505_v36 = vpop.permute.xlu1 %2504 }
 0x6bc   : > { %v2688_v38 = vmul.f32 %v3451_v12, %v2505_v36 }
 0x6be   : > { %2817 = vst.msk [vmem:[%s4063_s7 + $0x3a0] sm:$0xff] %vm2700_vm3, %v2688_v38 }
 0x6c3   : > { %v2541_v2 = vpop.permute.xlu2 %2540 }
 0x6c4   : > { %v2694_v7 = vmul.f32 %v3453_v29, %v2541_v2 }
 0x6c6   : > { %2823 = vst.msk [vmem:[%s4063_s7 + $0x3d0] sm:$0xff] %vm2700_vm3, %v2694_v7 }
 0x6cb   : > { %v2517_v41 = vpop.permute.xlu1 %2516 }
 0x6cc   : > { %v2690_v15 = vmul.f32 %v3455_v5, %v2517_v41 }
 0x6ce   : > { %2819 = vst.msk [vmem:[%s4063_s7 + $0x3b0] sm:$0xff] %vm2700_vm3, %v2690_v15 }
 0x6d3   : > { %v2553_v16 = vpop.permute.xlu2 %2552 }
 0x6d4   : > { %v2696_v53 = vmul.f32 %v3457_v48, %v2553_v16 }
 0x6d6   : > { %2825 = vst.msk [vmem:[%s4063_s7 + $0x3e0] sm:$0xff] %vm2700_vm3, %v2696_v53 }
 0x6db   : > { %v2535_v13 = vpop.permute.xlu1 %2534 }
 0x6dc   : > { %v2693_v1 = vmul.f32 %v3459_v44, %v2535_v13 }
 0x6de   : > { %2822 = vst.msk [vmem:[%s4063_s7 + $0x3c8] sm:$0xff] %vm2700_vm3, %v2693_v1 }
 0x6e3   : > { %v2571_v8 = vpop.permute.xlu2 %2570 }
 0x6e4   : > { %v2699_v9 = vmul.f32 %v3461_v19, %v2571_v8 }
 0x6e6   : > { %2828 = vst.msk [vmem:[%s4063_s7 + $0x3f8] sm:$0xff] %vm2700_vm3, %v2699_v9 }
 0x6eb   : > { %v2547_v34 = vpop.permute.xlu1 %2546 }
 0x6ec   : > { %v2695_v57 = vmul.f32 %v3463_v45, %v2547_v34 }
 0x6ee   : > { %2824 = vst.msk [vmem:[%s4063_s7 + $0x3d8] sm:$0xff] %vm2700_vm3, %v2695_v57 }
 0x6fb   : > { %v2565_v26 = vpop.permute.xlu1 %2564 }
 0x6fc   : > { %v2698_v43 = vmul.f32 %v3465_v61, %v2565_v26 }
 0x6fe   : > { %2827 = vst.msk [vmem:[%s4063_s7 + $0x3f0] sm:$0xff] %vm2700_vm3, %v2698_v43 }
 0x6ff PF: > { %p14_p4 = scmp.ge.s32.totalorder %s3643_s25, 4   ;;  %s5401_s12 = smov %s3559_s13 }
 0x700   : > { %s5402_s13 = smov %s3563_s14  ;;  %s5403_s14 = smov %s3653_s28 }
 0x701   : > { %s5404_s15 = smov %s3643_s25  ;;  %16 = sbr.rel (!%p14_p4) target bundleno = 4 (0x4), region = 76 }
 0x706   :  { %2853 = vsyncpa [#allocation3], 1 }
 0x707   :  { %2855 = vsyncpa [#allocation3 + $0x1], 1 }
 0x708   :  { %2856 = vsyncpa [#allocation5], 1 }

</bundles_post_ra>
